<compile_context>
chip_gen: v7x
topology: tpu7x:2x2x1
jax: 0.10.0
libtpu: 0.0.40
codegen_flags: <defaults>
</compile_context>

<pallas_src>
import functools

import jax
import jax.numpy as jnp
from jax import lax
from jax.experimental import pallas as pl
from jax.experimental.pallas import tpu as pltpu


# ------------------------------- Pallas kernel -------------------------------
def _conv3_bn_relu_kernel(x0_ref, x1_ref, x2_ref, w_ref, s_ref, b_ref, o_ref,
                          *, H, W, Cout):
    """One (n, d) output depth slice of 3x3x3 conv + folded BN + ReLU.

    x{0,1,2}_ref: (1, 1, Rp, Cin) bf16 -- padded planes at depths d, d+1, d+2,
                  flattened over (H+2, W+2) with 2 trailing guard rows.
    w_ref:        (27, Cin, Cout) bf16 -- taps ordered (kd, kh, kw).
    s_ref, b_ref: (1, Cout) f32 -- folded BatchNorm scale / bias.
    o_ref:        (1, 1, H*(W+2), Cout) -- rows in the same flattened layout
                  (columns w >= W of each row are junk, dropped in wrapper).
    """
    Wp = W + 2
    M = H * Wp
    planes = (x0_ref, x1_ref, x2_ref)

    acc = jnp.zeros((M, Cout), jnp.float32)
    for kd in range(3):
        for kh in range(3):
            for kw in range(3):
                start = kh * Wp + kw                      # static offset
                a = planes[kd][0, 0, start:start + M, :]  # (M, Cin) bf16
                wt = w_ref[kd * 9 + kh * 3 + kw]          # (Cin, Cout) bf16
                acc = acc + jnp.dot(a, wt, preferred_element_type=jnp.float32)

    y = jnp.maximum(acc * s_ref[...] + b_ref[...], 0.0)   # f32 epilogue
    o_ref[0, 0] = y.astype(o_ref.dtype)


# ------------------------------- layer wrapper --------------------------------
def conv3x3x3_bn_relu(x_ndhwc, w_oidhw, gamma, beta, mean, var, *,
                      eps=1e-5, out_dtype=jnp.float32):
    """Fused Conv3d(3,pad=1,bias=False) + BatchNorm3d(inference) + ReLU."""
    N, D, H, W, Cin = x_ndhwc.shape
    Cout = w_oidhw.shape[0]
    assert w_oidhw.shape == (Cout, Cin, 3, 3, 3), w_oidhw.shape
    Hp, Wp = H + 2, W + 2
    M = H * Wp                 # rows computed per depth slice (incl. junk cols)
    Rp = Hp * Wp + 2           # flattened padded plane rows (+2 guard rows)

    # Fold BN (inference): scale = gamma/sqrt(var+eps); bias = beta - mean*scale
    scale = (gamma / jnp.sqrt(var + eps)).astype(jnp.float32)
    bias = (beta - mean * scale).astype(jnp.float32)
    scale = scale.reshape(1, Cout)
    bias = bias.reshape(1, Cout)

    # Conv3d weight (O, I, kd, kh, kw) -> (27, I, O), taps ordered (kd, kh, kw).
    wk = jnp.transpose(w_oidhw, (2, 3, 4, 1, 0)).reshape(27, Cin, Cout)
    wk = wk.astype(jnp.bfloat16)

    # Pad D/H/W by 1 ("same" padding), flatten each (H+2, W+2) plane and append
    # 2 zero guard rows so the last shifted tap window stays in bounds.
    xp = jnp.pad(x_ndhwc.astype(jnp.bfloat16),
                 ((0, 0), (1, 1), (1, 1), (1, 1), (0, 0)))
    xf = xp.reshape(N, D + 2, Hp * Wp, Cin)
    xf = jnp.pad(xf, ((0, 0), (0, 0), (0, 2), (0, 0)))     # (N, D+2, Rp, Cin)

    kernel = functools.partial(_conv3_bn_relu_kernel, H=H, W=W, Cout=Cout)

    in_specs = [
        # Three depth-shifted views of the same padded array -> d, d+1, d+2.
        pl.BlockSpec((1, 1, Rp, Cin), lambda n, d, k=k: (n, d + k, 0, 0))
        for k in range(3)
    ]
    in_specs += [
        pl.BlockSpec((27, Cin, Cout), lambda n, d: (0, 0, 0)),  # resident weights
        pl.BlockSpec((1, Cout), lambda n, d: (0, 0)),           # folded BN scale
        pl.BlockSpec((1, Cout), lambda n, d: (0, 0)),           # folded BN bias
    ]

    out_flat = pl.pallas_call(
        kernel,
        out_shape=jax.ShapeDtypeStruct((N, D, M, Cout), out_dtype),
        grid=(N, D),
        in_specs=in_specs,
        out_specs=pl.BlockSpec((1, 1, M, Cout), lambda n, d: (n, d, 0, 0)),
        compiler_params=pltpu.CompilerParams(
            dimension_semantics=("parallel", "parallel"),
            vmem_limit_bytes=48 * 1024 * 1024),
    )(xf, xf, xf, wk, scale, bias)

    # Drop the 2 junk columns of each flattened row -> NDHWC output.
    return out_flat.reshape(N, D, H, Wp, Cout)[:, :, :, :W, :]


# ------------------------------- CenterBlock ----------------------------------
def center_block_forward(x_ncdhw, params, *, eps=1e-5):
    """Forward of CenterBlock (fc_block=False), inference mode, NCDHW I/O."""
    x = jnp.transpose(x_ncdhw, (0, 2, 3, 4, 1))            # NDHWC

    h1 = conv3x3x3_bn_relu(x, params["w1"], params["g1"], params["be1"],
                           params["m1"], params["v1"], eps=eps,
                           out_dtype=jnp.bfloat16)          # stays bf16 in HBM
    h2 = conv3x3x3_bn_relu(h1, params["w2"], params["g2"], params["be2"],
                           params["m2"], params["v2"], eps=eps,
                           out_dtype=jnp.float32)

    # Dropout3d: identity in eval mode.
    # TODO(synk): training-mode channel dropout would need pltpu.prng_* masking.
    return jnp.transpose(h2, (0, 4, 1, 2, 3))               # back to NCDHW


# ------------------------------ pure-JAX reference ----------------------------
def _ref_forward(x_ncdhw, params, eps=1e-5):
    dn = ("NCDHW", "OIDHW", "NCDHW")

    def conv(x, w):
        return lax.conv_general_dilated(
            x, w, window_strides=(1, 1, 1), padding=[(1, 1)] * 3,
            dimension_numbers=dn)

    def bn(x, g, be, m, v):
        sh = (1, -1, 1, 1, 1)
        return (x - m.reshape(sh)) / jnp.sqrt(v.reshape(sh) + eps) * \
            g.reshape(sh) + be.reshape(sh)

    h = jax.nn.relu(bn(conv(x_ncdhw, params["w1"]),
                       params["g1"], params["be1"], params["m1"], params["v1"]))
    h = jax.nn.relu(bn(conv(h, params["w2"]),
                       params["g2"], params["be2"], params["m2"], params["v2"]))
    return h


# ------------------------------------ main ------------------------------------
if __name__ == "__main__":
    N, Cin, Cout = 2, 4, 8
    D = H = W = 8

    key = jax.random.PRNGKey(0)
    ks = jax.random.split(key, 12)

    x = jax.random.normal(ks[0], (N, Cin, D, H, W), dtype=jnp.float32)

    params = {
        # Conv3d weights, PyTorch layout (O, I, kd, kh, kw), bias=False
        "w1": jax.random.normal(ks[1], (Cout, Cin, 3, 3, 3), jnp.float32) * 0.2,
        "w2": jax.random.normal(ks[2], (Cout, Cout, 3, 3, 3), jnp.float32) * 0.2,
        # BatchNorm3d params + running stats (inference mode)
        "g1": jax.random.uniform(ks[3], (Cout,), jnp.float32, 0.5, 1.5),
        "be1": jax.random.normal(ks[4], (Cout,), jnp.float32) * 0.1,
        "m1": jax.random.normal(ks[5], (Cout,), jnp.float32) * 0.1,
        "v1": jax.random.uniform(ks[6], (Cout,), jnp.float32, 0.5, 1.5),
        "g2": jax.random.uniform(ks[7], (Cout,), jnp.float32, 0.5, 1.5),
        "be2": jax.random.normal(ks[8], (Cout,), jnp.float32) * 0.1,
        "m2": jax.random.normal(ks[9], (Cout,), jnp.float32) * 0.1,
        "v2": jax.random.uniform(ks[10], (Cout,), jnp.float32, 0.5, 1.5),
    }

    out = jax.jit(center_block_forward)(x, params)
    out = jax.block_until_ready(out)
    assert out.shape == (N, Cout, D, H, W), out.shape

    ref = jax.block_until_ready(_ref_forward(x, params))
    rel_err = jnp.max(jnp.abs(out - ref)) / (jnp.max(jnp.abs(ref)) + 1e-6)
    # Tolerance sized for bf16 MXU operands (f32 accumulation); observed error
    # is ~1e-2 of the max magnitude after two bf16 conv layers.
    assert float(rel_err) < 3e-2, f"mismatch vs reference: rel_err={rel_err}"

    print("KERNEL_OK")
</pallas_src>

<mosaic_0001>
module attributes {stable_mosaic.version = 11 : i64} {
  func.func @_conv3_bn_relu_kernel(%arg0: i32, %arg1: i32, %arg2: memref<1x1x102x4xbf16, #tpu.memory_space<vmem>>, %arg3: memref<1x1x102x4xbf16, #tpu.memory_space<vmem>>, %arg4: memref<1x1x102x4xbf16, #tpu.memory_space<vmem>>, %arg5: memref<27x4x8xbf16, #tpu.memory_space<vmem>>, %arg6: memref<1x8xf32, #tpu.memory_space<vmem>>, %arg7: memref<1x8xf32, #tpu.memory_space<vmem>>, %arg8: memref<1x1x80x8xbf16, #tpu.memory_space<vmem>>) attributes {dimension_semantics = [#tpu.dimension_semantics<parallel>, #tpu.dimension_semantics<parallel>], iteration_bounds = array<i64: 2, 8>, scalar_prefetch = 0 : i64, scratch_operands = 0 : i64, tpu.core_type = #tpu.core_type<tc>, window_params = [{transform_indices = @transform_0, window_bounds = array<i64: 1, 1, 102, 4>}, {transform_indices = @transform_1, window_bounds = array<i64: 1, 1, 102, 4>}, {transform_indices = @transform_2, window_bounds = array<i64: 1, 1, 102, 4>}, {pipeline_mode = #tpu.pipeline_mode<synchronous>, transform_indices = @transform_3, window_bounds = array<i64: 27, 4, 8>}, {pipeline_mode = #tpu.pipeline_mode<synchronous>, transform_indices = @transform_4, window_bounds = array<i64: 1, 8>}, {pipeline_mode = #tpu.pipeline_mode<synchronous>, transform_indices = @transform_5, window_bounds = array<i64: 1, 8>}, {transform_indices = @transform_6, window_bounds = array<i64: 1, 1, 80, 8>}]} {
    %cst = arith.constant 0.000000e+00 : f32
    %0 = vector.broadcast %cst : f32 to vector<80x8xf32>
    %c0 = arith.constant 0 : index
    %c0_0 = arith.constant 0 : index
    %c0_1 = arith.constant 0 : index
    %c0_2 = arith.constant 0 : index
    %1 = vector.load %arg2[%c0, %c0_0, %c0_1, %c0_2] : memref<1x1x102x4xbf16, #tpu.memory_space<vmem>>, vector<1x1x80x4xbf16>
    %2 = vector.shape_cast %1 : vector<1x1x80x4xbf16> to vector<80x4xbf16>
    %c0_3 = arith.constant 0 : index
    %c0_4 = arith.constant 0 : index
    %c0_5 = arith.constant 0 : index
    %3 = vector.load %arg5[%c0_3, %c0_4, %c0_5] : memref<27x4x8xbf16, #tpu.memory_space<vmem>>, vector<1x4x8xbf16>
    %4 = vector.shape_cast %3 : vector<1x4x8xbf16> to vector<4x8xbf16>
    %cst_6 = arith.constant dense<0.000000e+00> : vector<80x8xf32>
    %5 = tpu.matmul %2, %4, %cst_6 {dimension_numbers = #tpu.dot_dimension_numbers<[1], [0], [0], [1], [0, 0, 1, 1], [], []>} : vector<80x4xbf16>, vector<4x8xbf16>, vector<80x8xf32> -> vector<80x8xf32>
    %6 = arith.addf %0, %5 : vector<80x8xf32>
    %c0_7 = arith.constant 0 : index
    %c0_8 = arith.constant 0 : index
    %c1 = arith.constant 1 : index
    %c0_9 = arith.constant 0 : index
    %7 = vector.load %arg2[%c0_7, %c0_8, %c1, %c0_9] : memref<1x1x102x4xbf16, #tpu.memory_space<vmem>>, vector<1x1x80x4xbf16>
    %8 = vector.shape_cast %7 : vector<1x1x80x4xbf16> to vector<80x4xbf16>
    %c1_10 = arith.constant 1 : index
    %c0_11 = arith.constant 0 : index
    %c0_12 = arith.constant 0 : index
    %9 = vector.load %arg5[%c1_10, %c0_11, %c0_12] : memref<27x4x8xbf16, #tpu.memory_space<vmem>>, vector<1x4x8xbf16>
    %10 = vector.shape_cast %9 : vector<1x4x8xbf16> to vector<4x8xbf16>
    %cst_13 = arith.constant dense<0.000000e+00> : vector<80x8xf32>
    %11 = tpu.matmul %8, %10, %cst_13 {dimension_numbers = #tpu.dot_dimension_numbers<[1], [0], [0], [1], [0, 0, 1, 1], [], []>} : vector<80x4xbf16>, vector<4x8xbf16>, vector<80x8xf32> -> vector<80x8xf32>
    %12 = arith.addf %6, %11 : vector<80x8xf32>
    %c0_14 = arith.constant 0 : index
    %c0_15 = arith.constant 0 : index
    %c2 = arith.constant 2 : index
    %c0_16 = arith.constant 0 : index
    %13 = vector.load %arg2[%c0_14, %c0_15, %c2, %c0_16] : memref<1x1x102x4xbf16, #tpu.memory_space<vmem>>, vector<1x1x80x4xbf16>
    %14 = vector.shape_cast %13 : vector<1x1x80x4xbf16> to vector<80x4xbf16>
    %c2_17 = arith.constant 2 : index
    %c0_18 = arith.constant 0 : index
    %c0_19 = arith.constant 0 : index
    %15 = vector.load %arg5[%c2_17, %c0_18, %c0_19] : memref<27x4x8xbf16, #tpu.memory_space<vmem>>, vector<1x4x8xbf16>
    %16 = vector.shape_cast %15 : vector<1x4x8xbf16> to vector<4x8xbf16>
    %cst_20 = arith.constant dense<0.000000e+00> : vector<80x8xf32>
    %17 = tpu.matmul %14, %16, %cst_20 {dimension_numbers = #tpu.dot_dimension_numbers<[1], [0], [0], [1], [0, 0, 1, 1], [], []>} : vector<80x4xbf16>, vector<4x8xbf16>, vector<80x8xf32> -> vector<80x8xf32>
    %18 = arith.addf %12, %17 : vector<80x8xf32>
    %c0_21 = arith.constant 0 : index
    %c0_22 = arith.constant 0 : index
    %c10 = arith.constant 10 : index
    %c0_23 = arith.constant 0 : index
    %19 = vector.load %arg2[%c0_21, %c0_22, %c10, %c0_23] : memref<1x1x102x4xbf16, #tpu.memory_space<vmem>>, vector<1x1x80x4xbf16>
    %20 = vector.shape_cast %19 : vector<1x1x80x4xbf16> to vector<80x4xbf16>
    %c3 = arith.constant 3 : index
    %c0_24 = arith.constant 0 : index
    %c0_25 = arith.constant 0 : index
    %21 = vector.load %arg5[%c3, %c0_24, %c0_25] : memref<27x4x8xbf16, #tpu.memory_space<vmem>>, vector<1x4x8xbf16>
    %22 = vector.shape_cast %21 : vector<1x4x8xbf16> to vector<4x8xbf16>
    %cst_26 = arith.constant dense<0.000000e+00> : vector<80x8xf32>
    %23 = tpu.matmul %20, %22, %cst_26 {dimension_numbers = #tpu.dot_dimension_numbers<[1], [0], [0], [1], [0, 0, 1, 1], [], []>} : vector<80x4xbf16>, vector<4x8xbf16>, vector<80x8xf32> -> vector<80x8xf32>
    %24 = arith.addf %18, %23 : vector<80x8xf32>
    %c0_27 = arith.constant 0 : index
    %c0_28 = arith.constant 0 : index
    %c11 = arith.constant 11 : index
    %c0_29 = arith.constant 0 : index
    %25 = vector.load %arg2[%c0_27, %c0_28, %c11, %c0_29] : memref<1x1x102x4xbf16, #tpu.memory_space<vmem>>, vector<1x1x80x4xbf16>
    %26 = vector.shape_cast %25 : vector<1x1x80x4xbf16> to vector<80x4xbf16>
    %c4 = arith.constant 4 : index
    %c0_30 = arith.constant 0 : index
    %c0_31 = arith.constant 0 : index
    %27 = vector.load %arg5[%c4, %c0_30, %c0_31] : memref<27x4x8xbf16, #tpu.memory_space<vmem>>, vector<1x4x8xbf16>
    %28 = vector.shape_cast %27 : vector<1x4x8xbf16> to vector<4x8xbf16>
    %cst_32 = arith.constant dense<0.000000e+00> : vector<80x8xf32>
    %29 = tpu.matmul %26, %28, %cst_32 {dimension_numbers = #tpu.dot_dimension_numbers<[1], [0], [0], [1], [0, 0, 1, 1], [], []>} : vector<80x4xbf16>, vector<4x8xbf16>, vector<80x8xf32> -> vector<80x8xf32>
    %30 = arith.addf %24, %29 : vector<80x8xf32>
    %c0_33 = arith.constant 0 : index
    %c0_34 = arith.constant 0 : index
    %c12 = arith.constant 12 : index
    %c0_35 = arith.constant 0 : index
    %31 = vector.load %arg2[%c0_33, %c0_34, %c12, %c0_35] : memref<1x1x102x4xbf16, #tpu.memory_space<vmem>>, vector<1x1x80x4xbf16>
    %32 = vector.shape_cast %31 : vector<1x1x80x4xbf16> to vector<80x4xbf16>
    %c5 = arith.constant 5 : index
    %c0_36 = arith.constant 0 : index
    %c0_37 = arith.constant 0 : index
    %33 = vector.load %arg5[%c5, %c0_36, %c0_37] : memref<27x4x8xbf16, #tpu.memory_space<vmem>>, vector<1x4x8xbf16>
    %34 = vector.shape_cast %33 : vector<1x4x8xbf16> to vector<4x8xbf16>
    %cst_38 = arith.constant dense<0.000000e+00> : vector<80x8xf32>
    %35 = tpu.matmul %32, %34, %cst_38 {dimension_numbers = #tpu.dot_dimension_numbers<[1], [0], [0], [1], [0, 0, 1, 1], [], []>} : vector<80x4xbf16>, vector<4x8xbf16>, vector<80x8xf32> -> vector<80x8xf32>
    %36 = arith.addf %30, %35 : vector<80x8xf32>
    %c0_39 = arith.constant 0 : index
    %c0_40 = arith.constant 0 : index
    %c20 = arith.constant 20 : index
    %c0_41 = arith.constant 0 : index
    %37 = vector.load %arg2[%c0_39, %c0_40, %c20, %c0_41] : memref<1x1x102x4xbf16, #tpu.memory_space<vmem>>, vector<1x1x80x4xbf16>
    %38 = vector.shape_cast %37 : vector<1x1x80x4xbf16> to vector<80x4xbf16>
    %c6 = arith.constant 6 : index
    %c0_42 = arith.constant 0 : index
    %c0_43 = arith.constant 0 : index
    %39 = vector.load %arg5[%c6, %c0_42, %c0_43] : memref<27x4x8xbf16, #tpu.memory_space<vmem>>, vector<1x4x8xbf16>
    %40 = vector.shape_cast %39 : vector<1x4x8xbf16> to vector<4x8xbf16>
    %cst_44 = arith.constant dense<0.000000e+00> : vector<80x8xf32>
    %41 = tpu.matmul %38, %40, %cst_44 {dimension_numbers = #tpu.dot_dimension_numbers<[1], [0], [0], [1], [0, 0, 1, 1], [], []>} : vector<80x4xbf16>, vector<4x8xbf16>, vector<80x8xf32> -> vector<80x8xf32>
    %42 = arith.addf %36, %41 : vector<80x8xf32>
    %c0_45 = arith.constant 0 : index
    %c0_46 = arith.constant 0 : index
    %c21 = arith.constant 21 : index
    %c0_47 = arith.constant 0 : index
    %43 = vector.load %arg2[%c0_45, %c0_46, %c21, %c0_47] : memref<1x1x102x4xbf16, #tpu.memory_space<vmem>>, vector<1x1x80x4xbf16>
    %44 = vector.shape_cast %43 : vector<1x1x80x4xbf16> to vector<80x4xbf16>
    %c7 = arith.constant 7 : index
    %c0_48 = arith.constant 0 : index
    %c0_49 = arith.constant 0 : index
    %45 = vector.load %arg5[%c7, %c0_48, %c0_49] : memref<27x4x8xbf16, #tpu.memory_space<vmem>>, vector<1x4x8xbf16>
    %46 = vector.shape_cast %45 : vector<1x4x8xbf16> to vector<4x8xbf16>
    %cst_50 = arith.constant dense<0.000000e+00> : vector<80x8xf32>
    %47 = tpu.matmul %44, %46, %cst_50 {dimension_numbers = #tpu.dot_dimension_numbers<[1], [0], [0], [1], [0, 0, 1, 1], [], []>} : vector<80x4xbf16>, vector<4x8xbf16>, vector<80x8xf32> -> vector<80x8xf32>
    %48 = arith.addf %42, %47 : vector<80x8xf32>
    %c0_51 = arith.constant 0 : index
    %c0_52 = arith.constant 0 : index
    %c22 = arith.constant 22 : index
    %c0_53 = arith.constant 0 : index
    %49 = vector.load %arg2[%c0_51, %c0_52, %c22, %c0_53] : memref<1x1x102x4xbf16, #tpu.memory_space<vmem>>, vector<1x1x80x4xbf16>
    %50 = vector.shape_cast %49 : vector<1x1x80x4xbf16> to vector<80x4xbf16>
    %c8 = arith.constant 8 : index
    %c0_54 = arith.constant 0 : index
    %c0_55 = arith.constant 0 : index
    %51 = vector.load %arg5[%c8, %c0_54, %c0_55] : memref<27x4x8xbf16, #tpu.memory_space<vmem>>, vector<1x4x8xbf16>
    %52 = vector.shape_cast %51 : vector<1x4x8xbf16> to vector<4x8xbf16>
    %cst_56 = arith.constant dense<0.000000e+00> : vector<80x8xf32>
    %53 = tpu.matmul %50, %52, %cst_56 {dimension_numbers = #tpu.dot_dimension_numbers<[1], [0], [0], [1], [0, 0, 1, 1], [], []>} : vector<80x4xbf16>, vector<4x8xbf16>, vector<80x8xf32> -> vector<80x8xf32>
    %54 = arith.addf %48, %53 : vector<80x8xf32>
    %c0_57 = arith.constant 0 : index
    %c0_58 = arith.constant 0 : index
    %c0_59 = arith.constant 0 : index
    %c0_60 = arith.constant 0 : index
    %55 = vector.load %arg3[%c0_57, %c0_58, %c0_59, %c0_60] : memref<1x1x102x4xbf16, #tpu.memory_space<vmem>>, vector<1x1x80x4xbf16>
    %56 = vector.shape_cast %55 : vector<1x1x80x4xbf16> to vector<80x4xbf16>
    %c9 = arith.constant 9 : index
    %c0_61 = arith.constant 0 : index
    %c0_62 = arith.constant 0 : index
    %57 = vector.load %arg5[%c9, %c0_61, %c0_62] : memref<27x4x8xbf16, #tpu.memory_space<vmem>>, vector<1x4x8xbf16>
    %58 = vector.shape_cast %57 : vector<1x4x8xbf16> to vector<4x8xbf16>
    %cst_63 = arith.constant dense<0.000000e+00> : vector<80x8xf32>
    %59 = tpu.matmul %56, %58, %cst_63 {dimension_numbers = #tpu.dot_dimension_numbers<[1], [0], [0], [1], [0, 0, 1, 1], [], []>} : vector<80x4xbf16>, vector<4x8xbf16>, vector<80x8xf32> -> vector<80x8xf32>
    %60 = arith.addf %54, %59 : vector<80x8xf32>
    %c0_64 = arith.constant 0 : index
    %c0_65 = arith.constant 0 : index
    %c1_66 = arith.constant 1 : index
    %c0_67 = arith.constant 0 : index
    %61 = vector.load %arg3[%c0_64, %c0_65, %c1_66, %c0_67] : memref<1x1x102x4xbf16, #tpu.memory_space<vmem>>, vector<1x1x80x4xbf16>
    %62 = vector.shape_cast %61 : vector<1x1x80x4xbf16> to vector<80x4xbf16>
    %c10_68 = arith.constant 10 : index
    %c0_69 = arith.constant 0 : index
    %c0_70 = arith.constant 0 : index
    %63 = vector.load %arg5[%c10_68, %c0_69, %c0_70] : memref<27x4x8xbf16, #tpu.memory_space<vmem>>, vector<1x4x8xbf16>
    %64 = vector.shape_cast %63 : vector<1x4x8xbf16> to vector<4x8xbf16>
    %cst_71 = arith.constant dense<0.000000e+00> : vector<80x8xf32>
    %65 = tpu.matmul %62, %64, %cst_71 {dimension_numbers = #tpu.dot_dimension_numbers<[1], [0], [0], [1], [0, 0, 1, 1], [], []>} : vector<80x4xbf16>, vector<4x8xbf16>, vector<80x8xf32> -> vector<80x8xf32>
    %66 = arith.addf %60, %65 : vector<80x8xf32>
    %c0_72 = arith.constant 0 : index
    %c0_73 = arith.constant 0 : index
    %c2_74 = arith.constant 2 : index
    %c0_75 = arith.constant 0 : index
    %67 = vector.load %arg3[%c0_72, %c0_73, %c2_74, %c0_75] : memref<1x1x102x4xbf16, #tpu.memory_space<vmem>>, vector<1x1x80x4xbf16>
    %68 = vector.shape_cast %67 : vector<1x1x80x4xbf16> to vector<80x4xbf16>
    %c11_76 = arith.constant 11 : index
    %c0_77 = arith.constant 0 : index
    %c0_78 = arith.constant 0 : index
    %69 = vector.load %arg5[%c11_76, %c0_77, %c0_78] : memref<27x4x8xbf16, #tpu.memory_space<vmem>>, vector<1x4x8xbf16>
    %70 = vector.shape_cast %69 : vector<1x4x8xbf16> to vector<4x8xbf16>
    %cst_79 = arith.constant dense<0.000000e+00> : vector<80x8xf32>
    %71 = tpu.matmul %68, %70, %cst_79 {dimension_numbers = #tpu.dot_dimension_numbers<[1], [0], [0], [1], [0, 0, 1, 1], [], []>} : vector<80x4xbf16>, vector<4x8xbf16>, vector<80x8xf32> -> vector<80x8xf32>
    %72 = arith.addf %66, %71 : vector<80x8xf32>
    %c0_80 = arith.constant 0 : index
    %c0_81 = arith.constant 0 : index
    %c10_82 = arith.constant 10 : index
    %c0_83 = arith.constant 0 : index
    %73 = vector.load %arg3[%c0_80, %c0_81, %c10_82, %c0_83] : memref<1x1x102x4xbf16, #tpu.memory_space<vmem>>, vector<1x1x80x4xbf16>
    %74 = vector.shape_cast %73 : vector<1x1x80x4xbf16> to vector<80x4xbf16>
    %c12_84 = arith.constant 12 : index
    %c0_85 = arith.constant 0 : index
    %c0_86 = arith.constant 0 : index
    %75 = vector.load %arg5[%c12_84, %c0_85, %c0_86] : memref<27x4x8xbf16, #tpu.memory_space<vmem>>, vector<1x4x8xbf16>
    %76 = vector.shape_cast %75 : vector<1x4x8xbf16> to vector<4x8xbf16>
    %cst_87 = arith.constant dense<0.000000e+00> : vector<80x8xf32>
    %77 = tpu.matmul %74, %76, %cst_87 {dimension_numbers = #tpu.dot_dimension_numbers<[1], [0], [0], [1], [0, 0, 1, 1], [], []>} : vector<80x4xbf16>, vector<4x8xbf16>, vector<80x8xf32> -> vector<80x8xf32>
    %78 = arith.addf %72, %77 : vector<80x8xf32>
    %c0_88 = arith.constant 0 : index
    %c0_89 = arith.constant 0 : index
    %c11_90 = arith.constant 11 : index
    %c0_91 = arith.constant 0 : index
    %79 = vector.load %arg3[%c0_88, %c0_89, %c11_90, %c0_91] : memref<1x1x102x4xbf16, #tpu.memory_space<vmem>>, vector<1x1x80x4xbf16>
    %80 = vector.shape_cast %79 : vector<1x1x80x4xbf16> to vector<80x4xbf16>
    %c13 = arith.constant 13 : index
    %c0_92 = arith.constant 0 : index
    %c0_93 = arith.constant 0 : index
    %81 = vector.load %arg5[%c13, %c0_92, %c0_93] : memref<27x4x8xbf16, #tpu.memory_space<vmem>>, vector<1x4x8xbf16>
    %82 = vector.shape_cast %81 : vector<1x4x8xbf16> to vector<4x8xbf16>
    %cst_94 = arith.constant dense<0.000000e+00> : vector<80x8xf32>
    %83 = tpu.matmul %80, %82, %cst_94 {dimension_numbers = #tpu.dot_dimension_numbers<[1], [0], [0], [1], [0, 0, 1, 1], [], []>} : vector<80x4xbf16>, vector<4x8xbf16>, vector<80x8xf32> -> vector<80x8xf32>
    %84 = arith.addf %78, %83 : vector<80x8xf32>
    %c0_95 = arith.constant 0 : index
    %c0_96 = arith.constant 0 : index
    %c12_97 = arith.constant 12 : index
    %c0_98 = arith.constant 0 : index
    %85 = vector.load %arg3[%c0_95, %c0_96, %c12_97, %c0_98] : memref<1x1x102x4xbf16, #tpu.memory_space<vmem>>, vector<1x1x80x4xbf16>
    %86 = vector.shape_cast %85 : vector<1x1x80x4xbf16> to vector<80x4xbf16>
    %c14 = arith.constant 14 : index
    %c0_99 = arith.constant 0 : index
    %c0_100 = arith.constant 0 : index
    %87 = vector.load %arg5[%c14, %c0_99, %c0_100] : memref<27x4x8xbf16, #tpu.memory_space<vmem>>, vector<1x4x8xbf16>
    %88 = vector.shape_cast %87 : vector<1x4x8xbf16> to vector<4x8xbf16>
    %cst_101 = arith.constant dense<0.000000e+00> : vector<80x8xf32>
    %89 = tpu.matmul %86, %88, %cst_101 {dimension_numbers = #tpu.dot_dimension_numbers<[1], [0], [0], [1], [0, 0, 1, 1], [], []>} : vector<80x4xbf16>, vector<4x8xbf16>, vector<80x8xf32> -> vector<80x8xf32>
    %90 = arith.addf %84, %89 : vector<80x8xf32>
    %c0_102 = arith.constant 0 : index
    %c0_103 = arith.constant 0 : index
    %c20_104 = arith.constant 20 : index
    %c0_105 = arith.constant 0 : index
    %91 = vector.load %arg3[%c0_102, %c0_103, %c20_104, %c0_105] : memref<1x1x102x4xbf16, #tpu.memory_space<vmem>>, vector<1x1x80x4xbf16>
    %92 = vector.shape_cast %91 : vector<1x1x80x4xbf16> to vector<80x4xbf16>
    %c15 = arith.constant 15 : index
    %c0_106 = arith.constant 0 : index
    %c0_107 = arith.constant 0 : index
    %93 = vector.load %arg5[%c15, %c0_106, %c0_107] : memref<27x4x8xbf16, #tpu.memory_space<vmem>>, vector<1x4x8xbf16>
    %94 = vector.shape_cast %93 : vector<1x4x8xbf16> to vector<4x8xbf16>
    %cst_108 = arith.constant dense<0.000000e+00> : vector<80x8xf32>
    %95 = tpu.matmul %92, %94, %cst_108 {dimension_numbers = #tpu.dot_dimension_numbers<[1], [0], [0], [1], [0, 0, 1, 1], [], []>} : vector<80x4xbf16>, vector<4x8xbf16>, vector<80x8xf32> -> vector<80x8xf32>
    %96 = arith.addf %90, %95 : vector<80x8xf32>
    %c0_109 = arith.constant 0 : index
    %c0_110 = arith.constant 0 : index
    %c21_111 = arith.constant 21 : index
    %c0_112 = arith.constant 0 : index
    %97 = vector.load %arg3[%c0_109, %c0_110, %c21_111, %c0_112] : memref<1x1x102x4xbf16, #tpu.memory_space<vmem>>, vector<1x1x80x4xbf16>
    %98 = vector.shape_cast %97 : vector<1x1x80x4xbf16> to vector<80x4xbf16>
    %c16 = arith.constant 16 : index
    %c0_113 = arith.constant 0 : index
    %c0_114 = arith.constant 0 : index
    %99 = vector.load %arg5[%c16, %c0_113, %c0_114] : memref<27x4x8xbf16, #tpu.memory_space<vmem>>, vector<1x4x8xbf16>
    %100 = vector.shape_cast %99 : vector<1x4x8xbf16> to vector<4x8xbf16>
    %cst_115 = arith.constant dense<0.000000e+00> : vector<80x8xf32>
    %101 = tpu.matmul %98, %100, %cst_115 {dimension_numbers = #tpu.dot_dimension_numbers<[1], [0], [0], [1], [0, 0, 1, 1], [], []>} : vector<80x4xbf16>, vector<4x8xbf16>, vector<80x8xf32> -> vector<80x8xf32>
    %102 = arith.addf %96, %101 : vector<80x8xf32>
    %c0_116 = arith.constant 0 : index
    %c0_117 = arith.constant 0 : index
    %c22_118 = arith.constant 22 : index
    %c0_119 = arith.constant 0 : index
    %103 = vector.load %arg3[%c0_116, %c0_117, %c22_118, %c0_119] : memref<1x1x102x4xbf16, #tpu.memory_space<vmem>>, vector<1x1x80x4xbf16>
    %104 = vector.shape_cast %103 : vector<1x1x80x4xbf16> to vector<80x4xbf16>
    %c17 = arith.constant 17 : index
    %c0_120 = arith.constant 0 : index
    %c0_121 = arith.constant 0 : index
    %105 = vector.load %arg5[%c17, %c0_120, %c0_121] : memref<27x4x8xbf16, #tpu.memory_space<vmem>>, vector<1x4x8xbf16>
    %106 = vector.shape_cast %105 : vector<1x4x8xbf16> to vector<4x8xbf16>
    %cst_122 = arith.constant dense<0.000000e+00> : vector<80x8xf32>
    %107 = tpu.matmul %104, %106, %cst_122 {dimension_numbers = #tpu.dot_dimension_numbers<[1], [0], [0], [1], [0, 0, 1, 1], [], []>} : vector<80x4xbf16>, vector<4x8xbf16>, vector<80x8xf32> -> vector<80x8xf32>
    %108 = arith.addf %102, %107 : vector<80x8xf32>
    %c0_123 = arith.constant 0 : index
    %c0_124 = arith.constant 0 : index
    %c0_125 = arith.constant 0 : index
    %c0_126 = arith.constant 0 : index
    %109 = vector.load %arg4[%c0_123, %c0_124, %c0_125, %c0_126] : memref<1x1x102x4xbf16, #tpu.memory_space<vmem>>, vector<1x1x80x4xbf16>
    %110 = vector.shape_cast %109 : vector<1x1x80x4xbf16> to vector<80x4xbf16>
    %c18 = arith.constant 18 : index
    %c0_127 = arith.constant 0 : index
    %c0_128 = arith.constant 0 : index
    %111 = vector.load %arg5[%c18, %c0_127, %c0_128] : memref<27x4x8xbf16, #tpu.memory_space<vmem>>, vector<1x4x8xbf16>
    %112 = vector.shape_cast %111 : vector<1x4x8xbf16> to vector<4x8xbf16>
    %cst_129 = arith.constant dense<0.000000e+00> : vector<80x8xf32>
    %113 = tpu.matmul %110, %112, %cst_129 {dimension_numbers = #tpu.dot_dimension_numbers<[1], [0], [0], [1], [0, 0, 1, 1], [], []>} : vector<80x4xbf16>, vector<4x8xbf16>, vector<80x8xf32> -> vector<80x8xf32>
    %114 = arith.addf %108, %113 : vector<80x8xf32>
    %c0_130 = arith.constant 0 : index
    %c0_131 = arith.constant 0 : index
    %c1_132 = arith.constant 1 : index
    %c0_133 = arith.constant 0 : index
    %115 = vector.load %arg4[%c0_130, %c0_131, %c1_132, %c0_133] : memref<1x1x102x4xbf16, #tpu.memory_space<vmem>>, vector<1x1x80x4xbf16>
    %116 = vector.shape_cast %115 : vector<1x1x80x4xbf16> to vector<80x4xbf16>
    %c19 = arith.constant 19 : index
    %c0_134 = arith.constant 0 : index
    %c0_135 = arith.constant 0 : index
    %117 = vector.load %arg5[%c19, %c0_134, %c0_135] : memref<27x4x8xbf16, #tpu.memory_space<vmem>>, vector<1x4x8xbf16>
    %118 = vector.shape_cast %117 : vector<1x4x8xbf16> to vector<4x8xbf16>
    %cst_136 = arith.constant dense<0.000000e+00> : vector<80x8xf32>
    %119 = tpu.matmul %116, %118, %cst_136 {dimension_numbers = #tpu.dot_dimension_numbers<[1], [0], [0], [1], [0, 0, 1, 1], [], []>} : vector<80x4xbf16>, vector<4x8xbf16>, vector<80x8xf32> -> vector<80x8xf32>
    %120 = arith.addf %114, %119 : vector<80x8xf32>
    %c0_137 = arith.constant 0 : index
    %c0_138 = arith.constant 0 : index
    %c2_139 = arith.constant 2 : index
    %c0_140 = arith.constant 0 : index
    %121 = vector.load %arg4[%c0_137, %c0_138, %c2_139, %c0_140] : memref<1x1x102x4xbf16, #tpu.memory_space<vmem>>, vector<1x1x80x4xbf16>
    %122 = vector.shape_cast %121 : vector<1x1x80x4xbf16> to vector<80x4xbf16>
    %c20_141 = arith.constant 20 : index
    %c0_142 = arith.constant 0 : index
    %c0_143 = arith.constant 0 : index
    %123 = vector.load %arg5[%c20_141, %c0_142, %c0_143] : memref<27x4x8xbf16, #tpu.memory_space<vmem>>, vector<1x4x8xbf16>
    %124 = vector.shape_cast %123 : vector<1x4x8xbf16> to vector<4x8xbf16>
    %cst_144 = arith.constant dense<0.000000e+00> : vector<80x8xf32>
    %125 = tpu.matmul %122, %124, %cst_144 {dimension_numbers = #tpu.dot_dimension_numbers<[1], [0], [0], [1], [0, 0, 1, 1], [], []>} : vector<80x4xbf16>, vector<4x8xbf16>, vector<80x8xf32> -> vector<80x8xf32>
    %126 = arith.addf %120, %125 : vector<80x8xf32>
    %c0_145 = arith.constant 0 : index
    %c0_146 = arith.constant 0 : index
    %c10_147 = arith.constant 10 : index
    %c0_148 = arith.constant 0 : index
    %127 = vector.load %arg4[%c0_145, %c0_146, %c10_147, %c0_148] : memref<1x1x102x4xbf16, #tpu.memory_space<vmem>>, vector<1x1x80x4xbf16>
    %128 = vector.shape_cast %127 : vector<1x1x80x4xbf16> to vector<80x4xbf16>
    %c21_149 = arith.constant 21 : index
    %c0_150 = arith.constant 0 : index
    %c0_151 = arith.constant 0 : index
    %129 = vector.load %arg5[%c21_149, %c0_150, %c0_151] : memref<27x4x8xbf16, #tpu.memory_space<vmem>>, vector<1x4x8xbf16>
    %130 = vector.shape_cast %129 : vector<1x4x8xbf16> to vector<4x8xbf16>
    %cst_152 = arith.constant dense<0.000000e+00> : vector<80x8xf32>
    %131 = tpu.matmul %128, %130, %cst_152 {dimension_numbers = #tpu.dot_dimension_numbers<[1], [0], [0], [1], [0, 0, 1, 1], [], []>} : vector<80x4xbf16>, vector<4x8xbf16>, vector<80x8xf32> -> vector<80x8xf32>
    %132 = arith.addf %126, %131 : vector<80x8xf32>
    %c0_153 = arith.constant 0 : index
    %c0_154 = arith.constant 0 : index
    %c11_155 = arith.constant 11 : index
    %c0_156 = arith.constant 0 : index
    %133 = vector.load %arg4[%c0_153, %c0_154, %c11_155, %c0_156] : memref<1x1x102x4xbf16, #tpu.memory_space<vmem>>, vector<1x1x80x4xbf16>
    %134 = vector.shape_cast %133 : vector<1x1x80x4xbf16> to vector<80x4xbf16>
    %c22_157 = arith.constant 22 : index
    %c0_158 = arith.constant 0 : index
    %c0_159 = arith.constant 0 : index
    %135 = vector.load %arg5[%c22_157, %c0_158, %c0_159] : memref<27x4x8xbf16, #tpu.memory_space<vmem>>, vector<1x4x8xbf16>
    %136 = vector.shape_cast %135 : vector<1x4x8xbf16> to vector<4x8xbf16>
    %cst_160 = arith.constant dense<0.000000e+00> : vector<80x8xf32>
    %137 = tpu.matmul %134, %136, %cst_160 {dimension_numbers = #tpu.dot_dimension_numbers<[1], [0], [0], [1], [0, 0, 1, 1], [], []>} : vector<80x4xbf16>, vector<4x8xbf16>, vector<80x8xf32> -> vector<80x8xf32>
    %138 = arith.addf %132, %137 : vector<80x8xf32>
    %c0_161 = arith.constant 0 : index
    %c0_162 = arith.constant 0 : index
    %c12_163 = arith.constant 12 : index
    %c0_164 = arith.constant 0 : index
    %139 = vector.load %arg4[%c0_161, %c0_162, %c12_163, %c0_164] : memref<1x1x102x4xbf16, #tpu.memory_space<vmem>>, vector<1x1x80x4xbf16>
    %140 = vector.shape_cast %139 : vector<1x1x80x4xbf16> to vector<80x4xbf16>
    %c23 = arith.constant 23 : index
    %c0_165 = arith.constant 0 : index
    %c0_166 = arith.constant 0 : index
    %141 = vector.load %arg5[%c23, %c0_165, %c0_166] : memref<27x4x8xbf16, #tpu.memory_space<vmem>>, vector<1x4x8xbf16>
    %142 = vector.shape_cast %141 : vector<1x4x8xbf16> to vector<4x8xbf16>
    %cst_167 = arith.constant dense<0.000000e+00> : vector<80x8xf32>
    %143 = tpu.matmul %140, %142, %cst_167 {dimension_numbers = #tpu.dot_dimension_numbers<[1], [0], [0], [1], [0, 0, 1, 1], [], []>} : vector<80x4xbf16>, vector<4x8xbf16>, vector<80x8xf32> -> vector<80x8xf32>
    %144 = arith.addf %138, %143 : vector<80x8xf32>
    %c0_168 = arith.constant 0 : index
    %c0_169 = arith.constant 0 : index
    %c20_170 = arith.constant 20 : index
    %c0_171 = arith.constant 0 : index
    %145 = vector.load %arg4[%c0_168, %c0_169, %c20_170, %c0_171] : memref<1x1x102x4xbf16, #tpu.memory_space<vmem>>, vector<1x1x80x4xbf16>
    %146 = vector.shape_cast %145 : vector<1x1x80x4xbf16> to vector<80x4xbf16>
    %c24 = arith.constant 24 : index
    %c0_172 = arith.constant 0 : index
    %c0_173 = arith.constant 0 : index
    %147 = vector.load %arg5[%c24, %c0_172, %c0_173] : memref<27x4x8xbf16, #tpu.memory_space<vmem>>, vector<1x4x8xbf16>
    %148 = vector.shape_cast %147 : vector<1x4x8xbf16> to vector<4x8xbf16>
    %cst_174 = arith.constant dense<0.000000e+00> : vector<80x8xf32>
    %149 = tpu.matmul %146, %148, %cst_174 {dimension_numbers = #tpu.dot_dimension_numbers<[1], [0], [0], [1], [0, 0, 1, 1], [], []>} : vector<80x4xbf16>, vector<4x8xbf16>, vector<80x8xf32> -> vector<80x8xf32>
    %150 = arith.addf %144, %149 : vector<80x8xf32>
    %c0_175 = arith.constant 0 : index
    %c0_176 = arith.constant 0 : index
    %c21_177 = arith.constant 21 : index
    %c0_178 = arith.constant 0 : index
    %151 = vector.load %arg4[%c0_175, %c0_176, %c21_177, %c0_178] : memref<1x1x102x4xbf16, #tpu.memory_space<vmem>>, vector<1x1x80x4xbf16>
    %152 = vector.shape_cast %151 : vector<1x1x80x4xbf16> to vector<80x4xbf16>
    %c25 = arith.constant 25 : index
    %c0_179 = arith.constant 0 : index
    %c0_180 = arith.constant 0 : index
    %153 = vector.load %arg5[%c25, %c0_179, %c0_180] : memref<27x4x8xbf16, #tpu.memory_space<vmem>>, vector<1x4x8xbf16>
    %154 = vector.shape_cast %153 : vector<1x4x8xbf16> to vector<4x8xbf16>
    %cst_181 = arith.constant dense<0.000000e+00> : vector<80x8xf32>
    %155 = tpu.matmul %152, %154, %cst_181 {dimension_numbers = #tpu.dot_dimension_numbers<[1], [0], [0], [1], [0, 0, 1, 1], [], []>} : vector<80x4xbf16>, vector<4x8xbf16>, vector<80x8xf32> -> vector<80x8xf32>
    %156 = arith.addf %150, %155 : vector<80x8xf32>
    %c0_182 = arith.constant 0 : index
    %c0_183 = arith.constant 0 : index
    %c22_184 = arith.constant 22 : index
    %c0_185 = arith.constant 0 : index
    %157 = vector.load %arg4[%c0_182, %c0_183, %c22_184, %c0_185] : memref<1x1x102x4xbf16, #tpu.memory_space<vmem>>, vector<1x1x80x4xbf16>
    %158 = vector.shape_cast %157 : vector<1x1x80x4xbf16> to vector<80x4xbf16>
    %c26 = arith.constant 26 : index
    %c0_186 = arith.constant 0 : index
    %c0_187 = arith.constant 0 : index
    %159 = vector.load %arg5[%c26, %c0_186, %c0_187] : memref<27x4x8xbf16, #tpu.memory_space<vmem>>, vector<1x4x8xbf16>
    %160 = vector.shape_cast %159 : vector<1x4x8xbf16> to vector<4x8xbf16>
    %cst_188 = arith.constant dense<0.000000e+00> : vector<80x8xf32>
    %161 = tpu.matmul %158, %160, %cst_188 {dimension_numbers = #tpu.dot_dimension_numbers<[1], [0], [0], [1], [0, 0, 1, 1], [], []>} : vector<80x4xbf16>, vector<4x8xbf16>, vector<80x8xf32> -> vector<80x8xf32>
    %162 = arith.addf %156, %161 : vector<80x8xf32>
    %c0_189 = arith.constant 0 : index
    %c0_190 = arith.constant 0 : index
    %163 = vector.load %arg6[%c0_189, %c0_190] : memref<1x8xf32, #tpu.memory_space<vmem>>, vector<1x8xf32>
    %164 = vector.broadcast %163 : vector<1x8xf32> to vector<80x8xf32>
    %165 = arith.mulf %162, %164 : vector<80x8xf32>
    %c0_191 = arith.constant 0 : index
    %c0_192 = arith.constant 0 : index
    %166 = vector.load %arg7[%c0_191, %c0_192] : memref<1x8xf32, #tpu.memory_space<vmem>>, vector<1x8xf32>
    %167 = vector.broadcast %166 : vector<1x8xf32> to vector<80x8xf32>
    %168 = arith.addf %165, %167 : vector<80x8xf32>
    %cst_193 = arith.constant 0.000000e+00 : f32
    %169 = vector.broadcast %cst_193 : f32 to vector<80x8xf32>
    %170 = arith.maximumf %168, %169 : vector<80x8xf32>
    %171 = arith.truncf %170 : vector<80x8xf32> to vector<80x8xbf16>
    %c0_194 = arith.constant 0 : index
    %c0_195 = arith.constant 0 : index
    %c0_196 = arith.constant 0 : index
    %c0_197 = arith.constant 0 : index
    %172 = vector.load %arg8[%c0_194, %c0_195, %c0_196, %c0_197] : memref<1x1x80x8xbf16, #tpu.memory_space<vmem>>, vector<1x1x80x8xbf16>
    %173 = vector.shape_cast %172 : vector<1x1x80x8xbf16> to vector<80x8xbf16>
    %174 = vector.shape_cast %171 : vector<80x8xbf16> to vector<1x1x80x8xbf16>
    tpu.vector_store %arg8[%c0_194, %c0_195, %c0_196, %c0_197], %174 {strides = array<i32>} : memref<1x1x80x8xbf16, #tpu.memory_space<vmem>>, vector<1x1x80x8xbf16>,
    return
  }
  func.func @transform_0(%arg0: i32, %arg1: i32) -> (i32, i32, i32, i32) {
    %c0_i32 = arith.constant 0 : i32
    %0 = arith.addi %arg1, %c0_i32 : i32
    %c0_i32_0 = arith.constant 0 : i32
    %c0_i32_1 = arith.constant 0 : i32
    %c0_i32_2 = arith.constant 0 : i32
    return %arg0, %0, %c0_i32_0, %c0_i32_1 : i32, i32, i32, i32
  }
  func.func @transform_1(%arg0: i32, %arg1: i32) -> (i32, i32, i32, i32) {
    %c1_i32 = arith.constant 1 : i32
    %0 = arith.addi %arg1, %c1_i32 : i32
    %c0_i32 = arith.constant 0 : i32
    %c0_i32_0 = arith.constant 0 : i32
    %c0_i32_1 = arith.constant 0 : i32
    return %arg0, %0, %c0_i32, %c0_i32_0 : i32, i32, i32, i32
  }
  func.func @transform_2(%arg0: i32, %arg1: i32) -> (i32, i32, i32, i32) {
    %c2_i32 = arith.constant 2 : i32
    %0 = arith.addi %arg1, %c2_i32 : i32
    %c0_i32 = arith.constant 0 : i32
    %c0_i32_0 = arith.constant 0 : i32
    %c0_i32_1 = arith.constant 0 : i32
    return %arg0, %0, %c0_i32, %c0_i32_0 : i32, i32, i32, i32
  }
  func.func @transform_3(%arg0: i32, %arg1: i32) -> (i32, i32, i32) {
    %c0_i32 = arith.constant 0 : i32
    %c0_i32_0 = arith.constant 0 : i32
    %c0_i32_1 = arith.constant 0 : i32
    %c0_i32_2 = arith.constant 0 : i32
    return %c0_i32, %c0_i32_0, %c0_i32_1 : i32, i32, i32
  }
  func.func @transform_4(%arg0: i32, %arg1: i32) -> (i32, i32) {
    %c0_i32 = arith.constant 0 : i32
    %c0_i32_0 = arith.constant 0 : i32
    %c0_i32_1 = arith.constant 0 : i32
    return %c0_i32, %c0_i32_0 : i32, i32
  }
  func.func @transform_5(%arg0: i32, %arg1: i32) -> (i32, i32) {
    %c0_i32 = arith.constant 0 : i32
    %c0_i32_0 = arith.constant 0 : i32
    %c0_i32_1 = arith.constant 0 : i32
    return %c0_i32, %c0_i32_0 : i32, i32
  }
  func.func @transform_6(%arg0: i32, %arg1: i32) -> (i32, i32, i32, i32) {
    %c0_i32 = arith.constant 0 : i32
    %c0_i32_0 = arith.constant 0 : i32
    %c0_i32_1 = arith.constant 0 : i32
    return %arg0, %arg1, %c0_i32, %c0_i32_0 : i32, i32, i32, i32
  }
}

module attributes {stable_mosaic.version = 11 : i64} {
  func.func @_conv3_bn_relu_kernel(%arg0: i32, %arg1: i32, %arg2: memref<1x1x102x8xbf16, #tpu.memory_space<vmem>>, %arg3: memref<1x1x102x8xbf16, #tpu.memory_space<vmem>>, %arg4: memref<1x1x102x8xbf16, #tpu.memory_space<vmem>>, %arg5: memref<27x8x8xbf16, #tpu.memory_space<vmem>>, %arg6: memref<1x8xf32, #tpu.memory_space<vmem>>, %arg7: memref<1x8xf32, #tpu.memory_space<vmem>>, %arg8: memref<1x1x80x8xf32, #tpu.memory_space<vmem>>) attributes {dimension_semantics = [#tpu.dimension_semantics<parallel>, #tpu.dimension_semantics<parallel>], iteration_bounds = array<i64: 2, 8>, scalar_prefetch = 0 : i64, scratch_operands = 0 : i64, tpu.core_type = #tpu.core_type<tc>, window_params = [{transform_indices = @transform_0, window_bounds = array<i64: 1, 1, 102, 8>}, {transform_indices = @transform_1, window_bounds = array<i64: 1, 1, 102, 8>}, {transform_indices = @transform_2, window_bounds = array<i64: 1, 1, 102, 8>}, {pipeline_mode = #tpu.pipeline_mode<synchronous>, transform_indices = @transform_3, window_bounds = array<i64: 27, 8, 8>}, {pipeline_mode = #tpu.pipeline_mode<synchronous>, transform_indices = @transform_4, window_bounds = array<i64: 1, 8>}, {pipeline_mode = #tpu.pipeline_mode<synchronous>, transform_indices = @transform_5, window_bounds = array<i64: 1, 8>}, {transform_indices = @transform_6, window_bounds = array<i64: 1, 1, 80, 8>}]} {
    %cst = arith.constant 0.000000e+00 : f32
    %0 = vector.broadcast %cst : f32 to vector<80x8xf32>
    %c0 = arith.constant 0 : index
    %c0_0 = arith.constant 0 : index
    %c0_1 = arith.constant 0 : index
    %c0_2 = arith.constant 0 : index
    %1 = vector.load %arg2[%c0, %c0_0, %c0_1, %c0_2] : memref<1x1x102x8xbf16, #tpu.memory_space<vmem>>, vector<1x1x80x8xbf16>
    %2 = vector.shape_cast %1 : vector<1x1x80x8xbf16> to vector<80x8xbf16>
    %c0_3 = arith.constant 0 : index
    %c0_4 = arith.constant 0 : index
    %c0_5 = arith.constant 0 : index
    %3 = vector.load %arg5[%c0_3, %c0_4, %c0_5] : memref<27x8x8xbf16, #tpu.memory_space<vmem>>, vector<1x8x8xbf16>
    %4 = vector.shape_cast %3 : vector<1x8x8xbf16> to vector<8x8xbf16>
    %cst_6 = arith.constant dense<0.000000e+00> : vector<80x8xf32>
    %5 = tpu.matmul %2, %4, %cst_6 {dimension_numbers = #tpu.dot_dimension_numbers<[1], [0], [0], [1], [0, 0, 1, 1], [], []>} : vector<80x8xbf16>, vector<8x8xbf16>, vector<80x8xf32> -> vector<80x8xf32>
    %6 = arith.addf %0, %5 : vector<80x8xf32>
    %c0_7 = arith.constant 0 : index
    %c0_8 = arith.constant 0 : index
    %c1 = arith.constant 1 : index
    %c0_9 = arith.constant 0 : index
    %7 = vector.load %arg2[%c0_7, %c0_8, %c1, %c0_9] : memref<1x1x102x8xbf16, #tpu.memory_space<vmem>>, vector<1x1x80x8xbf16>
    %8 = vector.shape_cast %7 : vector<1x1x80x8xbf16> to vector<80x8xbf16>
    %c1_10 = arith.constant 1 : index
    %c0_11 = arith.constant 0 : index
    %c0_12 = arith.constant 0 : index
    %9 = vector.load %arg5[%c1_10, %c0_11, %c0_12] : memref<27x8x8xbf16, #tpu.memory_space<vmem>>, vector<1x8x8xbf16>
    %10 = vector.shape_cast %9 : vector<1x8x8xbf16> to vector<8x8xbf16>
    %cst_13 = arith.constant dense<0.000000e+00> : vector<80x8xf32>
    %11 = tpu.matmul %8, %10, %cst_13 {dimension_numbers = #tpu.dot_dimension_numbers<[1], [0], [0], [1], [0, 0, 1, 1], [], []>} : vector<80x8xbf16>, vector<8x8xbf16>, vector<80x8xf32> -> vector<80x8xf32>
    %12 = arith.addf %6, %11 : vector<80x8xf32>
    %c0_14 = arith.constant 0 : index
    %c0_15 = arith.constant 0 : index
    %c2 = arith.constant 2 : index
    %c0_16 = arith.constant 0 : index
    %13 = vector.load %arg2[%c0_14, %c0_15, %c2, %c0_16] : memref<1x1x102x8xbf16, #tpu.memory_space<vmem>>, vector<1x1x80x8xbf16>
    %14 = vector.shape_cast %13 : vector<1x1x80x8xbf16> to vector<80x8xbf16>
    %c2_17 = arith.constant 2 : index
    %c0_18 = arith.constant 0 : index
    %c0_19 = arith.constant 0 : index
    %15 = vector.load %arg5[%c2_17, %c0_18, %c0_19] : memref<27x8x8xbf16, #tpu.memory_space<vmem>>, vector<1x8x8xbf16>
    %16 = vector.shape_cast %15 : vector<1x8x8xbf16> to vector<8x8xbf16>
    %cst_20 = arith.constant dense<0.000000e+00> : vector<80x8xf32>
    %17 = tpu.matmul %14, %16, %cst_20 {dimension_numbers = #tpu.dot_dimension_numbers<[1], [0], [0], [1], [0, 0, 1, 1], [], []>} : vector<80x8xbf16>, vector<8x8xbf16>, vector<80x8xf32> -> vector<80x8xf32>
    %18 = arith.addf %12, %17 : vector<80x8xf32>
    %c0_21 = arith.constant 0 : index
    %c0_22 = arith.constant 0 : index
    %c10 = arith.constant 10 : index
    %c0_23 = arith.constant 0 : index
    %19 = vector.load %arg2[%c0_21, %c0_22, %c10, %c0_23] : memref<1x1x102x8xbf16, #tpu.memory_space<vmem>>, vector<1x1x80x8xbf16>
    %20 = vector.shape_cast %19 : vector<1x1x80x8xbf16> to vector<80x8xbf16>
    %c3 = arith.constant 3 : index
    %c0_24 = arith.constant 0 : index
    %c0_25 = arith.constant 0 : index
    %21 = vector.load %arg5[%c3, %c0_24, %c0_25] : memref<27x8x8xbf16, #tpu.memory_space<vmem>>, vector<1x8x8xbf16>
    %22 = vector.shape_cast %21 : vector<1x8x8xbf16> to vector<8x8xbf16>
    %cst_26 = arith.constant dense<0.000000e+00> : vector<80x8xf32>
    %23 = tpu.matmul %20, %22, %cst_26 {dimension_numbers = #tpu.dot_dimension_numbers<[1], [0], [0], [1], [0, 0, 1, 1], [], []>} : vector<80x8xbf16>, vector<8x8xbf16>, vector<80x8xf32> -> vector<80x8xf32>
    %24 = arith.addf %18, %23 : vector<80x8xf32>
    %c0_27 = arith.constant 0 : index
    %c0_28 = arith.constant 0 : index
    %c11 = arith.constant 11 : index
    %c0_29 = arith.constant 0 : index
    %25 = vector.load %arg2[%c0_27, %c0_28, %c11, %c0_29] : memref<1x1x102x8xbf16, #tpu.memory_space<vmem>>, vector<1x1x80x8xbf16>
    %26 = vector.shape_cast %25 : vector<1x1x80x8xbf16> to vector<80x8xbf16>
    %c4 = arith.constant 4 : index
    %c0_30 = arith.constant 0 : index
    %c0_31 = arith.constant 0 : index
    %27 = vector.load %arg5[%c4, %c0_30, %c0_31] : memref<27x8x8xbf16, #tpu.memory_space<vmem>>, vector<1x8x8xbf16>
    %28 = vector.shape_cast %27 : vector<1x8x8xbf16> to vector<8x8xbf16>
    %cst_32 = arith.constant dense<0.000000e+00> : vector<80x8xf32>
    %29 = tpu.matmul %26, %28, %cst_32 {dimension_numbers = #tpu.dot_dimension_numbers<[1], [0], [0], [1], [0, 0, 1, 1], [], []>} : vector<80x8xbf16>, vector<8x8xbf16>, vector<80x8xf32> -> vector<80x8xf32>
    %30 = arith.addf %24, %29 : vector<80x8xf32>
    %c0_33 = arith.constant 0 : index
    %c0_34 = arith.constant 0 : index
    %c12 = arith.constant 12 : index
    %c0_35 = arith.constant 0 : index
    %31 = vector.load %arg2[%c0_33, %c0_34, %c12, %c0_35] : memref<1x1x102x8xbf16, #tpu.memory_space<vmem>>, vector<1x1x80x8xbf16>
    %32 = vector.shape_cast %31 : vector<1x1x80x8xbf16> to vector<80x8xbf16>
    %c5 = arith.constant 5 : index
    %c0_36 = arith.constant 0 : index
    %c0_37 = arith.constant 0 : index
    %33 = vector.load %arg5[%c5, %c0_36, %c0_37] : memref<27x8x8xbf16, #tpu.memory_space<vmem>>, vector<1x8x8xbf16>
    %34 = vector.shape_cast %33 : vector<1x8x8xbf16> to vector<8x8xbf16>
    %cst_38 = arith.constant dense<0.000000e+00> : vector<80x8xf32>
    %35 = tpu.matmul %32, %34, %cst_38 {dimension_numbers = #tpu.dot_dimension_numbers<[1], [0], [0], [1], [0, 0, 1, 1], [], []>} : vector<80x8xbf16>, vector<8x8xbf16>, vector<80x8xf32> -> vector<80x8xf32>
    %36 = arith.addf %30, %35 : vector<80x8xf32>
    %c0_39 = arith.constant 0 : index
    %c0_40 = arith.constant 0 : index
    %c20 = arith.constant 20 : index
    %c0_41 = arith.constant 0 : index
    %37 = vector.load %arg2[%c0_39, %c0_40, %c20, %c0_41] : memref<1x1x102x8xbf16, #tpu.memory_space<vmem>>, vector<1x1x80x8xbf16>
    %38 = vector.shape_cast %37 : vector<1x1x80x8xbf16> to vector<80x8xbf16>
    %c6 = arith.constant 6 : index
    %c0_42 = arith.constant 0 : index
    %c0_43 = arith.constant 0 : index
    %39 = vector.load %arg5[%c6, %c0_42, %c0_43] : memref<27x8x8xbf16, #tpu.memory_space<vmem>>, vector<1x8x8xbf16>
    %40 = vector.shape_cast %39 : vector<1x8x8xbf16> to vector<8x8xbf16>
    %cst_44 = arith.constant dense<0.000000e+00> : vector<80x8xf32>
    %41 = tpu.matmul %38, %40, %cst_44 {dimension_numbers = #tpu.dot_dimension_numbers<[1], [0], [0], [1], [0, 0, 1, 1], [], []>} : vector<80x8xbf16>, vector<8x8xbf16>, vector<80x8xf32> -> vector<80x8xf32>
    %42 = arith.addf %36, %41 : vector<80x8xf32>
    %c0_45 = arith.constant 0 : index
    %c0_46 = arith.constant 0 : index
    %c21 = arith.constant 21 : index
    %c0_47 = arith.constant 0 : index
    %43 = vector.load %arg2[%c0_45, %c0_46, %c21, %c0_47] : memref<1x1x102x8xbf16, #tpu.memory_space<vmem>>, vector<1x1x80x8xbf16>
    %44 = vector.shape_cast %43 : vector<1x1x80x8xbf16> to vector<80x8xbf16>
    %c7 = arith.constant 7 : index
    %c0_48 = arith.constant 0 : index
    %c0_49 = arith.constant 0 : index
    %45 = vector.load %arg5[%c7, %c0_48, %c0_49] : memref<27x8x8xbf16, #tpu.memory_space<vmem>>, vector<1x8x8xbf16>
    %46 = vector.shape_cast %45 : vector<1x8x8xbf16> to vector<8x8xbf16>
    %cst_50 = arith.constant dense<0.000000e+00> : vector<80x8xf32>
    %47 = tpu.matmul %44, %46, %cst_50 {dimension_numbers = #tpu.dot_dimension_numbers<[1], [0], [0], [1], [0, 0, 1, 1], [], []>} : vector<80x8xbf16>, vector<8x8xbf16>, vector<80x8xf32> -> vector<80x8xf32>
    %48 = arith.addf %42, %47 : vector<80x8xf32>
    %c0_51 = arith.constant 0 : index
    %c0_52 = arith.constant 0 : index
    %c22 = arith.constant 22 : index
    %c0_53 = arith.constant 0 : index
    %49 = vector.load %arg2[%c0_51, %c0_52, %c22, %c0_53] : memref<1x1x102x8xbf16, #tpu.memory_space<vmem>>, vector<1x1x80x8xbf16>
    %50 = vector.shape_cast %49 : vector<1x1x80x8xbf16> to vector<80x8xbf16>
    %c8 = arith.constant 8 : index
    %c0_54 = arith.constant 0 : index
    %c0_55 = arith.constant 0 : index
    %51 = vector.load %arg5[%c8, %c0_54, %c0_55] : memref<27x8x8xbf16, #tpu.memory_space<vmem>>, vector<1x8x8xbf16>
    %52 = vector.shape_cast %51 : vector<1x8x8xbf16> to vector<8x8xbf16>
    %cst_56 = arith.constant dense<0.000000e+00> : vector<80x8xf32>
    %53 = tpu.matmul %50, %52, %cst_56 {dimension_numbers = #tpu.dot_dimension_numbers<[1], [0], [0], [1], [0, 0, 1, 1], [], []>} : vector<80x8xbf16>, vector<8x8xbf16>, vector<80x8xf32> -> vector<80x8xf32>
    %54 = arith.addf %48, %53 : vector<80x8xf32>
    %c0_57 = arith.constant 0 : index
    %c0_58 = arith.constant 0 : index
    %c0_59 = arith.constant 0 : index
    %c0_60 = arith.constant 0 : index
    %55 = vector.load %arg3[%c0_57, %c0_58, %c0_59, %c0_60] : memref<1x1x102x8xbf16, #tpu.memory_space<vmem>>, vector<1x1x80x8xbf16>
    %56 = vector.shape_cast %55 : vector<1x1x80x8xbf16> to vector<80x8xbf16>
    %c9 = arith.constant 9 : index
    %c0_61 = arith.constant 0 : index
    %c0_62 = arith.constant 0 : index
    %57 = vector.load %arg5[%c9, %c0_61, %c0_62] : memref<27x8x8xbf16, #tpu.memory_space<vmem>>, vector<1x8x8xbf16>
    %58 = vector.shape_cast %57 : vector<1x8x8xbf16> to vector<8x8xbf16>
    %cst_63 = arith.constant dense<0.000000e+00> : vector<80x8xf32>
    %59 = tpu.matmul %56, %58, %cst_63 {dimension_numbers = #tpu.dot_dimension_numbers<[1], [0], [0], [1], [0, 0, 1, 1], [], []>} : vector<80x8xbf16>, vector<8x8xbf16>, vector<80x8xf32> -> vector<80x8xf32>
    %60 = arith.addf %54, %59 : vector<80x8xf32>
    %c0_64 = arith.constant 0 : index
    %c0_65 = arith.constant 0 : index
    %c1_66 = arith.constant 1 : index
    %c0_67 = arith.constant 0 : index
    %61 = vector.load %arg3[%c0_64, %c0_65, %c1_66, %c0_67] : memref<1x1x102x8xbf16, #tpu.memory_space<vmem>>, vector<1x1x80x8xbf16>
    %62 = vector.shape_cast %61 : vector<1x1x80x8xbf16> to vector<80x8xbf16>
    %c10_68 = arith.constant 10 : index
    %c0_69 = arith.constant 0 : index
    %c0_70 = arith.constant 0 : index
    %63 = vector.load %arg5[%c10_68, %c0_69, %c0_70] : memref<27x8x8xbf16, #tpu.memory_space<vmem>>, vector<1x8x8xbf16>
    %64 = vector.shape_cast %63 : vector<1x8x8xbf16> to vector<8x8xbf16>
    %cst_71 = arith.constant dense<0.000000e+00> : vector<80x8xf32>
    %65 = tpu.matmul %62, %64, %cst_71 {dimension_numbers = #tpu.dot_dimension_numbers<[1], [0], [0], [1], [0, 0, 1, 1], [], []>} : vector<80x8xbf16>, vector<8x8xbf16>, vector<80x8xf32> -> vector<80x8xf32>
    %66 = arith.addf %60, %65 : vector<80x8xf32>
    %c0_72 = arith.constant 0 : index
    %c0_73 = arith.constant 0 : index
    %c2_74 = arith.constant 2 : index
    %c0_75 = arith.constant 0 : index
    %67 = vector.load %arg3[%c0_72, %c0_73, %c2_74, %c0_75] : memref<1x1x102x8xbf16, #tpu.memory_space<vmem>>, vector<1x1x80x8xbf16>
    %68 = vector.shape_cast %67 : vector<1x1x80x8xbf16> to vector<80x8xbf16>
    %c11_76 = arith.constant 11 : index
    %c0_77 = arith.constant 0 : index
    %c0_78 = arith.constant 0 : index
    %69 = vector.load %arg5[%c11_76, %c0_77, %c0_78] : memref<27x8x8xbf16, #tpu.memory_space<vmem>>, vector<1x8x8xbf16>
    %70 = vector.shape_cast %69 : vector<1x8x8xbf16> to vector<8x8xbf16>
    %cst_79 = arith.constant dense<0.000000e+00> : vector<80x8xf32>
    %71 = tpu.matmul %68, %70, %cst_79 {dimension_numbers = #tpu.dot_dimension_numbers<[1], [0], [0], [1], [0, 0, 1, 1], [], []>} : vector<80x8xbf16>, vector<8x8xbf16>, vector<80x8xf32> -> vector<80x8xf32>
    %72 = arith.addf %66, %71 : vector<80x8xf32>
    %c0_80 = arith.constant 0 : index
    %c0_81 = arith.constant 0 : index
    %c10_82 = arith.constant 10 : index
    %c0_83 = arith.constant 0 : index
    %73 = vector.load %arg3[%c0_80, %c0_81, %c10_82, %c0_83] : memref<1x1x102x8xbf16, #tpu.memory_space<vmem>>, vector<1x1x80x8xbf16>
    %74 = vector.shape_cast %73 : vector<1x1x80x8xbf16> to vector<80x8xbf16>
    %c12_84 = arith.constant 12 : index
    %c0_85 = arith.constant 0 : index
    %c0_86 = arith.constant 0 : index
    %75 = vector.load %arg5[%c12_84, %c0_85, %c0_86] : memref<27x8x8xbf16, #tpu.memory_space<vmem>>, vector<1x8x8xbf16>
    %76 = vector.shape_cast %75 : vector<1x8x8xbf16> to vector<8x8xbf16>
    %cst_87 = arith.constant dense<0.000000e+00> : vector<80x8xf32>
    %77 = tpu.matmul %74, %76, %cst_87 {dimension_numbers = #tpu.dot_dimension_numbers<[1], [0], [0], [1], [0, 0, 1, 1], [], []>} : vector<80x8xbf16>, vector<8x8xbf16>, vector<80x8xf32> -> vector<80x8xf32>
    %78 = arith.addf %72, %77 : vector<80x8xf32>
    %c0_88 = arith.constant 0 : index
    %c0_89 = arith.constant 0 : index
    %c11_90 = arith.constant 11 : index
    %c0_91 = arith.constant 0 : index
    %79 = vector.load %arg3[%c0_88, %c0_89, %c11_90, %c0_91] : memref<1x1x102x8xbf16, #tpu.memory_space<vmem>>, vector<1x1x80x8xbf16>
    %80 = vector.shape_cast %79 : vector<1x1x80x8xbf16> to vector<80x8xbf16>
    %c13 = arith.constant 13 : index
    %c0_92 = arith.constant 0 : index
    %c0_93 = arith.constant 0 : index
    %81 = vector.load %arg5[%c13, %c0_92, %c0_93] : memref<27x8x8xbf16, #tpu.memory_space<vmem>>, vector<1x8x8xbf16>
    %82 = vector.shape_cast %81 : vector<1x8x8xbf16> to vector<8x8xbf16>
    %cst_94 = arith.constant dense<0.000000e+00> : vector<80x8xf32>
    %83 = tpu.matmul %80, %82, %cst_94 {dimension_numbers = #tpu.dot_dimension_numbers<[1], [0], [0], [1], [0, 0, 1, 1], [], []>} : vector<80x8xbf16>, vector<8x8xbf16>, vector<80x8xf32> -> vector<80x8xf32>
    %84 = arith.addf %78, %83 : vector<80x8xf32>
    %c0_95 = arith.constant 0 : index
    %c0_96 = arith.constant 0 : index
    %c12_97 = arith.constant 12 : index
    %c0_98 = arith.constant 0 : index
    %85 = vector.load %arg3[%c0_95, %c0_96, %c12_97, %c0_98] : memref<1x1x102x8xbf16, #tpu.memory_space<vmem>>, vector<1x1x80x8xbf16>
    %86 = vector.shape_cast %85 : vector<1x1x80x8xbf16> to vector<80x8xbf16>
    %c14 = arith.constant 14 : index
    %c0_99 = arith.constant 0 : index
    %c0_100 = arith.constant 0 : index
    %87 = vector.load %arg5[%c14, %c0_99, %c0_100] : memref<27x8x8xbf16, #tpu.memory_space<vmem>>, vector<1x8x8xbf16>
    %88 = vector.shape_cast %87 : vector<1x8x8xbf16> to vector<8x8xbf16>
    %cst_101 = arith.constant dense<0.000000e+00> : vector<80x8xf32>
    %89 = tpu.matmul %86, %88, %cst_101 {dimension_numbers = #tpu.dot_dimension_numbers<[1], [0], [0], [1], [0, 0, 1, 1], [], []>} : vector<80x8xbf16>, vector<8x8xbf16>, vector<80x8xf32> -> vector<80x8xf32>
    %90 = arith.addf %84, %89 : vector<80x8xf32>
    %c0_102 = arith.constant 0 : index
    %c0_103 = arith.constant 0 : index
    %c20_104 = arith.constant 20 : index
    %c0_105 = arith.constant 0 : index
    %91 = vector.load %arg3[%c0_102, %c0_103, %c20_104, %c0_105] : memref<1x1x102x8xbf16, #tpu.memory_space<vmem>>, vector<1x1x80x8xbf16>
    %92 = vector.shape_cast %91 : vector<1x1x80x8xbf16> to vector<80x8xbf16>
    %c15 = arith.constant 15 : index
    %c0_106 = arith.constant 0 : index
    %c0_107 = arith.constant 0 : index
    %93 = vector.load %arg5[%c15, %c0_106, %c0_107] : memref<27x8x8xbf16, #tpu.memory_space<vmem>>, vector<1x8x8xbf16>
    %94 = vector.shape_cast %93 : vector<1x8x8xbf16> to vector<8x8xbf16>
    %cst_108 = arith.constant dense<0.000000e+00> : vector<80x8xf32>
    %95 = tpu.matmul %92, %94, %cst_108 {dimension_numbers = #tpu.dot_dimension_numbers<[1], [0], [0], [1], [0, 0, 1, 1], [], []>} : vector<80x8xbf16>, vector<8x8xbf16>, vector<80x8xf32> -> vector<80x8xf32>
    %96 = arith.addf %90, %95 : vector<80x8xf32>
    %c0_109 = arith.constant 0 : index
    %c0_110 = arith.constant 0 : index
    %c21_111 = arith.constant 21 : index
    %c0_112 = arith.constant 0 : index
    %97 = vector.load %arg3[%c0_109, %c0_110, %c21_111, %c0_112] : memref<1x1x102x8xbf16, #tpu.memory_space<vmem>>, vector<1x1x80x8xbf16>
    %98 = vector.shape_cast %97 : vector<1x1x80x8xbf16> to vector<80x8xbf16>
    %c16 = arith.constant 16 : index
    %c0_113 = arith.constant 0 : index
    %c0_114 = arith.constant 0 : index
    %99 = vector.load %arg5[%c16, %c0_113, %c0_114] : memref<27x8x8xbf16, #tpu.memory_space<vmem>>, vector<1x8x8xbf16>
    %100 = vector.shape_cast %99 : vector<1x8x8xbf16> to vector<8x8xbf16>
    %cst_115 = arith.constant dense<0.000000e+00> : vector<80x8xf32>
    %101 = tpu.matmul %98, %100, %cst_115 {dimension_numbers = #tpu.dot_dimension_numbers<[1], [0], [0], [1], [0, 0, 1, 1], [], []>} : vector<80x8xbf16>, vector<8x8xbf16>, vector<80x8xf32> -> vector<80x8xf32>
    %102 = arith.addf %96, %101 : vector<80x8xf32>
    %c0_116 = arith.constant 0 : index
    %c0_117 = arith.constant 0 : index
    %c22_118 = arith.constant 22 : index
    %c0_119 = arith.constant 0 : index
    %103 = vector.load %arg3[%c0_116, %c0_117, %c22_118, %c0_119] : memref<1x1x102x8xbf16, #tpu.memory_space<vmem>>, vector<1x1x80x8xbf16>
    %104 = vector.shape_cast %103 : vector<1x1x80x8xbf16> to vector<80x8xbf16>
    %c17 = arith.constant 17 : index
    %c0_120 = arith.constant 0 : index
    %c0_121 = arith.constant 0 : index
    %105 = vector.load %arg5[%c17, %c0_120, %c0_121] : memref<27x8x8xbf16, #tpu.memory_space<vmem>>, vector<1x8x8xbf16>
    %106 = vector.shape_cast %105 : vector<1x8x8xbf16> to vector<8x8xbf16>
    %cst_122 = arith.constant dense<0.000000e+00> : vector<80x8xf32>
    %107 = tpu.matmul %104, %106, %cst_122 {dimension_numbers = #tpu.dot_dimension_numbers<[1], [0], [0], [1], [0, 0, 1, 1], [], []>} : vector<80x8xbf16>, vector<8x8xbf16>, vector<80x8xf32> -> vector<80x8xf32>
    %108 = arith.addf %102, %107 : vector<80x8xf32>
    %c0_123 = arith.constant 0 : index
    %c0_124 = arith.constant 0 : index
    %c0_125 = arith.constant 0 : index
    %c0_126 = arith.constant 0 : index
    %109 = vector.load %arg4[%c0_123, %c0_124, %c0_125, %c0_126] : memref<1x1x102x8xbf16, #tpu.memory_space<vmem>>, vector<1x1x80x8xbf16>
    %110 = vector.shape_cast %109 : vector<1x1x80x8xbf16> to vector<80x8xbf16>
    %c18 = arith.constant 18 : index
    %c0_127 = arith.constant 0 : index
    %c0_128 = arith.constant 0 : index
    %111 = vector.load %arg5[%c18, %c0_127, %c0_128] : memref<27x8x8xbf16, #tpu.memory_space<vmem>>, vector<1x8x8xbf16>
    %112 = vector.shape_cast %111 : vector<1x8x8xbf16> to vector<8x8xbf16>
    %cst_129 = arith.constant dense<0.000000e+00> : vector<80x8xf32>
    %113 = tpu.matmul %110, %112, %cst_129 {dimension_numbers = #tpu.dot_dimension_numbers<[1], [0], [0], [1], [0, 0, 1, 1], [], []>} : vector<80x8xbf16>, vector<8x8xbf16>, vector<80x8xf32> -> vector<80x8xf32>
    %114 = arith.addf %108, %113 : vector<80x8xf32>
    %c0_130 = arith.constant 0 : index
    %c0_131 = arith.constant 0 : index
    %c1_132 = arith.constant 1 : index
    %c0_133 = arith.constant 0 : index
    %115 = vector.load %arg4[%c0_130, %c0_131, %c1_132, %c0_133] : memref<1x1x102x8xbf16, #tpu.memory_space<vmem>>, vector<1x1x80x8xbf16>
    %116 = vector.shape_cast %115 : vector<1x1x80x8xbf16> to vector<80x8xbf16>
    %c19 = arith.constant 19 : index
    %c0_134 = arith.constant 0 : index
    %c0_135 = arith.constant 0 : index
    %117 = vector.load %arg5[%c19, %c0_134, %c0_135] : memref<27x8x8xbf16, #tpu.memory_space<vmem>>, vector<1x8x8xbf16>
    %118 = vector.shape_cast %117 : vector<1x8x8xbf16> to vector<8x8xbf16>
    %cst_136 = arith.constant dense<0.000000e+00> : vector<80x8xf32>
    %119 = tpu.matmul %116, %118, %cst_136 {dimension_numbers = #tpu.dot_dimension_numbers<[1], [0], [0], [1], [0, 0, 1, 1], [], []>} : vector<80x8xbf16>, vector<8x8xbf16>, vector<80x8xf32> -> vector<80x8xf32>
    %120 = arith.addf %114, %119 : vector<80x8xf32>
    %c0_137 = arith.constant 0 : index
    %c0_138 = arith.constant 0 : index
    %c2_139 = arith.constant 2 : index
    %c0_140 = arith.constant 0 : index
    %121 = vector.load %arg4[%c0_137, %c0_138, %c2_139, %c0_140] : memref<1x1x102x8xbf16, #tpu.memory_space<vmem>>, vector<1x1x80x8xbf16>
    %122 = vector.shape_cast %121 : vector<1x1x80x8xbf16> to vector<80x8xbf16>
    %c20_141 = arith.constant 20 : index
    %c0_142 = arith.constant 0 : index
    %c0_143 = arith.constant 0 : index
    %123 = vector.load %arg5[%c20_141, %c0_142, %c0_143] : memref<27x8x8xbf16, #tpu.memory_space<vmem>>, vector<1x8x8xbf16>
    %124 = vector.shape_cast %123 : vector<1x8x8xbf16> to vector<8x8xbf16>
    %cst_144 = arith.constant dense<0.000000e+00> : vector<80x8xf32>
    %125 = tpu.matmul %122, %124, %cst_144 {dimension_numbers = #tpu.dot_dimension_numbers<[1], [0], [0], [1], [0, 0, 1, 1], [], []>} : vector<80x8xbf16>, vector<8x8xbf16>, vector<80x8xf32> -> vector<80x8xf32>
    %126 = arith.addf %120, %125 : vector<80x8xf32>
    %c0_145 = arith.constant 0 : index
    %c0_146 = arith.constant 0 : index
    %c10_147 = arith.constant 10 : index
    %c0_148 = arith.constant 0 : index
    %127 = vector.load %arg4[%c0_145, %c0_146, %c10_147, %c0_148] : memref<1x1x102x8xbf16, #tpu.memory_space<vmem>>, vector<1x1x80x8xbf16>
    %128 = vector.shape_cast %127 : vector<1x1x80x8xbf16> to vector<80x8xbf16>
    %c21_149 = arith.constant 21 : index
    %c0_150 = arith.constant 0 : index
    %c0_151 = arith.constant 0 : index
    %129 = vector.load %arg5[%c21_149, %c0_150, %c0_151] : memref<27x8x8xbf16, #tpu.memory_space<vmem>>, vector<1x8x8xbf16>
    %130 = vector.shape_cast %129 : vector<1x8x8xbf16> to vector<8x8xbf16>
    %cst_152 = arith.constant dense<0.000000e+00> : vector<80x8xf32>
    %131 = tpu.matmul %128, %130, %cst_152 {dimension_numbers = #tpu.dot_dimension_numbers<[1], [0], [0], [1], [0, 0, 1, 1], [], []>} : vector<80x8xbf16>, vector<8x8xbf16>, vector<80x8xf32> -> vector<80x8xf32>
    %132 = arith.addf %126, %131 : vector<80x8xf32>
    %c0_153 = arith.constant 0 : index
    %c0_154 = arith.constant 0 : index
    %c11_155 = arith.constant 11 : index
    %c0_156 = arith.constant 0 : index
    %133 = vector.load %arg4[%c0_153, %c0_154, %c11_155, %c0_156] : memref<1x1x102x8xbf16, #tpu.memory_space<vmem>>, vector<1x1x80x8xbf16>
    %134 = vector.shape_cast %133 : vector<1x1x80x8xbf16> to vector<80x8xbf16>
    %c22_157 = arith.constant 22 : index
    %c0_158 = arith.constant 0 : index
    %c0_159 = arith.constant 0 : index
    %135 = vector.load %arg5[%c22_157, %c0_158, %c0_159] : memref<27x8x8xbf16, #tpu.memory_space<vmem>>, vector<1x8x8xbf16>
    %136 = vector.shape_cast %135 : vector<1x8x8xbf16> to vector<8x8xbf16>
    %cst_160 = arith.constant dense<0.000000e+00> : vector<80x8xf32>
    %137 = tpu.matmul %134, %136, %cst_160 {dimension_numbers = #tpu.dot_dimension_numbers<[1], [0], [0], [1], [0, 0, 1, 1], [], []>} : vector<80x8xbf16>, vector<8x8xbf16>, vector<80x8xf32> -> vector<80x8xf32>
    %138 = arith.addf %132, %137 : vector<80x8xf32>
    %c0_161 = arith.constant 0 : index
    %c0_162 = arith.constant 0 : index
    %c12_163 = arith.constant 12 : index
    %c0_164 = arith.constant 0 : index
    %139 = vector.load %arg4[%c0_161, %c0_162, %c12_163, %c0_164] : memref<1x1x102x8xbf16, #tpu.memory_space<vmem>>, vector<1x1x80x8xbf16>
    %140 = vector.shape_cast %139 : vector<1x1x80x8xbf16> to vector<80x8xbf16>
    %c23 = arith.constant 23 : index
    %c0_165 = arith.constant 0 : index
    %c0_166 = arith.constant 0 : index
    %141 = vector.load %arg5[%c23, %c0_165, %c0_166] : memref<27x8x8xbf16, #tpu.memory_space<vmem>>, vector<1x8x8xbf16>
    %142 = vector.shape_cast %141 : vector<1x8x8xbf16> to vector<8x8xbf16>
    %cst_167 = arith.constant dense<0.000000e+00> : vector<80x8xf32>
    %143 = tpu.matmul %140, %142, %cst_167 {dimension_numbers = #tpu.dot_dimension_numbers<[1], [0], [0], [1], [0, 0, 1, 1], [], []>} : vector<80x8xbf16>, vector<8x8xbf16>, vector<80x8xf32> -> vector<80x8xf32>
    %144 = arith.addf %138, %143 : vector<80x8xf32>
    %c0_168 = arith.constant 0 : index
    %c0_169 = arith.constant 0 : index
    %c20_170 = arith.constant 20 : index
    %c0_171 = arith.constant 0 : index
    %145 = vector.load %arg4[%c0_168, %c0_169, %c20_170, %c0_171] : memref<1x1x102x8xbf16, #tpu.memory_space<vmem>>, vector<1x1x80x8xbf16>
    %146 = vector.shape_cast %145 : vector<1x1x80x8xbf16> to vector<80x8xbf16>
    %c24 = arith.constant 24 : index
    %c0_172 = arith.constant 0 : index
    %c0_173 = arith.constant 0 : index
    %147 = vector.load %arg5[%c24, %c0_172, %c0_173] : memref<27x8x8xbf16, #tpu.memory_space<vmem>>, vector<1x8x8xbf16>
    %148 = vector.shape_cast %147 : vector<1x8x8xbf16> to vector<8x8xbf16>
    %cst_174 = arith.constant dense<0.000000e+00> : vector<80x8xf32>
    %149 = tpu.matmul %146, %148, %cst_174 {dimension_numbers = #tpu.dot_dimension_numbers<[1], [0], [0], [1], [0, 0, 1, 1], [], []>} : vector<80x8xbf16>, vector<8x8xbf16>, vector<80x8xf32> -> vector<80x8xf32>
    %150 = arith.addf %144, %149 : vector<80x8xf32>
    %c0_175 = arith.constant 0 : index
    %c0_176 = arith.constant 0 : index
    %c21_177 = arith.constant 21 : index
    %c0_178 = arith.constant 0 : index
    %151 = vector.load %arg4[%c0_175, %c0_176, %c21_177, %c0_178] : memref<1x1x102x8xbf16, #tpu.memory_space<vmem>>, vector<1x1x80x8xbf16>
    %152 = vector.shape_cast %151 : vector<1x1x80x8xbf16> to vector<80x8xbf16>
    %c25 = arith.constant 25 : index
    %c0_179 = arith.constant 0 : index
    %c0_180 = arith.constant 0 : index
    %153 = vector.load %arg5[%c25, %c0_179, %c0_180] : memref<27x8x8xbf16, #tpu.memory_space<vmem>>, vector<1x8x8xbf16>
    %154 = vector.shape_cast %153 : vector<1x8x8xbf16> to vector<8x8xbf16>
    %cst_181 = arith.constant dense<0.000000e+00> : vector<80x8xf32>
    %155 = tpu.matmul %152, %154, %cst_181 {dimension_numbers = #tpu.dot_dimension_numbers<[1], [0], [0], [1], [0, 0, 1, 1], [], []>} : vector<80x8xbf16>, vector<8x8xbf16>, vector<80x8xf32> -> vector<80x8xf32>
    %156 = arith.addf %150, %155 : vector<80x8xf32>
    %c0_182 = arith.constant 0 : index
    %c0_183 = arith.constant 0 : index
    %c22_184 = arith.constant 22 : index
    %c0_185 = arith.constant 0 : index
    %157 = vector.load %arg4[%c0_182, %c0_183, %c22_184, %c0_185] : memref<1x1x102x8xbf16, #tpu.memory_space<vmem>>, vector<1x1x80x8xbf16>
    %158 = vector.shape_cast %157 : vector<1x1x80x8xbf16> to vector<80x8xbf16>
    %c26 = arith.constant 26 : index
    %c0_186 = arith.constant 0 : index
    %c0_187 = arith.constant 0 : index
    %159 = vector.load %arg5[%c26, %c0_186, %c0_187] : memref<27x8x8xbf16, #tpu.memory_space<vmem>>, vector<1x8x8xbf16>
    %160 = vector.shape_cast %159 : vector<1x8x8xbf16> to vector<8x8xbf16>
    %cst_188 = arith.constant dense<0.000000e+00> : vector<80x8xf32>
    %161 = tpu.matmul %158, %160, %cst_188 {dimension_numbers = #tpu.dot_dimension_numbers<[1], [0], [0], [1], [0, 0, 1, 1], [], []>} : vector<80x8xbf16>, vector<8x8xbf16>, vector<80x8xf32> -> vector<80x8xf32>
    %162 = arith.addf %156, %161 : vector<80x8xf32>
    %c0_189 = arith.constant 0 : index
    %c0_190 = arith.constant 0 : index
    %163 = vector.load %arg6[%c0_189, %c0_190] : memref<1x8xf32, #tpu.memory_space<vmem>>, vector<1x8xf32>
    %164 = vector.broadcast %163 : vector<1x8xf32> to vector<80x8xf32>
    %165 = arith.mulf %162, %164 : vector<80x8xf32>
    %c0_191 = arith.constant 0 : index
    %c0_192 = arith.constant 0 : index
    %166 = vector.load %arg7[%c0_191, %c0_192] : memref<1x8xf32, #tpu.memory_space<vmem>>, vector<1x8xf32>
    %167 = vector.broadcast %166 : vector<1x8xf32> to vector<80x8xf32>
    %168 = arith.addf %165, %167 : vector<80x8xf32>
    %cst_193 = arith.constant 0.000000e+00 : f32
    %169 = vector.broadcast %cst_193 : f32 to vector<80x8xf32>
    %170 = arith.maximumf %168, %169 : vector<80x8xf32>
    %c0_194 = arith.constant 0 : index
    %c0_195 = arith.constant 0 : index
    %c0_196 = arith.constant 0 : index
    %c0_197 = arith.constant 0 : index
    %171 = vector.load %arg8[%c0_194, %c0_195, %c0_196, %c0_197] : memref<1x1x80x8xf32, #tpu.memory_space<vmem>>, vector<1x1x80x8xf32>
    %172 = vector.shape_cast %171 : vector<1x1x80x8xf32> to vector<80x8xf32>
    %173 = vector.shape_cast %170 : vector<80x8xf32> to vector<1x1x80x8xf32>
    tpu.vector_store %arg8[%c0_194, %c0_195, %c0_196, %c0_197], %173 {strides = array<i32>} : memref<1x1x80x8xf32, #tpu.memory_space<vmem>>, vector<1x1x80x8xf32>,
    return
  }
  func.func @transform_0(%arg0: i32, %arg1: i32) -> (i32, i32, i32, i32) {
    %c0_i32 = arith.constant 0 : i32
    %0 = arith.addi %arg1, %c0_i32 : i32
    %c0_i32_0 = arith.constant 0 : i32
    %c0_i32_1 = arith.constant 0 : i32
    %c0_i32_2 = arith.constant 0 : i32
    return %arg0, %0, %c0_i32_0, %c0_i32_1 : i32, i32, i32, i32
  }
  func.func @transform_1(%arg0: i32, %arg1: i32) -> (i32, i32, i32, i32) {
    %c1_i32 = arith.constant 1 : i32
    %0 = arith.addi %arg1, %c1_i32 : i32
    %c0_i32 = arith.constant 0 : i32
    %c0_i32_0 = arith.constant 0 : i32
    %c0_i32_1 = arith.constant 0 : i32
    return %arg0, %0, %c0_i32, %c0_i32_0 : i32, i32, i32, i32
  }
  func.func @transform_2(%arg0: i32, %arg1: i32) -> (i32, i32, i32, i32) {
    %c2_i32 = arith.constant 2 : i32
    %0 = arith.addi %arg1, %c2_i32 : i32
    %c0_i32 = arith.constant 0 : i32
    %c0_i32_0 = arith.constant 0 : i32
    %c0_i32_1 = arith.constant 0 : i32
    return %arg0, %0, %c0_i32, %c0_i32_0 : i32, i32, i32, i32
  }
  func.func @transform_3(%arg0: i32, %arg1: i32) -> (i32, i32, i32) {
    %c0_i32 = arith.constant 0 : i32
    %c0_i32_0 = arith.constant 0 : i32
    %c0_i32_1 = arith.constant 0 : i32
    %c0_i32_2 = arith.constant 0 : i32
    return %c0_i32, %c0_i32_0, %c0_i32_1 : i32, i32, i32
  }
  func.func @transform_4(%arg0: i32, %arg1: i32) -> (i32, i32) {
    %c0_i32 = arith.constant 0 : i32
    %c0_i32_0 = arith.constant 0 : i32
    %c0_i32_1 = arith.constant 0 : i32
    return %c0_i32, %c0_i32_0 : i32, i32
  }
  func.func @transform_5(%arg0: i32, %arg1: i32) -> (i32, i32) {
    %c0_i32 = arith.constant 0 : i32
    %c0_i32_0 = arith.constant 0 : i32
    %c0_i32_1 = arith.constant 0 : i32
    return %c0_i32, %c0_i32_0 : i32, i32
  }
  func.func @transform_6(%arg0: i32, %arg1: i32) -> (i32, i32, i32, i32) {
    %c0_i32 = arith.constant 0 : i32
    %c0_i32_0 = arith.constant 0 : i32
    %c0_i32_1 = arith.constant 0 : i32
    return %arg0, %arg1, %c0_i32, %c0_i32_0 : i32, i32, i32, i32
  }
}

</mosaic_0001>

<bundles_post_ra>
// kernel: center_block_forward.2
= control target key start
LH: loop header
LB: loop body
LE: loop exit
PB: predicated region body
PF: predicated region fallthrough
CT: control target
= control target key end

     0   :  { %s6212_s21 = smov 0   ;;  %s6214_s22 = smov 0   ;;  %s7450_s0 = inlined_call_operand.vmem [shape: bf16[2,10,102,4], index: 0, kind: input, shape index: {}, may-alias: {0,1,2}]   ;;  %s7451_s1 = inlined_call_operand.vmem [shape: bf16[2,10,102,4], index: 1, kind: input, shape index: {}, may-alias: {0,1,2}]   ;;  %s7452_s2 = inlined_call_operand.vmem [shape: bf16[2,10,102,4], index: 2, kind: input, shape index: {}, may-alias: {0,1,2}]   ;;  %s7453_s3 = inlined_call_operand.vmem [shape: bf16[27,4,8], index: 3, kind: input, shape index: {}]   ;;  %s7454_s4 = inlined_call_operand.vmem [shape: f32[1,8], index: 4, kind: input, shape index: {}]   ;;  %s7455_s5 = inlined_call_operand.vmem [shape: f32[1,8], index: 5, kind: input, shape index: {}]   ;;  %s7456_s6 = inlined_call_operand.vmem [shape: bf16[2,8,80,8], index: 6, kind: output, shape index: {}]  }
   0x1   :  { %s6216_s23 = smov 0   ;;  %s6218_s24 = smov 0  }
   0x2   :  { %s6220_s25 = smov 0  }
   0x3 LB: > { %s25_s26 = sadd.s32 1, %s6165_s23  ;;  %s28_s27 = sadd.s32 1, %s6169_s24  ;;  %s6173_s25 = sphi %s6220_s25, %s16_s25   ;;  %s6169_s24 = sphi %s6218_s24, %s7460_s24   ;;  %s6165_s23 = sphi %s6216_s23, %s7459_s23   ;;  %s6161_s22 = sphi %s6214_s22, %s7458_s22   ;;  %s6157_s21 = sphi %s6212_s21, %s7457_s21  }
   0x4   : > { %p26_p0 = scmp.ge.s32.totalorder %s25_s26, 8  ;;  %p4466_p1 = scmp.ge.s32.totalorder %s6173_s25, 1 }
   0x5   : > { %p272_p2 = scmp.lt.s32.totalorder %s6173_s25, 17 }
   0x6   : > { %s7462_s26 = smov (%p26_p0, %s25_s26), 0  ;;  %s7464_s27 = smov (!%p26_p0, %s28_s27), %s6169_s24 }
   0x7   : > { %p273_p3 = pnand %p4466_p1, %p272_p2  ;;  %p30_p4 = scmp.ge.s32.totalorder %s7464_s27, 2 }
   0x8   : > { %v4471_v0 = vld [vmem:[%s7453_s3 + $0x2] sm:$0x3] (!%p273_p3)  ;;  %vm474_vm0 = vcmask (!%p273_p3), 1041408   ;;  %v4589_v1 = vld [vmem:[%s7453_s3 + $0x1a] sm:$0x3] (!%p273_p3)  ;;  %v6175_v2 = vmov (!%p273_p3), 0.0  }
   0x9   : > { %s7466_s27 = smov (%p30_p4, %s7464_s27), 0  ;;  %276 = sbr.rel (%p273_p3) target bundleno = 797 (0x31d), region = 44 }
   0xa   : > { %4897 = vmatprep.subr.bf16.mxu1 (!%p273_p3), %v6175_v2  ;;  %5183 = vmatprep.subr.bf16.mxu0 (!%p273_p3), %v6175_v2  ;;  %v476_v3 = vsel (!%p273_p3), %vm474_vm0, %v4471_v0, 0  ;;  %v6256_v4 = vsel (!%p273_p3), %vm474_vm0, %v4589_v1, 0  ;;  %p330_p5 = scmp.lt.s32.totalorder (!%p273_p3), %s6161_s22, 1  ;;  %p332_p6 = scmp.lt.s32.totalorder (!%p273_p3), %s6157_s21, 9  ;;  %vm6176_vm1 = vmmov (!%p273_p3), 0   ;;  %vm458_vm3 = vcmask (!%p273_p3), 31744  }
   0xb   : > { %4898 = vmatpush3.bf16.msra.mxu1 (!%p273_p3), %v476_v3  ;;  %5184 = vmatpush3.bf16.msra.mxu0 (!%p273_p3), %v6256_v4  ;;  %s339_s8 = sadd.s32 (!%p273_p3), 1, %s6157_s21  ;;  %vm413_vm2 = vsmask.f32 (!%p273_p3), 7424  ;;  %v381_v19 = vld [vmem:[%s7453_s3] sm:$0x3] (!%p273_p3)  ;;  %vm643_vm5 = vcmask (!%p273_p3), 1046528  }
   0xc   : > { %4899 = vmatprep.mubr.msk.bf16.mxu1 (!%p273_p3), %vm6176_vm1, %v6175_v2  ;;  %5185 = vmatprep.mubr.msk.bf16.mxu0 (!%p273_p3), %vm6176_vm1, %v6175_v2  ;;  %p342_p7 = scmp.lt.s32.totalorder (!%p273_p3), %s339_s8, 9  ;;  %v562_v28 = vsel (!%p273_p3), %vm474_vm0, %v381_v19, 0  ;;  %v4596_v35 = vld [vmem:[%s7453_s3 + $0x1c] sm:$0x3] (!%p273_p3)  ;;  %vm915_vm4 = vsmask.f32 (!%p273_p3), 6400 }
   0xd   : > { %5205 = vmatprep.subr.bf16.mxu0 (!%p273_p3), %v6175_v2  ;;  %4919 = vmatprep.subr.bf16.mxu1 (!%p273_p3), %v6175_v2  ;;  %v2410_v45 = vsel (!%p273_p3), %vm474_vm0, %v4596_v35, 0  ;;  %vm1076_vm6 = vcmask (!%p273_p3), 1045504   ;;  %vm1509_vm7 = vcmask (!%p273_p3), 1044480   ;;  %vm1348_vm8 = vsmask.f32 (!%p273_p3), 5376  ;;  %p363_p9 = scmp.lt.s32.totalorder (!%p273_p3), %s6157_s21, 7 }
   0xe   : > { %vm4314_vm9 = vcmask (!%p273_p3), 60416  }
  0x10   : > { %s7468_s22 = smov (!%p330_p5, %s6161_s22), 1  ;;  %s7470_s8 = smov (!%p342_p7, %s339_s8), 9 }
  0x11   : > { %s333_s9 = scalar_select %p332_p6, %s6157_s21, 9 }
  0x12   : > { %s6273_s10 = smul.u32 130, %s7468_s22 }
  0x13   : > { %s6003_s11 = smul.u32 13, %s333_s9 }
  0x14   : > { %s6005_s14 = smul.u32 13, %s7470_s8 }
  0x15   : > { %s336_s12 = sadd.s32 %s6273_s10, %s6003_s11  ;;  %s350_s11 = sadd.s32 2, %s6157_s21 }
  0x16   : > { %s4467_s13 = sshll.u32 %s336_s12, 2  ;;  %s346_s18 = sadd.s32 %s6005_s14, %s6273_s10 }
  0x17   : > { %s6279_s17 = scalar_lea.vmem %s7450_s0, %s4467_s13  ;;  %s4468_s19 = sshll.u32 %s346_s18, 2 }
  0x18   : > { %v371_v5 = vld [vmem:[%s6279_s17] sm:$0xf]  ;;  %v6284_v6 = vld [vmem:[%s6279_s17 + $0x4] sm:$0xf]  ;;  %v6290_v8 = vld [vmem:[%s6279_s17 + $0x8] sm:$0xff]   ;;  %s6295_s29 = scalar_lea.vmem %s7451_s1, %s4468_s19  ;;  %p353_p8 = scmp.lt.s32.totalorder %s350_s11, 9 }
  0x19   : > { %v6287_v7 = vcombine.low %v371_v5, %v6284_v6  ;;  %v6298_v9 = vld [vmem:[%s6279_s17 + $0x10] sm:$0xff]   ;;  %v422_v12 = vshll.u32 %v6290_v8, 16  ;;  %v2064_v13 = vld [vmem:[%s6295_s29 + $0x4] sm:$0xe]  ;;  %v6305_v14 = vld [vmem:[%s6295_s29 + $0x8] sm:$0xf] }
  0x1a   : > { %v6308_v17 = vcombine.low %v2064_v13, %v6305_v14  ;;  %v6311_v18 = vld [vmem:[%s6295_s29 + $0xc] sm:$0xff]   ;;  %v6317_v20 = vld [vmem:[%s6295_s29 + $0x14] sm:$0xff]   ;;  %v426_v21 = vshrl.u32 %v6290_v8, 16  ;;  %v430_v22 = vshll.u32 %v6298_v9, 16  ;;  %v6339_v44 = vld [vmem:[%s6295_s29 + $0x1c] sm:$0xff]   ;;  %v434_v48 = vshrl.u32 %v6298_v9, 16 }
  0x1b   : > { %v415_v10 = vshrl.u32 %v6287_v7, 16  ;;  %v417_v11 = vshll.u32 %v6287_v7, 16  ;;  %v424_v16 = vrot.slane %v422_v12, 1  ;;  %v2232_v26 = vshrl.u32 %v6311_v18, 16  ;;  %v6336_v40 = vld [vmem:[%s6279_s17 + $0x18] sm:$0xff]   ;;  %v6358_v55 = vld [vmem:[%s6279_s17 + $0x20] sm:$0xff]  }
  0x1c   : > { %v2224_v24 = vshrl.u32 %v6308_v17, 16  ;;  %v2227_v25 = vshll.u32 %v6308_v17, 16  ;;  %v2235_v27 = vshll.u32 %v6311_v18, 16  ;;  %v2241_v29 = vshrl.u32 %v6317_v20, 16  ;;  %v637_v59 = vld [vmem:[%s6279_s17] sm:$0xe] }
  0x1d   : > { %v419_v15 = vrot.slane %v417_v11, 1  ;;  %v2234_v33 = vrot.slane %v2232_v26, 1  ;;  %v2244_v36 = vshll.u32 %v6317_v20, 16  ;;  %v428_v38 = vor.u32 %v426_v21, %v424_v16  ;;  %s7472_s11 = smov (!%p353_p8, %s350_s11), 9  ;;  %v2377_v11 = vld [vmem:[%s6295_s29 + $0x4] sm:$0xc] }
  0x1e   : > { %v2226_v31 = vrot.slane %v2224_v24, 1  ;;  %v2229_v32 = vrot.slane %v2227_v25, 2  ;;  %v2237_v34 = vrot.slane %v2235_v27, 2  ;;  %v432_v39 = vrot.slane %v430_v22, 1  ;;  %s6006_s12 = smul.u32 13, %s7472_s11  ;;  %s7474_s21 = smov (!%p363_p9, %s6157_s21), 7 }
  0x1f   : > { %v420_v23 = vor.u32 %v419_v15, %v415_v10  ;;  %v2243_v42 = vrot.slane %v2241_v29, 1  ;;  %v2246_v43 = vrot.slane %v2244_v36, 2  ;;  %v438_v49 = vshll.u32 %v6336_v40, 16  ;;  %v6390_v19 = vld [vmem:[%s6279_s17 + $0x28] ss:$0 sps:$4 sm:$0x11]  }
  0x20   : > { %v2230_v37 = vor.u32 %v2229_v32, %v2226_v31  ;;  %v2238_v41 = vor.u32 %v2237_v34, %v2234_v33  ;;  %v433_v47 = vsel %vm413_vm2, %v428_v38, %v432_v39  ;;  %v2250_v51 = vshrl.u32 %v6339_v44, 16  ;;  %s357_s13 = sadd.s32 %s6006_s12, %s6273_s10  ;;  %v2496_v31 = vld [vmem:[%s6295_s29 + $0xc] sm:$0xf]  ;;  %v6412_v32 = vld [vmem:[%s6295_s29 + $0x10] sm:$0xff]   ;;  %v6422_v34 = vld [vmem:[%s6295_s29 + $0x18] sm:$0xff]  }
  0x21   : > { %v425_v30 = vsel %vm413_vm2, %v420_v23, %v424_v16  ;;  %v2247_v50 = vor.u32 %v2246_v43, %v2243_v42  ;;  %v2253_v52 = vshll.u32 %v6339_v44, 16  ;;  %v436_v53 = vor.u32 %v434_v48, %v432_v39  ;;  %s4469_s10 = sshll.u32 %s357_s13, 2  ;;  %v6432_v42 = vld [vmem:[%s6295_s29 + $0x20] sm:$0xff]  }
  0x22   : > { %4900 = vmatmul.mubr.msk.bf16.vlgmr.msra.gmra.mrb[0].mxu1 %vm458_vm3, %v425_v30  ;;  %v2239_v46 = vsel %vm915_vm4, %v2230_v37, %v2238_v41  ;;  %v440_v54 = vrot.slane %v438_v49, 1  ;;  %v2252_v57 = vrot.slane %v2250_v51, 1  ;;  %v4489_v60 = vcombine.low %v637_v59, %v6284_v6  ;;  %s6417_s19 = scalar_lea.vmem %s7452_s2, %s4469_s10  ;;  %v6456_v51 = vld [vmem:[%s6295_s29 + $0x28] sm:$0xff]  }
  0x23   : > { %4903 = vmatprep.mubr.msk.bf16.mxu1 %vm6176_vm1, %v6175_v2  ;;  %4920 = vmatpush3.bf16.msra.mxu1 %v562_v28  ;;  %v2248_v56 = vsel %vm915_vm4, %v2238_v41, %v2247_v50  ;;  %v2255_v58 = vrot.slane %v2253_v52, 2  ;;  %v645_v61 = vrot.slane %v6290_v8, 1  ;;  %v442_v62 = vshrl.u32 %v6336_v40, 16  ;;  %v2808_v28 = vld [vmem:[%s6295_s29 + $0x8] sm:$0x8] }
  0x24   : > { %4941 = vmatprep.subr.bf16.mxu1 %v6175_v2  ;;  %5186 = vmatmul.mubr.msk.bf16.vlgmr.msra.gmra.mrb[0].mxu0 %vm458_vm3, %v2239_v46  ;;  %v647_v63 = vrot.slane %v6298_v9, 1  ;;  %v441_v0 = vsel %vm413_vm2, %v436_v53, %v440_v54  ;;  %v446_v1 = vshll.u32 %v6358_v55, 16  ;;  %v644_v3 = vrot.slane %v4489_v60, 1  ;;  %v6062_v53 = vld [vmem:[%s6295_s29 + $0x24] sm:$0xff]  }
  0x25   : > { %5206 = vmatpush3.bf16.msra.mxu0 %v2410_v45  ;;  %5189 = vmatprep.mubr.msk.bf16.mxu0 %vm6176_vm1, %v6175_v2  ;;  %v649_v5 = vrot.slane %v6336_v40, 1  ;;  %v6372_v6 = vor.u32 %v2255_v58, %v2252_v57  ;;  %v444_v15 = vor.u32 %v442_v62, %v440_v54  ;;  %v4597_v22 = vcombine.low %v2377_v11, %v6305_v14  ;;  %v4603_v14 = vld [vmem:[%s7453_s3 + $0x1e] sm:$0x3]  ;;  %v4488_v45 = vld [vmem:[%s7453_s3 + $0x4] sm:$0x3] }
  0x26   : > { %5227 = vmatprep.subr.bf16.mxu0 %v6175_v2  ;;  %v6375_v10 = vsel %vm643_vm5, %v645_v61, %v647_v63  ;;  %v6379_v12 = vsel %vm643_vm5, %v644_v3, %v645_v61  ;;  %v448_v16 = vrot.slane %v446_v1, 1  ;;  %v450_v24 = vshrl.u32 %v6358_v55, 16  ;;  %v2495_v59 = vld [vmem:[%s6295_s29 + $0x8] sm:$0xc]  ;;  %v6505_v1 = vld [vmem:[%s6279_s17 + $0xc] sm:$0xff]  }
  0x27   : > { %v6384_v13 = vsel %vm643_vm5, %v647_v63, %v649_v5  ;;  %v2257_v21 = vsel %vm915_vm4, %v2247_v50, %v6372_v6  ;;  %v454_v25 = vshll.u32 %v6390_v19, 16  ;;  %v2383_v26 = vrot.slane %v4597_v22, 2  ;;  %v6509_v3 = vld [vmem:[%s6279_s17 + $0x8] sm:$0xf]  ;;  %v1070_v11 = vld [vmem:[%s6279_s17 + $0x4] sm:$0xc] }
  0x28   : > { %v449_v23 = vsel %vm413_vm2, %v444_v15, %v448_v16  ;;  %v2384_v27 = vrot.slane %v6311_v18, 2  ;;  %v452_v29 = vor.u32 %v450_v24, %v448_v16  ;;  %v2563_v33 = vsel %vm474_vm0, %v4603_v14, 0 }
  0x29   : > { %v456_v30 = vrot.slane %v454_v25, 1  ;;  %v4623_v35 = vcombine.low %v2808_v28, %v2496_v31  ;;  %v2815_v36 = vrot.slane %v6412_v32, 3  ;;  %v2817_v39 = vrot.slane %v6422_v34, 3  ;;  %v4495_v25 = vld [vmem:[%s7453_s3 + $0x6] sm:$0x3] }
  0x2a   : > { %4904 = vmatmul.mubr.msk.bf16.gmra.mrb[4].mxu1 %vm458_vm3, %v433_v47  ;;  %v2385_v18 = vsel %vm1076_vm6, %v2383_v26, %v2384_v27  ;;  %v2386_v41 = vrot.slane %v6317_v20, 2  ;;  %v2819_v47 = vrot.slane %v6432_v42, 3  ;;  %v671_v48 = vsel %vm474_vm0, %v4488_v45, 0  ;;  %v6530_v26 = vld [vmem:[%s6279_s17 + $0x14] sm:$0xff]  }
  0x2b   : > { %4907 = vmatprep.mubr.msk.bf16.mxu1 %vm6176_vm1, %v6175_v2  ;;  %v2814_v37 = vrot.slane %v4623_v35, 3  ;;  %v457_v38 = vsel %vm413_vm2, %v452_v29, %v456_v30  ;;  %v6442_v46 = vsel %vm1509_vm7, %v2815_v36, %v2817_v39  ;;  %v2388_v50 = vrot.slane %v6339_v44, 2 }
  0x2c   : > { %5190 = vmatmul.mubr.msk.bf16.gmra.mrb[4].mxu0 %vm458_vm3, %v2248_v56  ;;  %v2387_v20 = vsel %vm1076_vm6, %v2384_v27, %v2386_v41  ;;  %v6451_v49 = vsel %vm1509_vm7, %v2817_v39, %v2819_v47  ;;  %v2821_v52 = vrot.slane %v6456_v51, 3  ;;  %v6063_v56 = vld [vmem:[%s6295_s29 + $0x2c] ss:$0 sps:$4 sm:$0x33]   ;;  %v4604_v60 = vcombine.low %v2495_v59, %v2496_v31  ;;  %v6548_v31 = vld [vmem:[%s6279_s17 + $0x1c] sm:$0xff]  }
  0x2d   : > { %5193 = vmatprep.mubr.msk.bf16.mxu0 %vm6176_vm1, %v6175_v2  ;;  %v6435_v43 = vsel %vm1509_vm7, %v2814_v37, %v2815_v36  ;;  %v2389_v54 = vsel %vm1076_vm6, %v2386_v41, %v2388_v50  ;;  %v2392_v58 = vrot.slane %v6063_v56, 2  ;;  %v2537_v62 = vrot.slane %v6412_v32, 2  ;;  %v6070_v36 = vld [vmem:[%s6295_s29 + $0x30] ss:$0 sps:$4 sm:$0x33]  }
  0x2e   : > { %v6471_v44 = vsel %vm1509_vm7, %v2819_v47, %v2821_v52  ;;  %v2536_v61 = vrot.slane %v4604_v60, 2  ;;  %v2539_v15 = vrot.slane %v6422_v34, 2  ;;  %v4515_v16 = vcombine.low %v1070_v11, %v6509_v3  ;;  %v4622_v56 = vld [vmem:[%s7453_s3 + $0x22] sm:$0x3]  ;;  %v756_v59 = vld [vmem:[%s6279_s17 + $0x4] sm:$0xe] }
  0x2f   : > { %v1080_v27 = vrot.slane %v6530_v26, 2  ;;  %v2541_v14 = vrot.slane %v6432_v42, 2  ;;  %v824_v28 = vsel %vm474_vm0, %v4495_v25, 0  ;;  %v2655_v37 = vshrl.u32 %v4604_v60, 16 }
  0x30   : > { %v2538_v63 = vsel %vm1076_vm6, %v2536_v61, %v2537_v62  ;;  %v1077_v22 = vrot.slane %v4515_v16, 2  ;;  %v2658_v39 = vshll.u32 %v4604_v60, 16  ;;  %v2663_v41 = vshrl.u32 %v6412_v32, 16 }
  0x31   : > { %v2542_v30 = vsel %vm1076_vm6, %v2539_v15, %v2541_v14  ;;  %v2666_v45 = vshll.u32 %v6412_v32, 16  ;;  %v2657_v47 = vrot.slane %v2655_v37, 2  ;;  %v6598_v60 = vcombine.low %v756_v59, %v6509_v3 }
  0x32   : > { %4908 = vmatmul.mubr.msk.bf16.gmra.mrb[8].mxu1 %vm458_vm3, %v441_v0  ;;  %v800_v25 = vrot.slane %v6530_v26, 1 }
  0x33   : > { %4911 = vmatprep.mubr.msk.bf16.mxu1 %vm6176_vm1, %v6175_v2 }
  0x34   : > { %5194 = vmatmul.mubr.msk.bf16.gmra.mrb[8].mxu0 %vm458_vm3, %v2257_v21  ;;  %v1078_v21 = vrot.slane %v6505_v1, 2 }
  0x35   : > { %5207 = vmatprep.mubr.msk.bf16.mxu0 %vm6176_vm1, %v6175_v2 }
  0x36   : > { %v6524_v24 = vsel %vm1076_vm6, %v1077_v22, %v1078_v21  ;;  %v6539_v29 = vsel %vm1076_vm6, %v1078_v21, %v1080_v27  ;;  %v2690_v22 = vshrl.u32 %v6456_v51, 16 }
  0x3a   : > { %4912 = vmatmul.mubr.msk.bf16.gmra.mrb[12].mxu1 %vm458_vm3, %v449_v23  ;;  %v2540_v23 = vsel %vm1076_vm6, %v2537_v62, %v2539_v15  ;;  %v2684_v62 = vshll.u32 %v6432_v42, 16 }
  0x3b   : > { %4915 = vmatprep.mubr.msk.bf16.mxu1 %vm6176_vm1, %v6175_v2 }
  0x3c   : > { %5208 = vmatmul.mubr.msk.bf16.vlgmr.msra.gmra.mrb[0].mxu0 %vm458_vm3, %v2385_v18  ;;  %v1082_v18 = vrot.slane %v6548_v31, 2  ;;  %v2686_v11 = vrot.slane %v2684_v62, 3 }
  0x3d   : > { %5228 = vmatpush3.bf16.msra.mxu0 %v2563_v33  ;;  %5211 = vmatprep.mubr.msk.bf16.mxu0 %vm6176_vm1, %v6175_v2  ;;  %v2543_v33 = vrot.slane %v6456_v51, 2 }
  0x3e   : > { %5249 = vmatprep.subr.bf16.mxu0 %v6175_v2 }
  0x3f   : > { %v2544_v35 = vsel %vm1076_vm6, %v2541_v14, %v2543_v33  ;;  %v2692_v14 = vrot.slane %v2690_v22, 2 }
  0x42   : > { %4916 = vmatmul.mubr.msk.bf16.gmra.mrb[16].mxu1 %vm458_vm3, %v457_v38  ;;  %v2545_v38 = vrot.slane %v6070_v36, 2 }
  0x43   : > { %4921 = vmatprep.mubr.msk.bf16.mxu1 %vm6176_vm1, %v6175_v2 }
  0x44   : > { %5212 = vmatmul.mubr.msk.bf16.gmra.mrb[4].mxu0 %vm458_vm3, %v2387_v20  ;;  %v2546_v20 = vsel %vm1076_vm6, %v2543_v33, %v2545_v38  ;;  %v802_v38 = vrot.slane %v6548_v31, 1 }
  0x45   : > { %5215 = vmatprep.mubr.msk.bf16.mxu0 %vm6176_vm1, %v6175_v2 }
  0x4a   : > { %4922 = vmatmul.mubr.msk.bf16.vlgmr.msra.gmra.mrb[0].mxu1 %vm458_vm3, %v6287_v7  ;;  %v2390_v7 = vrot.slane %v6062_v53, 2  ;;  %v2668_v53 = vrot.slane %v2666_v45, 3 }
  0x4b   : > { %4925 = vmatprep.mubr.msk.bf16.mxu1 %vm6176_vm1, %v6175_v2  ;;  %4942 = vmatpush3.bf16.msra.mxu1 %v671_v48  ;;  %v2660_v48 = vrot.slane %v2658_v39, 3 }
  0x4c   : > { %4963 = vmatprep.subr.bf16.mxu1 %v6175_v2  ;;  %5216 = vmatmul.mubr.msk.bf16.gmra.mrb[8].mxu0 %vm458_vm3, %v2389_v54  ;;  %v2391_v57 = vsel %vm1076_vm6, %v2388_v50, %v2390_v7  ;;  %v2665_v50 = vrot.slane %v2663_v41, 2 }
  0x4d   : > { %5219 = vmatprep.mubr.msk.bf16.mxu0 %vm6176_vm1, %v6175_v2 }
  0x4e   : > { %v2669_v54 = vor.u32 %v2668_v53, %v2665_v50  ;;  %v6078_v53 = vld [vmem:[%s6279_s17 + $0x2c] ss:$0 sps:$4 sm:$0x11]  }
  0x52   : > { %4926 = vmatmul.mubr.msk.bf16.gmra.mrb[4].mxu1 %vm458_vm3, %v6290_v8  ;;  %v2393_v8 = vsel %vm1076_vm6, %v2390_v7, %v2392_v58  ;;  %v2675_v7 = vshll.u32 %v6422_v34, 16 }
  0x53   : > { %4929 = vmatprep.mubr.msk.bf16.mxu1 %vm6176_vm1, %v6175_v2 }
  0x54   : > { %5220 = vmatmul.mubr.msk.bf16.gmra.mrb[12].mxu0 %vm458_vm3, %v2391_v57  ;;  %v2677_v58 = vrot.slane %v2675_v7, 3  ;;  %v920_v7 = vshll.u32 %v6598_v60, 16 }
  0x55   : > { %5223 = vmatprep.mubr.msk.bf16.mxu0 %vm6176_vm1, %v6175_v2 }
  0x56   : > { %v922_v59 = vrot.slane %v920_v7, 2 }
  0x5a   : > { %4930 = vmatmul.mubr.msk.bf16.gmra.mrb[8].mxu1 %vm458_vm3, %v6298_v9  ;;  %v4615_v9 = vld [vmem:[%s7453_s3 + $0x20] sm:$0x3] }
  0x5b   : > { %4933 = vmatprep.mubr.msk.bf16.mxu1 %vm6176_vm1, %v6175_v2  ;;  %v2723_v0 = vsel %vm474_vm0, %v4615_v9, 0  ;;  %v797_v9 = vrot.slane %v6598_v60, 1 }
  0x5c   : > { %5224 = vmatmul.mubr.msk.bf16.gmra.mrb[16].mxu0 %vm458_vm3, %v2393_v8  ;;  %v2841_v8 = vsel %vm474_vm0, %v4622_v56, 0  ;;  %v925_v56 = vshrl.u32 %v6505_v1, 16 }
  0x5d   : > { %5229 = vmatprep.mubr.msk.bf16.mxu0 %vm6176_vm1, %v6175_v2 }
  0x62   : > { %4934 = vmatmul.mubr.msk.bf16.gmra.mrb[12].mxu1 %vm458_vm3, %v6336_v40  ;;  %v653_v40 = vrot.slane %v6390_v19, 1  ;;  %v2681_v19 = vshrl.u32 %v6432_v42, 16  ;;  %v4507_v42 = vld [vmem:[%s7453_s3 + $0x8] sm:$0x3] }
  0x63   : > { %4937 = vmatprep.mubr.msk.bf16.mxu1 %vm6176_vm1, %v6175_v2  ;;  %v985_v21 = vsel %vm474_vm0, %v4507_v42, 0 }
  0x64   : > { %5230 = vmatmul.mubr.msk.bf16.vlgmr.msra.gmra.mrb[0].mxu0 %vm458_vm3, %v2538_v63  ;;  %v798_v63 = vrot.slane %v6505_v1, 1  ;;  %v2683_v3 = vrot.slane %v2681_v19, 2  ;;  %v4514_v19 = vld [vmem:[%s7453_s3 + $0xa] sm:$0x3] }
  0x65   : > { %5250 = vmatpush3.bf16.msra.mxu0 %v2723_v0  ;;  %5233 = vmatprep.mubr.msk.bf16.mxu0 %vm6176_vm1, %v6175_v2 }
  0x66   : > { %5271 = vmatprep.subr.bf16.mxu0 %v6175_v2  ;;  %v799_v15 = vsel %vm643_vm5, %v797_v9, %v798_v63  ;;  %v2687_v16 = vor.u32 %v2686_v11, %v2683_v3  ;;  %v801_v33 = vsel %vm643_vm5, %v798_v63, %v800_v25  ;;  %v943_v3 = vshrl.u32 %v6548_v31, 16 }
  0x68   : > { %v945_v42 = vrot.slane %v943_v3, 1 }
  0x6a   : > { %4938 = vmatmul.mubr.msk.bf16.gmra.mrb[16].mxu1 %vm458_vm3, %v6358_v55 }
  0x6b   : > { %4943 = vmatprep.mubr.msk.bf16.mxu1 %vm6176_vm1, %v6175_v2 }
  0x6c   : > { %5234 = vmatmul.mubr.msk.bf16.gmra.mrb[4].mxu0 %vm458_vm3, %v2540_v23  ;;  %v2693_v23 = vshll.u32 %v6456_v51, 16 }
  0x6d   : > { %5237 = vmatprep.mubr.msk.bf16.mxu0 %vm6176_vm1, %v6175_v2 }
  0x72   : > { %4944 = vmatmul.mubr.msk.bf16.vlgmr.msra.gmra.mrb[0].mxu1 %vm458_vm3, %v6379_v12  ;;  %v6558_v12 = vsel %vm1076_vm6, %v1080_v27, %v1082_v18 }
  0x73   : > { %4947 = vmatprep.mubr.msk.bf16.mxu1 %vm6176_vm1, %v6175_v2  ;;  %4964 = vmatpush3.bf16.msra.mxu1 %v824_v28  ;;  %v2695_v28 = vrot.slane %v2693_v23, 3 }
  0x74   : > { %4985 = vmatprep.subr.bf16.mxu1 %v6175_v2  ;;  %5238 = vmatmul.mubr.msk.bf16.gmra.mrb[8].mxu0 %vm458_vm3, %v2542_v30  ;;  %v6627_v30 = vld [vmem:[%s6295_s29 + $0x30] ss:$0 sps:$4 sm:$0x77]  }
  0x75   : > { %5241 = vmatprep.mubr.msk.bf16.mxu0 %vm6176_vm1, %v6175_v2  ;;  %v2699_v36 = vshrl.u32 %v6627_v30, 16  ;;  %v2702_v37 = vshll.u32 %v6627_v30, 16 }
  0x77   : > { %v2701_v41 = vrot.slane %v2699_v36, 2  ;;  %v2704_v45 = vrot.slane %v2702_v37, 3 }
  0x7a   : > { %4948 = vmatmul.mubr.msk.bf16.gmra.mrb[4].mxu1 %vm458_vm3, %v6375_v10  ;;  %v651_v10 = vrot.slane %v6358_v55, 1  ;;  %v2672_v55 = vshrl.u32 %v6422_v34, 16 }
  0x7b   : > { %4951 = vmatprep.mubr.msk.bf16.mxu1 %vm6176_vm1, %v6175_v2 }
  0x7c   : > { %5242 = vmatmul.mubr.msk.bf16.gmra.mrb[12].mxu0 %vm458_vm3, %v2544_v35  ;;  %v652_v32 = vsel %vm643_vm5, %v649_v5, %v651_v10  ;;  %v2674_v57 = vrot.slane %v2672_v55, 2  ;;  %v654_v34 = vsel %vm643_vm5, %v651_v10, %v653_v40  ;;  %v2696_v35 = vor.u32 %v2695_v28, %v2692_v14 }
  0x7d   : > { %5245 = vmatprep.mubr.msk.bf16.mxu0 %vm6176_vm1, %v6175_v2  ;;  %v803_v10 = vsel %vm643_vm5, %v800_v25, %v802_v38  ;;  %v917_v55 = vshrl.u32 %v6598_v60, 16  ;;  %v928_v40 = vshll.u32 %v6505_v1, 16  ;;  %v2823_v14 = vrot.slane %v6627_v30, 3 }
  0x7e   : > { %v2678_v61 = vor.u32 %v2677_v58, %v2674_v57  ;;  %v2697_v39 = vsel %vm1348_vm8, %v2687_v16, %v2696_v35 }
  0x7f   : > { %v919_v58 = vrot.slane %v917_v55, 1  ;;  %v6085_v55 = vld [vmem:[%s6417_s19 + $0x20] sm:$0xff]  }
  0x80   : > { %v2679_v0 = vsel %vm1348_vm8, %v2669_v54, %v2678_v61  ;;  %v2688_v27 = vsel %vm1348_vm8, %v2678_v61, %v2687_v16  ;;  %v934_v61 = vshrl.u32 %v6530_v26, 16 }
  0x81   : > { %v923_v1 = vor.u32 %v922_v59, %v919_v58  ;;  %v6789_v58 = vld [vmem:[%s6417_s19 + $0x10] sm:$0xff]  }
  0x82   : > { %4952 = vmatmul.mubr.msk.bf16.gmra.mrb[8].mxu1 %vm458_vm3, %v6384_v13  ;;  %v2661_v13 = vor.u32 %v2660_v48, %v2657_v47  ;;  %v6644_v47 = vld [vmem:[%s6279_s17 + $0x24] sm:$0xff]   ;;  %v936_v9 = vrot.slane %v934_v61, 1 }
  0x83   : > { %4955 = vmatprep.mubr.msk.bf16.mxu1 %vm6176_vm1, %v6175_v2  ;;  %v804_v48 = vrot.slane %v6644_v47, 1  ;;  %v955_v22 = vshll.u32 %v6644_v47, 16 }
  0x84   : > { %5246 = vmatmul.mubr.msk.bf16.gmra.mrb[16].mxu0 %vm458_vm3, %v2546_v20  ;;  %v2670_v5 = vsel %vm1348_vm8, %v2661_v13, %v2669_v54  ;;  %v2705_v20 = vor.u32 %v2704_v45, %v2701_v41  ;;  %v4629_v13 = vld [vmem:[%s7453_s3 + $0x24] sm:$0x3]  ;;  %v806_v54 = vrot.slane %v6078_v53, 1  ;;  %v6081_v45 = vld [vmem:[%s6417_s19 + $0x8] sm:$0xff]  }
  0x85   : > { %5251 = vmatprep.mubr.msk.bf16.mxu0 %vm6176_vm1, %v6175_v2  ;;  %v957_v25 = vrot.slane %v955_v22, 2  ;;  %v6761_v53 = vld [vmem:[%s6417_s19 + $0x4] sm:$0xf] }
  0x86   : > { %v2706_v50 = vsel %vm1348_vm8, %v2696_v35, %v2705_v20  ;;  %v807_v57 = vsel %vm643_vm5, %v804_v48, %v806_v54  ;;  %v2824_v35 = vsel %vm1509_vm7, %v2821_v52, %v2823_v14 }
  0x8a   : > { %4956 = vmatmul.mubr.msk.bf16.gmra.mrb[12].mxu1 %vm458_vm3, %v652_v32  ;;  %v805_v32 = vsel %vm643_vm5, %v802_v38, %v804_v48  ;;  %v4640_v38 = vld [vmem:[%s7453_s3 + $0x26] sm:$0x3]  ;;  %v6083_v48 = vld [vmem:[%s6417_s19 + $0x10] sm:$0xff]  }
  0x8b   : > { %4959 = vmatprep.mubr.msk.bf16.mxu1 %vm6176_vm1, %v6175_v2  ;;  %v3165_v52 = vsel %vm474_vm0, %v4640_v38, 0 }
  0x8c   : > { %5252 = vmatmul.mubr.msk.bf16.vlgmr.msra.gmra.mrb[0].mxu0 %vm458_vm3, %v2670_v5  ;;  %v2979_v5 = vsel %vm474_vm0, %v4629_v13, 0  ;;  %v6773_v13 = vld [vmem:[%s6417_s19 + $0x8] sm:$0xff]  }
  0x8d   : > { %5272 = vmatpush3.bf16.msra.mxu0 %v2841_v8  ;;  %5255 = vmatprep.mubr.msk.bf16.mxu0 %vm6176_vm1, %v6175_v2  ;;  %v927_v8 = vrot.slane %v925_v56, 1  ;;  %v3117_v59 = vshrl.u32 %v6773_v13, 16 }
  0x8e   : > { %5293 = vmatprep.subr.bf16.mxu0 %v6175_v2 }
  0x92   : > { %4960 = vmatmul.mubr.msk.bf16.gmra.mrb[16].mxu1 %vm458_vm3, %v654_v34  ;;  %v930_v34 = vrot.slane %v928_v40, 2  ;;  %v3113_v40 = vshll.u32 %v6773_v13, 16 }
  0x93   : > { %4965 = vmatprep.mubr.msk.bf16.mxu1 %vm6176_vm1, %v6175_v2 }
  0x94   : > { %5256 = vmatmul.mubr.msk.bf16.gmra.mrb[4].mxu0 %vm458_vm3, %v2679_v0  ;;  %v931_v60 = vor.u32 %v930_v34, %v927_v8  ;;  %v1104_v0 = vsel %vm474_vm0, %v4514_v19, 0  ;;  %v3121_v8 = vshll.u32 %v6789_v58, 16  ;;  %v1189_v34 = vld [vmem:[%s6279_s17 + $0x8] sm:$0xc]  ;;  %v6812_v19 = vld [vmem:[%s6279_s17 + $0x10] sm:$0xff]  }
  0x95   : > { %5259 = vmatprep.mubr.msk.bf16.mxu0 %vm6176_vm1, %v6175_v2 }
  0x96   : > { %v932_v62 = vsel %vm915_vm4, %v923_v1, %v931_v60  ;;  %v6803_v1 = vld [vmem:[%s6279_s17 + $0xc] sm:$0xf] }
  0x9a   : > { %4966 = vmatmul.mubr.msk.bf16.vlgmr.msra.gmra.mrb[0].mxu1 %vm458_vm3, %v799_v15 }
  0x9b   : > { %4969 = vmatprep.mubr.msk.bf16.mxu1 %vm6176_vm1, %v6175_v2  ;;  %4986 = vmatpush3.bf16.msra.mxu1 %v985_v21  ;;  %v952_v21 = vshrl.u32 %v6644_v47, 16 }
  0x9c   : > { %5007 = vmatprep.subr.bf16.mxu1 %v6175_v2  ;;  %5260 = vmatmul.mubr.msk.bf16.gmra.mrb[8].mxu0 %vm458_vm3, %v2688_v27  ;;  %v6709_v27 = vld [vmem:[%s6279_s17 + $0x2c] ss:$0 sps:$4 sm:$0x33]  }
  0x9d   : > { %5263 = vmatprep.mubr.msk.bf16.mxu0 %vm6176_vm1, %v6175_v2  ;;  %v954_v23 = vrot.slane %v952_v21, 1 }
  0x9f   : > { %v958_v28 = vor.u32 %v957_v25, %v954_v23  ;;  %v6840_v23 = vld [vmem:[%s6417_s19 + $0x20] sm:$0xff]  }
  0xa2   : > { %4970 = vmatmul.mubr.msk.bf16.gmra.mrb[4].mxu1 %vm458_vm3, %v801_v33  ;;  %v964_v33 = vshll.u32 %v6709_v27, 16 }
  0xa3   : > { %4973 = vmatprep.mubr.msk.bf16.mxu1 %vm6176_vm1, %v6175_v2 }
  0xa4   : > { %5264 = vmatmul.mubr.msk.bf16.gmra.mrb[12].mxu0 %vm458_vm3, %v2697_v39  ;;  %v966_v37 = vrot.slane %v964_v33, 2  ;;  %v6079_v39 = vld [vmem:[%s6417_s19] sm:$0xff]  }
  0xa5   : > { %5267 = vmatprep.mubr.msk.bf16.mxu0 %vm6176_vm1, %v6175_v2  ;;  %v6853_v33 = vld [vmem:[%s6279_s17 + $0x20] sm:$0xff]  }
  0xaa   : > { %4974 = vmatmul.mubr.msk.bf16.gmra.mrb[8].mxu1 %vm458_vm3, %v803_v10  ;;  %v4521_v10 = vld [vmem:[%s7453_s3 + $0xc] sm:$0x3] }
  0xab   : > { %4977 = vmatprep.mubr.msk.bf16.mxu1 %vm6176_vm1, %v6175_v2  ;;  %v1257_v20 = vsel %vm474_vm0, %v4521_v10, 0 }
  0xac   : > { %5268 = vmatmul.mubr.msk.bf16.gmra.mrb[16].mxu0 %vm458_vm3, %v2706_v50  ;;  %v3064_v50 = vld [vmem:[%s6417_s19] sm:$0xf] }
  0xad   : > { %5273 = vmatprep.mubr.msk.bf16.mxu0 %vm6176_vm1, %v6175_v2 }
  0xb2   : > { %4978 = vmatmul.mubr.msk.bf16.gmra.mrb[12].mxu1 %vm458_vm3, %v805_v32  ;;  %v4641_v32 = vcombine.low %v3064_v50, %v6761_v53 }
  0xb3   : > { %4981 = vmatprep.mubr.msk.bf16.mxu1 %vm6176_vm1, %v6175_v2 }
  0xb4   : > { %5274 = vmatmul.mubr.msk.bf16.vlgmr.msra.gmra.mrb[0].mxu0 %vm458_vm3, %v6435_v43  ;;  %v937_v43 = vshll.u32 %v6530_v26, 16  ;;  %v3108_v54 = vshll.u32 %v4641_v32, 16  ;;  %v3106_v7 = vshrl.u32 %v4641_v32, 16  ;;  %v6098_v32 = vld [vmem:[%s6279_s17 + $0x30] ss:$0 sps:$4 sm:$0x33]  }
  0xb5   : > { %5294 = vmatpush3.bf16.msra.mxu0 %v2979_v5  ;;  %5277 = vmatprep.mubr.msk.bf16.mxu0 %vm6176_vm1, %v6175_v2 }
  0xb6   : > { %5315 = vmatprep.subr.bf16.mxu0 %v6175_v2  ;;  %v939_v63 = vrot.slane %v937_v43, 2  ;;  %v3110_v56 = vrot.slane %v3108_v54, 1  ;;  %v6809_v43 = vcombine.low %v1189_v34, %v6803_v1  ;;  %v3259_v34 = vrot.slane %v6789_v58, 1 }
  0xb8   : > { %v940_v26 = vor.u32 %v939_v63, %v936_v9  ;;  %v3123_v9 = vrot.slane %v3121_v8, 1  ;;  %v6817_v63 = vld [vmem:[%s6417_s19 + $0x18] sm:$0xff]  }
  0xb9   : > { %v3133_v14 = vshrl.u32 %v6817_v63, 16 }
  0xba   : > { %4982 = vmatmul.mubr.msk.bf16.gmra.mrb[16].mxu1 %vm458_vm3, %v807_v57  ;;  %v941_v11 = vsel %vm915_vm4, %v931_v60, %v940_v26  ;;  %v3115_v57 = vrot.slane %v3113_v40, 1  ;;  %v1353_v40 = vshll.u32 %v6809_v43, 16 }
  0xbb   : > { %4987 = vmatprep.mubr.msk.bf16.mxu1 %vm6176_vm1, %v6175_v2 }
  0xbc   : > { %5278 = vmatmul.mubr.msk.bf16.gmra.mrb[4].mxu0 %vm458_vm3, %v6442_v46  ;;  %v946_v46 = vshll.u32 %v6548_v31, 16  ;;  %v1086_v31 = vrot.slane %v6709_v27, 2 }
  0xbd   : > { %5281 = vmatprep.mubr.msk.bf16.mxu0 %vm6176_vm1, %v6175_v2 }
  0xbe   : > { %v948_v15 = vrot.slane %v946_v46, 2  ;;  %v3125_v46 = vshrl.u32 %v6789_v58, 16 }
  0xc0   : > { %v949_v16 = vor.u32 %v948_v15, %v945_v42  ;;  %v4533_v42 = vld [vmem:[%s7453_s3 + $0xe] sm:$0x3]  ;;  %v3127_v21 = vor.u32 %v3125_v46, %v3123_v9  ;;  %v3261_v46 = vrot.slane %v6817_v63, 1 }
  0xc2   : > { %4988 = vmatmul.mubr.msk.bf16.vlgmr.msra.gmra.mrb[0].mxu1 %vm458_vm3, %v932_v62  ;;  %v959_v36 = vsel %vm915_vm4, %v949_v16, %v958_v28  ;;  %v3119_v62 = vor.u32 %v3117_v59, %v3115_v57 }
  0xc3   : > { %4991 = vmatprep.mubr.msk.bf16.mxu1 %vm6176_vm1, %v6175_v2  ;;  %5008 = vmatpush3.bf16.msra.mxu1 %v1104_v0  ;;  %v1230_v0 = vrot.slane %v6809_v43, 2 }
  0xc4   : > { %5029 = vmatprep.subr.bf16.mxu1 %v6175_v2  ;;  %5282 = vmatmul.mubr.msk.bf16.gmra.mrb[8].mxu0 %vm458_vm3, %v6451_v49  ;;  %v950_v49 = vsel %vm915_vm4, %v940_v26, %v949_v16  ;;  %v1231_v26 = vrot.slane %v6812_v19, 2  ;;  %v3124_v3 = vsel %vm413_vm2, %v3119_v62, %v3123_v9  ;;  %v6834_v16 = vld [vmem:[%s6279_s17 + $0x18] sm:$0xff]  }
  0xc5   : > { %5285 = vmatprep.mubr.msk.bf16.mxu0 %vm6176_vm1, %v6175_v2  ;;  %v1233_v25 = vrot.slane %v6834_v16, 2  ;;  %v1370_v62 = vshll.u32 %v6834_v16, 16 }
  0xc6   : > { %v1232_v15 = vsel %vm1076_vm6, %v1230_v0, %v1231_v26  ;;  %v4540_v0 = vld [vmem:[%s7453_s3 + $0x10] sm:$0x3] }
  0xca   : > { %4992 = vmatmul.mubr.msk.bf16.gmra.mrb[4].mxu1 %vm458_vm3, %v941_v11  ;;  %v3129_v11 = vshll.u32 %v6817_v63, 16 }
  0xcb   : > { %4995 = vmatprep.mubr.msk.bf16.mxu1 %vm6176_vm1, %v6175_v2 }
  0xcc   : > { %5286 = vmatmul.mubr.msk.bf16.gmra.mrb[12].mxu0 %vm458_vm3, %v6471_v44  ;;  %v961_v44 = vshrl.u32 %v6709_v27, 16  ;;  %v3131_v22 = vrot.slane %v3129_v11, 1  ;;  %v1537_v11 = vsel %vm474_vm0, %v4540_v0, 0 }
  0xcd   : > { %5289 = vmatprep.mubr.msk.bf16.mxu0 %vm6176_vm1, %v6175_v2 }
  0xce   : > { %v963_v30 = vrot.slane %v961_v44, 1  ;;  %v3132_v27 = vsel %vm413_vm2, %v3127_v21, %v3131_v22  ;;  %v1234_v44 = vsel %vm1076_vm6, %v1231_v26, %v1233_v25  ;;  %v1379_v21 = vshll.u32 %v6853_v33, 16 }
  0xd0   : > { %v967_v51 = vor.u32 %v966_v37, %v963_v30  ;;  %v6858_v30 = vld [vmem:[%s6417_s19 + $0x28] ss:$0 sps:$4 sm:$0x11]   ;;  %v1235_v37 = vrot.slane %v6853_v33, 2 }
  0xd2   : > { %4996 = vmatmul.mubr.msk.bf16.gmra.mrb[8].mxu1 %vm458_vm3, %v950_v49  ;;  %v968_v41 = vsel %vm915_vm4, %v958_v28, %v967_v51  ;;  %v1418_v49 = vsel %vm474_vm0, %v4533_v42, 0  ;;  %v3137_v28 = vshll.u32 %v6840_v23, 16  ;;  %v3145_v51 = vshll.u32 %v6858_v30, 16 }
  0xd3   : > { %4999 = vmatprep.mubr.msk.bf16.mxu1 %vm6176_vm1, %v6175_v2 }
  0xd4   : > { %5290 = vmatmul.mubr.msk.bf16.gmra.mrb[16].mxu0 %vm458_vm3, %v2824_v35  ;;  %v3135_v35 = vor.u32 %v3133_v14, %v3131_v22  ;;  %v3147_v10 = vrot.slane %v3145_v51, 1  ;;  %v3262_v22 = vsel %vm643_vm5, %v3259_v34, %v3261_v46  ;;  %v3368_v51 = vld [vmem:[%s6417_s19 + $0x4] sm:$0xe] }
  0xd5   : > { %5295 = vmatprep.mubr.msk.bf16.mxu0 %vm6176_vm1, %v6175_v2 }
  0xda   : > { %5000 = vmatmul.mubr.msk.bf16.gmra.mrb[12].mxu1 %vm458_vm3, %v959_v36  ;;  %v3139_v36 = vrot.slane %v3137_v28, 1 }
  0xdb   : > { %5003 = vmatprep.mubr.msk.bf16.mxu1 %vm6176_vm1, %v6175_v2 }
  0xdc   : > { %5296 = vmatmul.mubr.msk.bf16.vlgmr.msra.gmra.mrb[0].mxu0 %vm458_vm3, %v6079_v39  ;;  %v3140_v38 = vsel %vm413_vm2, %v3135_v35, %v3139_v36  ;;  %v3141_v39 = vshrl.u32 %v6840_v23, 16 }
  0xdd   : > { %5316 = vmatpush3.bf16.msra.mxu0 %v3165_v52  ;;  %5299 = vmatprep.mubr.msk.bf16.mxu0 %vm6176_vm1, %v6175_v2  ;;  %v1236_v52 = vsel %vm1076_vm6, %v1233_v25, %v1235_v37  ;;  %v1381_v25 = vrot.slane %v1379_v21, 3 }
  0xde   : > { %5337 = vmatprep.subr.bf16.mxu0 %v6175_v2 }
  0xe2   : > { %5004 = vmatmul.mubr.msk.bf16.gmra.mrb[16].mxu1 %vm458_vm3, %v968_v41  ;;  %v6870_v41 = vld [vmem:[%s6279_s17 + $0x28] sm:$0xff]  }
  0xe3   : > { %5009 = vmatprep.mubr.msk.bf16.mxu1 %vm6176_vm1, %v6175_v2  ;;  %v1385_v28 = vshrl.u32 %v6870_v41, 16 }
  0xe4   : > { %5300 = vmatmul.mubr.msk.bf16.gmra.mrb[4].mxu0 %vm458_vm3, %v6081_v45  ;;  %v3143_v45 = vor.u32 %v3141_v39, %v3139_v36  ;;  %v3265_v39 = vrot.slane %v6858_v30, 1  ;;  %v6960_v30 = vld [vmem:[%s6417_s19 + $0xc] sm:$0xff]  }
  0xe5   : > { %5303 = vmatprep.mubr.msk.bf16.mxu0 %vm6176_vm1, %v6175_v2  ;;  %v3539_v21 = vshll.u32 %v6960_v30, 16 }
  0xe6   : > { %v3148_v50 = vsel %vm413_vm2, %v3143_v45, %v3147_v10 }
  0xea   : > { %5010 = vmatmul.mubr.msk.bf16.vlgmr.msra.gmra.mrb[0].mxu1 %vm458_vm3, %v6524_v24  ;;  %v6084_v24 = vld [vmem:[%s6417_s19 + $0x18] sm:$0xff]  }
  0xeb   : > { %5013 = vmatprep.mubr.msk.bf16.mxu1 %vm6176_vm1, %v6175_v2  ;;  %5030 = vmatpush3.bf16.msra.mxu1 %v1257_v20  ;;  %v3250_v20 = vld [vmem:[%s6417_s19] sm:$0xe] }
  0xec   : > { %5051 = vmatprep.subr.bf16.mxu1 %v6175_v2  ;;  %5304 = vmatmul.mubr.msk.bf16.gmra.mrb[8].mxu0 %vm458_vm3, %v6083_v48  ;;  %v1237_v48 = vrot.slane %v6870_v41, 2 }
  0xed   : > { %5307 = vmatprep.mubr.msk.bf16.mxu0 %vm6176_vm1, %v6175_v2 }
  0xee   : > { %v1238_v54 = vsel %vm1076_vm6, %v1235_v37, %v1237_v48  ;;  %v1387_v37 = vrot.slane %v1385_v28, 2 }
  0xf2   : > { %5014 = vmatmul.mubr.msk.bf16.gmra.mrb[4].mxu1 %vm458_vm3, %v6539_v29  ;;  %v1084_v29 = vrot.slane %v6644_v47, 2  ;;  %v4652_v47 = vld [vmem:[%s7453_s3 + $0x28] sm:$0x3] }
  0xf3   : > { %5017 = vmatprep.mubr.msk.bf16.mxu1 %vm6176_vm1, %v6175_v2  ;;  %v3283_v60 = vsel %vm474_vm0, %v4652_v47, 0 }
  0xf4   : > { %5308 = vmatmul.mubr.msk.bf16.gmra.mrb[12].mxu0 %vm458_vm3, %v6084_v24  ;;  %v1085_v5 = vsel %vm1076_vm6, %v1082_v18, %v1084_v29  ;;  %v1087_v61 = vsel %vm1076_vm6, %v1084_v29, %v1086_v31  ;;  %v4653_v24 = vcombine.low %v3250_v20, %v6761_v53  ;;  %v3257_v29 = vrot.slane %v6773_v13, 1 }
  0xf5   : > { %5311 = vmatprep.mubr.msk.bf16.mxu0 %vm6176_vm1, %v6175_v2  ;;  %v1350_v53 = vshrl.u32 %v6809_v43, 16  ;;  %v1367_v43 = vshrl.u32 %v6834_v16, 16 }
  0xf6   : > { %v3260_v9 = vsel %vm643_vm5, %v3257_v29, %v3259_v34 }
  0xf7   : > { %v1352_v31 = vrot.slane %v1350_v53, 2  ;;  %v1369_v26 = vrot.slane %v1367_v43, 2 }
  0xfa   : > { %5018 = vmatmul.mubr.msk.bf16.gmra.mrb[8].mxu1 %vm458_vm3, %v6558_v12  ;;  %v3111_v12 = vor.u32 %v3110_v56, %v3106_v7  ;;  %v4659_v7 = vld [vmem:[%s7453_s3 + $0x2a] sm:$0x3]  ;;  %v1239_v56 = vrot.slane %v6098_v32, 2 }
  0xfb   : > { %5021 = vmatprep.mubr.msk.bf16.mxu1 %vm6176_vm1, %v6175_v2 }
  0xfc   : > { %5312 = vmatmul.mubr.msk.bf16.gmra.mrb[16].mxu0 %vm458_vm3, %v6085_v55  ;;  %v3116_v18 = vsel %vm413_vm2, %v3111_v12, %v3115_v57  ;;  %v3256_v55 = vrot.slane %v4653_v24, 1  ;;  %v1361_v12 = vshll.u32 %v6812_v19, 16  ;;  %v3436_v57 = vsel %vm474_vm0, %v4659_v7, 0  ;;  %v4671_v7 = vld [vmem:[%s7453_s3 + $0x2c] sm:$0x3] }
  0xfd   : > { %5317 = vmatprep.mubr.msk.bf16.mxu0 %vm6176_vm1, %v6175_v2  ;;  %v1240_v47 = vsel %vm1076_vm6, %v1237_v48, %v1239_v56 }
  0xfe   : > { %v3258_v13 = vsel %vm643_vm5, %v3256_v55, %v3257_v29  ;;  %v1363_v8 = vrot.slane %v1361_v12, 3  ;;  %v3410_v29 = vrot.slane %v6960_v30, 1  ;;  %v3596_v12 = vsel %vm474_vm0, %v4671_v7, 0 }
 0x102   : > { %5022 = vmatmul.mubr.msk.bf16.gmra.mrb[12].mxu1 %vm458_vm3, %v1085_v5  ;;  %v1358_v5 = vshrl.u32 %v6812_v19, 16 }
 0x103   : > { %5025 = vmatprep.mubr.msk.bf16.mxu1 %vm6176_vm1, %v6175_v2 }
 0x104   : > { %5318 = vmatmul.mubr.msk.bf16.vlgmr.msra.gmra.mrb[0].mxu0 %vm458_vm3, %v3116_v18  ;;  %v1355_v18 = vrot.slane %v1353_v40, 3  ;;  %v1360_v59 = vrot.slane %v1358_v5, 2  ;;  %v6976_v40 = vld [vmem:[%s6417_s19 + $0x14] sm:$0xff]   ;;  %v1503_v5 = vld [vmem:[%s6279_s17 + $0x8] sm:$0x8] }
 0x105   : > { %5338 = vmatpush3.bf16.msra.mxu0 %v3283_v60  ;;  %5321 = vmatprep.mubr.msk.bf16.mxu0 %vm6176_vm1, %v6175_v2 }
 0x106   : > { %5359 = vmatprep.subr.bf16.mxu0 %v6175_v2  ;;  %v1356_v60 = vor.u32 %v1355_v18, %v1352_v31  ;;  %v1511_v18 = vrot.slane %v6812_v19, 3 }
 0x10a   : > { %5026 = vmatmul.mubr.msk.bf16.gmra.mrb[16].mxu1 %vm458_vm3, %v1087_v61  ;;  %v1364_v61 = vor.u32 %v1363_v8, %v1360_v59  ;;  %v4547_v8 = vld [vmem:[%s7453_s3 + $0x12] sm:$0x3] }
 0x10b   : > { %5031 = vmatprep.mubr.msk.bf16.mxu1 %vm6176_vm1, %v6175_v2  ;;  %v1675_v19 = vsel %vm474_vm0, %v4547_v8, 0 }
 0x10c   : > { %5322 = vmatmul.mubr.msk.bf16.gmra.mrb[4].mxu0 %vm458_vm3, %v3124_v3  ;;  %v1365_v58 = vsel %vm1348_vm8, %v1356_v60, %v1364_v61  ;;  %v1372_v3 = vrot.slane %v1370_v62, 3  ;;  %v7010_v62 = vld [vmem:[%s6417_s19 + $0x24] sm:$0xff]  }
 0x10d   : > { %5325 = vmatprep.mubr.msk.bf16.mxu0 %vm6176_vm1, %v6175_v2  ;;  %v3416_v0 = vrot.slane %v7010_v62, 1 }
 0x10e   : > { %v1373_v42 = vor.u32 %v1372_v3, %v1369_v26 }
 0x110   : > { %v1374_v63 = vsel %vm1348_vm8, %v1364_v61, %v1373_v42  ;;  %v1513_v61 = vrot.slane %v6834_v16, 3  ;;  %v1515_v16 = vrot.slane %v6853_v33, 3 }
 0x112   : > { %5032 = vmatmul.mubr.msk.bf16.vlgmr.msra.gmra.mrb[0].mxu1 %vm458_vm3, %v1232_v15  ;;  %v1376_v15 = vshrl.u32 %v6853_v33, 16  ;;  %v1516_v3 = vsel %vm1509_vm7, %v1513_v61, %v1515_v16 }
 0x113   : > { %5035 = vmatprep.mubr.msk.bf16.mxu1 %vm6176_vm1, %v6175_v2  ;;  %5052 = vmatpush3.bf16.msra.mxu1 %v1418_v49 }
 0x114   : > { %5073 = vmatprep.subr.bf16.mxu1 %v6175_v2  ;;  %5326 = vmatmul.mubr.msk.bf16.gmra.mrb[8].mxu0 %vm458_vm3, %v3132_v27  ;;  %v1378_v49 = vrot.slane %v1376_v15, 2  ;;  %v3263_v27 = vrot.slane %v6840_v23, 1  ;;  %v6941_v23 = vld [vmem:[%s6279_s17 + $0x30] ss:$0 sps:$4 sm:$0x77]   ;;  %v3536_v15 = vshrl.u32 %v6960_v30, 16 }
 0x115   : > { %5329 = vmatprep.mubr.msk.bf16.mxu0 %vm6176_vm1, %v6175_v2  ;;  %v1394_v10 = vshrl.u32 %v6941_v23, 16  ;;  %v1397_v20 = vshll.u32 %v6941_v23, 16 }
 0x116   : > { %v1382_v14 = vor.u32 %v1381_v25, %v1378_v49  ;;  %v3264_v35 = vsel %vm643_vm5, %v3261_v46, %v3263_v27  ;;  %v3266_v48 = vsel %vm643_vm5, %v3263_v27, %v3265_v39  ;;  %v3538_v25 = vrot.slane %v3536_v15, 1 }
 0x117   : > { %v1396_v32 = vrot.slane %v1394_v10, 2  ;;  %v3541_v27 = vrot.slane %v3539_v21, 2 }
 0x118   : > { %v1383_v36 = vsel %vm1348_vm8, %v1373_v42, %v1382_v14 }
 0x11a   : > { %5036 = vmatmul.mubr.msk.bf16.gmra.mrb[4].mxu1 %vm458_vm3, %v1234_v44  ;;  %v1388_v44 = vshll.u32 %v6870_v41, 16 }
 0x11b   : > { %5039 = vmatprep.mubr.msk.bf16.mxu1 %vm6176_vm1, %v6175_v2 }
 0x11c   : > { %5330 = vmatmul.mubr.msk.bf16.gmra.mrb[12].mxu0 %vm458_vm3, %v3140_v38  ;;  %v1390_v38 = vrot.slane %v1388_v44, 3  ;;  %v3542_v44 = vor.u32 %v3541_v27, %v3538_v25  ;;  %v3690_v25 = vrot.slane %v6976_v40, 2 }
 0x11d   : > { %5333 = vmatprep.mubr.msk.bf16.mxu0 %vm6176_vm1, %v6175_v2 }
 0x11e   : > { %v1391_v45 = vor.u32 %v1390_v38, %v1387_v37  ;;  %v1519_v37 = vrot.slane %v6941_v23, 3 }
 0x120   : > { %v1392_v24 = vsel %vm1348_vm8, %v1382_v14, %v1391_v45 }
 0x122   : > { %5040 = vmatmul.mubr.msk.bf16.gmra.mrb[8].mxu1 %vm458_vm3, %v1236_v52  ;;  %v6948_v52 = vld [vmem:[%s6417_s19 + $0x8] sm:$0xf] }
 0x123   : > { %5043 = vmatprep.mubr.msk.bf16.mxu1 %vm6176_vm1, %v6175_v2 }
 0x124   : > { %5334 = vmatmul.mubr.msk.bf16.gmra.mrb[16].mxu0 %vm458_vm3, %v3148_v50  ;;  %v6957_v50 = vcombine.low %v3368_v51, %v6948_v52 }
 0x125   : > { %5339 = vmatprep.mubr.msk.bf16.mxu0 %vm6176_vm1, %v6175_v2 }
 0x126   : > { %v3409_v55 = vrot.slane %v6957_v50, 1  ;;  %v3531_v42 = vshll.u32 %v6957_v50, 16 }
 0x128   : > { %v3411_v53 = vsel %vm643_vm5, %v3409_v55, %v3410_v29  ;;  %v3533_v49 = vrot.slane %v3531_v42, 2  ;;  %v6107_v55 = vld [vmem:[%s6295_s29] sm:$0xff]   ;;  %v7118_v42 = vld [vmem:[%s6295_s29 + $0x8] sm:$0xff]  }
 0x12a   : > { %5044 = vmatmul.mubr.msk.bf16.gmra.mrb[12].mxu1 %vm458_vm3, %v1238_v54  ;;  %v1399_v54 = vrot.slane %v1397_v20, 3 }
 0x12b   : > { %5047 = vmatprep.mubr.msk.bf16.mxu1 %vm6176_vm1, %v6175_v2 }
 0x12c   : > { %5340 = vmatmul.mubr.msk.bf16.vlgmr.msra.gmra.mrb[0].mxu0 %vm458_vm3, %v3258_v13  ;;  %v1400_v56 = vor.u32 %v1399_v54, %v1396_v32  ;;  %v4558_v54 = vld [vmem:[%s7453_s3 + $0x14] sm:$0x3] }
 0x12d   : > { %5360 = vmatpush3.bf16.msra.mxu0 %v3436_v57  ;;  %5343 = vmatprep.mubr.msk.bf16.mxu0 %vm6176_vm1, %v6175_v2  ;;  %v4541_v57 = vcombine.low %v1503_v5, %v6803_v1  ;;  %v6993_v1 = vld [vmem:[%s6417_s19 + $0x1c] sm:$0xff]   ;;  %v1861_v7 = vsel %vm474_vm0, %v4558_v54, 0 }
 0x12e   : > { %5381 = vmatprep.subr.bf16.mxu0 %v6175_v2  ;;  %v1401_v13 = vsel %vm1348_vm8, %v1391_v45, %v1400_v56  ;;  %v3414_v60 = vrot.slane %v6993_v1, 1  ;;  %v3557_v23 = vshll.u32 %v6993_v1, 16  ;;  %v3563_v56 = vshrl.u32 %v7010_v62, 16 }
 0x12f   : > { %v1510_v31 = vrot.slane %v4541_v57, 3  ;;  %v7078_v57 = vld [vmem:[%s6417_s19 + $0x2c] ss:$0 sps:$4 sm:$0x33]  }
 0x130   : > { %v3417_v26 = vsel %vm643_vm5, %v3414_v60, %v3416_v0  ;;  %v3559_v32 = vrot.slane %v3557_v23, 2  ;;  %v3694_v23 = vrot.slane %v7010_v62, 2 }
 0x131   : > { %v1512_v34 = vsel %vm1509_vm7, %v1510_v31, %v1511_v18 }
 0x132   : > { %5048 = vmatmul.mubr.msk.bf16.gmra.mrb[16].mxu1 %vm458_vm3, %v1240_v47  ;;  %v3412_v47 = vrot.slane %v6976_v40, 1 }
 0x133   : > { %5053 = vmatprep.mubr.msk.bf16.mxu1 %vm6176_vm1, %v6175_v2 }
 0x134   : > { %5344 = vmatmul.mubr.msk.bf16.gmra.mrb[4].mxu0 %vm458_vm3, %v3260_v9  ;;  %v3413_v59 = vsel %vm643_vm5, %v3410_v29, %v3412_v47  ;;  %v3415_v43 = vsel %vm643_vm5, %v3412_v47, %v3414_v60  ;;  %v1514_v9 = vsel %vm1509_vm7, %v1511_v18, %v1513_v61  ;;  %v6108_v47 = vld [vmem:[%s6295_s29 + $0x8] sm:$0xff]   ;;  %v3572_v18 = vshrl.u32 %v7078_v57, 16 }
 0x135   : > { %5347 = vmatprep.mubr.msk.bf16.mxu0 %vm6176_vm1, %v6175_v2 }
 0x13a   : > { %5054 = vmatmul.mubr.msk.bf16.vlgmr.msra.gmra.mrb[0].mxu1 %vm458_vm3, %v1365_v58  ;;  %v6106_v58 = vld [vmem:[%s6417_s19 + $0x2c] ss:$0 sps:$4 sm:$0x11]  }
 0x13b   : > { %5057 = vmatprep.mubr.msk.bf16.mxu1 %vm6176_vm1, %v6175_v2  ;;  %5074 = vmatpush3.bf16.msra.mxu1 %v1537_v11  ;;  %v3418_v46 = vrot.slane %v6106_v58, 1  ;;  %v3528_v11 = vshrl.u32 %v6957_v50, 16  ;;  %v7103_v58 = vld [vmem:[%s6295_s29 + $0x4] sm:$0xf] }
 0x13c   : > { %5095 = vmatprep.subr.bf16.mxu1 %v6175_v2  ;;  %5348 = vmatmul.mubr.msk.bf16.gmra.mrb[8].mxu0 %vm458_vm3, %v3262_v22  ;;  %v1517_v22 = vrot.slane %v6870_v41, 3  ;;  %v4678_v41 = vld [vmem:[%s7453_s3 + $0x2e] sm:$0x3] }
 0x13d   : > { %5351 = vmatprep.mubr.msk.bf16.mxu0 %vm6176_vm1, %v6175_v2  ;;  %v3419_v33 = vsel %vm643_vm5, %v3416_v0, %v3418_v46  ;;  %v3714_v45 = vsel %vm474_vm0, %v4678_v41, 0 }
 0x13e   : > { %v1518_v14 = vsel %vm1509_vm7, %v1515_v16, %v1517_v22  ;;  %v1520_v10 = vsel %vm1509_vm7, %v1517_v22, %v1519_v37  ;;  %v1760_v16 = vld [vmem:[%s6295_s29] sm:$0xf]  ;;  %v3692_v37 = vrot.slane %v6993_v1, 2 }
 0x13f   : > { %v6113_v22 = vld [vmem:[%s6295_s29 + $0x20] sm:$0xff]  }
 0x140   : > { %v3695_v54 = vsel %vm1076_vm6, %v3692_v37, %v3694_v23 }
 0x142   : > { %5058 = vmatmul.mubr.msk.bf16.gmra.mrb[4].mxu1 %vm458_vm3, %v1374_v63  ;;  %v3530_v63 = vrot.slane %v3528_v11, 1  ;;  %v3688_v11 = vrot.slane %v6960_v30, 2 }
 0x143   : > { %5061 = vmatprep.mubr.msk.bf16.mxu1 %vm6176_vm1, %v6175_v2 }
 0x144   : > { %5352 = vmatmul.mubr.msk.bf16.gmra.mrb[12].mxu0 %vm458_vm3, %v3264_v35  ;;  %v3534_v28 = vor.u32 %v3533_v49, %v3530_v63  ;;  %v3545_v35 = vshrl.u32 %v6976_v40, 16  ;;  %v1809_v49 = vshll.u32 %v7118_v42, 16 }
 0x145   : > { %5355 = vmatprep.mubr.msk.bf16.mxu0 %vm6176_vm1, %v6175_v2 }
 0x146   : > { %v3543_v38 = vsel %vm915_vm4, %v3534_v28, %v3542_v44  ;;  %v3547_v39 = vrot.slane %v3545_v35, 1  ;;  %v7133_v28 = vld [vmem:[%s6295_s29 + $0x10] sm:$0xff]  }
 0x147   : > { %v4570_v35 = vld [vmem:[%s7453_s3 + $0x16] sm:$0x3]  ;;  %v1817_v41 = vshll.u32 %v7133_v28, 16 }
 0x14a   : > { %5062 = vmatmul.mubr.msk.bf16.gmra.mrb[8].mxu1 %vm458_vm3, %v1383_v36  ;;  %v3548_v36 = vshll.u32 %v6976_v40, 16 }
 0x14b   : > { %5065 = vmatprep.mubr.msk.bf16.mxu1 %vm6176_vm1, %v6175_v2 }
 0x14c   : > { %5356 = vmatmul.mubr.msk.bf16.gmra.mrb[16].mxu0 %vm458_vm3, %v3266_v48  ;;  %v3550_v51 = vrot.slane %v3548_v36, 2  ;;  %v3554_v48 = vshrl.u32 %v6993_v1, 16  ;;  %v1813_v36 = vshrl.u32 %v7118_v42, 16 }
 0x14d   : > { %5361 = vmatprep.mubr.msk.bf16.mxu0 %vm6176_vm1, %v6175_v2 }
 0x14e   : > { %v3551_v20 = vor.u32 %v3550_v51, %v3547_v39  ;;  %v1819_v51 = vrot.slane %v1817_v41, 1 }
 0x150   : > { %v3552_v50 = vsel %vm915_vm4, %v3542_v44, %v3551_v20  ;;  %v3691_v44 = vsel %vm1076_vm6, %v3688_v11, %v3690_v25 }
 0x152   : > { %5066 = vmatmul.mubr.msk.bf16.gmra.mrb[12].mxu1 %vm458_vm3, %v1392_v24  ;;  %v3556_v24 = vrot.slane %v3554_v48, 1 }
 0x153   : > { %5069 = vmatprep.mubr.msk.bf16.mxu1 %vm6176_vm1, %v6175_v2 }
 0x154   : > { %5362 = vmatmul.mubr.msk.bf16.vlgmr.msra.gmra.mrb[0].mxu0 %vm458_vm3, %v3411_v53  ;;  %v3560_v29 = vor.u32 %v3559_v32, %v3556_v24  ;;  %v3566_v53 = vshll.u32 %v7010_v62, 16  ;;  %v7166_v32 = vld [vmem:[%s6295_s29 + $0x20] sm:$0xff]  }
 0x155   : > { %5382 = vmatpush3.bf16.msra.mxu0 %v3596_v12  ;;  %5365 = vmatprep.mubr.msk.bf16.mxu0 %vm6176_vm1, %v6175_v2  ;;  %v3565_v12 = vrot.slane %v3563_v56, 1  ;;  %v1833_v62 = vshll.u32 %v7166_v32, 16  ;;  %v3799_v56 = vld [vmem:[%s6417_s19 + $0x8] sm:$0xc] }
 0x156   : > { %5403 = vmatprep.subr.bf16.mxu0 %v6175_v2  ;;  %v3561_v5 = vsel %vm915_vm4, %v3551_v20, %v3560_v29  ;;  %v1821_v20 = vshrl.u32 %v7133_v28, 16 }
 0x15a   : > { %5070 = vmatmul.mubr.msk.bf16.gmra.mrb[16].mxu1 %vm458_vm3, %v1401_v13  ;;  %v3568_v13 = vrot.slane %v3566_v53, 2  ;;  %v7178_v53 = vld [vmem:[%s6417_s19 + $0xc] sm:$0xf] }
 0x15b   : > { %5075 = vmatprep.mubr.msk.bf16.mxu1 %vm6176_vm1, %v6175_v2 }
 0x15c   : > { %5366 = vmatmul.mubr.msk.bf16.gmra.mrb[4].mxu0 %vm458_vm3, %v3413_v59  ;;  %v3569_v31 = vor.u32 %v3568_v13, %v3565_v12  ;;  %v3575_v59 = vshll.u32 %v7078_v57, 16  ;;  %v1835_v12 = vrot.slane %v1833_v62, 1  ;;  %v7184_v13 = vld [vmem:[%s6295_s29 + $0x28] ss:$0 sps:$4 sm:$0x11]  }
 0x15d   : > { %5369 = vmatprep.mubr.msk.bf16.mxu0 %vm6176_vm1, %v6175_v2 }
 0x15e   : > { %v3570_v8 = vsel %vm915_vm4, %v3560_v29, %v3569_v31  ;;  %v3577_v60 = vrot.slane %v3575_v59, 2  ;;  %v1837_v59 = vshrl.u32 %v7166_v32, 16 }
 0x162   : > { %5076 = vmatmul.mubr.msk.bf16.vlgmr.msra.gmra.mrb[0].mxu1 %vm458_vm3, %v1512_v34  ;;  %v3574_v34 = vrot.slane %v3572_v18, 1 }
 0x163   : > { %5079 = vmatprep.mubr.msk.bf16.mxu1 %vm6176_vm1, %v6175_v2  ;;  %5096 = vmatpush3.bf16.msra.mxu1 %v1675_v19  ;;  %v6109_v19 = vld [vmem:[%s6295_s29 + $0x10] sm:$0xff]  }
 0x164   : > { %5117 = vmatprep.subr.bf16.mxu1 %v6175_v2  ;;  %5370 = vmatmul.mubr.msk.bf16.gmra.mrb[8].mxu0 %vm458_vm3, %v3415_v43  ;;  %v3578_v61 = vor.u32 %v3577_v60, %v3574_v34  ;;  %v3681_v43 = vld [vmem:[%s6417_s19 + $0x4] sm:$0xc] }
 0x165   : > { %5373 = vmatprep.mubr.msk.bf16.mxu0 %vm6176_vm1, %v6175_v2  ;;  %v4679_v0 = vcombine.low %v3681_v43, %v6948_v52  ;;  %v4685_v52 = vld [vmem:[%s7453_s3 + $0x30] sm:$0x3] }
 0x167   : > { %v3687_v46 = vrot.slane %v4679_v0, 2  ;;  %v7209_v0 = vld [vmem:[%s6417_s19 + $0x18] sm:$0xff]  }
 0x169   : > { %v3689_v21 = vsel %vm1076_vm6, %v3687_v46, %v3688_v11  ;;  %v3843_v11 = vrot.slane %v7209_v0, 2 }
 0x16a   : > { %5080 = vmatmul.mubr.msk.bf16.gmra.mrb[4].mxu1 %vm458_vm3, %v1514_v9  ;;  %v3579_v9 = vsel %vm915_vm4, %v3569_v31, %v3578_v61  ;;  %v7188_v31 = vcombine.low %v3799_v56, %v7178_v53  ;;  %v1839_v61 = vor.u32 %v1837_v59, %v1835_v12  ;;  %v6130_v59 = vld [vmem:[%s6295_s29 + $0xc] sm:$0xff]  }
 0x16b   : > { %5083 = vmatprep.mubr.msk.bf16.mxu1 %vm6176_vm1, %v6175_v2 }
 0x16c   : > { %5374 = vmatmul.mubr.msk.bf16.gmra.mrb[12].mxu0 %vm458_vm3, %v3417_v26  ;;  %v6111_v26 = vld [vmem:[%s6295_s29 + $0x18] sm:$0xff]   ;;  %v3840_v34 = vrot.slane %v7188_v31, 2  ;;  %v3959_v41 = vshrl.u32 %v7188_v31, 16 }
 0x16d   : > { %5377 = vmatprep.mubr.msk.bf16.mxu0 %vm6176_vm1, %v6175_v2 }
 0x172   : > { %5084 = vmatmul.mubr.msk.bf16.gmra.mrb[8].mxu1 %vm458_vm3, %v1516_v3  ;;  %v4559_v3 = vcombine.low %v1760_v16, %v7103_v58  ;;  %v1946_v16 = vld [vmem:[%s6295_s29] sm:$0xe] }
 0x173   : > { %5087 = vmatprep.mubr.msk.bf16.mxu1 %vm6176_vm1, %v6175_v2  ;;  %v4571_v46 = vcombine.low %v1946_v16, %v7103_v58  ;;  %v7226_v58 = vld [vmem:[%s6417_s19 + $0x20] sm:$0xff]  }
 0x174   : > { %5378 = vmatmul.mubr.msk.bf16.gmra.mrb[16].mxu0 %vm458_vm3, %v3419_v33  ;;  %v1804_v15 = vshll.u32 %v4559_v3, 16  ;;  %v3867_v33 = vsel %vm474_vm0, %v4685_v52, 0  ;;  %v1802_v30 = vshrl.u32 %v4559_v3, 16 }
 0x175   : > { %5383 = vmatprep.mubr.msk.bf16.mxu0 %vm6176_vm1, %v6175_v2  ;;  %v1952_v52 = vrot.slane %v4571_v46, 1 }
 0x176   : > { %v1806_v63 = vrot.slane %v1804_v15, 1  ;;  %v1953_v15 = vrot.slane %v7118_v42, 1 }
 0x178   : > { %v1807_v27 = vor.u32 %v1806_v63, %v1802_v30  ;;  %v3845_v30 = vrot.slane %v7226_v58, 2  ;;  %v1955_v63 = vrot.slane %v7133_v28, 1 }
 0x17a   : > { %5088 = vmatmul.mubr.msk.bf16.gmra.mrb[12].mxu1 %vm458_vm3, %v1518_v14  ;;  %v1811_v14 = vrot.slane %v1809_v49, 1  ;;  %v3846_v49 = vsel %vm1076_vm6, %v3843_v11, %v3845_v30 }
 0x17b   : > { %5091 = vmatprep.mubr.msk.bf16.mxu1 %vm6176_vm1, %v6175_v2 }
 0x17c   : > { %5384 = vmatmul.mubr.msk.bf16.vlgmr.msra.gmra.mrb[0].mxu0 %vm458_vm3, %v3543_v38  ;;  %v1812_v40 = vsel %vm413_vm2, %v1807_v27, %v1811_v14  ;;  %v1979_v38 = vsel %vm474_vm0, %v4570_v35, 0  ;;  %v1815_v39 = vor.u32 %v1813_v36, %v1811_v14  ;;  %v1956_v27 = vsel %vm643_vm5, %v1953_v15, %v1955_v63 }
 0x17d   : > { %5404 = vmatpush3.bf16.msra.mxu0 %v3714_v45  ;;  %5387 = vmatprep.mubr.msk.bf16.mxu0 %vm6176_vm1, %v6175_v2  ;;  %v7151_v45 = vld [vmem:[%s6295_s29 + $0x18] sm:$0xff]  }
 0x17e   : > { %5425 = vmatprep.subr.bf16.mxu0 %v6175_v2  ;;  %v1820_v1 = vsel %vm413_vm2, %v1815_v39, %v1819_v51  ;;  %v1825_v48 = vshll.u32 %v7151_v45, 16  ;;  %v1829_v29 = vshrl.u32 %v7151_v45, 16  ;;  %v1957_v28 = vrot.slane %v7151_v45, 1 }
 0x17f   : > { %v1959_v45 = vrot.slane %v7166_v32, 1  ;;  %v4704_v32 = vld [vmem:[%s7453_s3 + $0x34] sm:$0x3] }
 0x180   : > { %v1827_v24 = vrot.slane %v1825_v48, 1 }
 0x182   : > { %5092 = vmatmul.mubr.msk.bf16.gmra.mrb[16].mxu1 %vm458_vm3, %v1520_v10  ;;  %v3693_v10 = vsel %vm1076_vm6, %v3690_v25, %v3692_v37  ;;  %v7243_v25 = vld [vmem:[%s6417_s19 + $0x28] sm:$0xff]   ;;  %v3962_v37 = vshll.u32 %v7188_v31, 16  ;;  %v3985_v31 = vshrl.u32 %v7226_v58, 16 }
 0x183   : > { %5097 = vmatprep.mubr.msk.bf16.mxu1 %vm6176_vm1, %v6175_v2  ;;  %v3847_v14 = vrot.slane %v7243_v25, 2  ;;  %v3997_v16 = vshll.u32 %v7243_v25, 16 }
 0x184   : > { %5388 = vmatmul.mubr.msk.bf16.gmra.mrb[4].mxu0 %vm458_vm3, %v3552_v50  ;;  %v1823_v50 = vor.u32 %v1821_v20, %v1819_v51 }
 0x185   : > { %5391 = vmatprep.mubr.msk.bf16.mxu0 %vm6176_vm1, %v6175_v2  ;;  %v3848_v35 = vsel %vm1076_vm6, %v3845_v30, %v3847_v14 }
 0x18a   : > { %5098 = vmatmul.mubr.msk.bf16.vlgmr.msra.gmra.mrb[0].mxu1 %vm458_vm3, %v6107_v55  ;;  %v1828_v55 = vsel %vm413_vm2, %v1823_v50, %v1827_v24 }
 0x18b   : > { %5101 = vmatprep.mubr.msk.bf16.mxu1 %vm6176_vm1, %v6175_v2  ;;  %5118 = vmatpush3.bf16.msra.mxu1 %v1861_v7  ;;  %v3696_v7 = vrot.slane %v7078_v57, 2  ;;  %v7191_v57 = vld [vmem:[%s6417_s19 + $0x10] sm:$0xff]  }
 0x18c   : > { %5139 = vmatprep.subr.bf16.mxu1 %v6175_v2  ;;  %5392 = vmatmul.mubr.msk.bf16.gmra.mrb[8].mxu0 %vm458_vm3, %v3561_v5  ;;  %v1831_v5 = vor.u32 %v1829_v29, %v1827_v24  ;;  %v3841_v60 = vrot.slane %v7191_v57, 2  ;;  %v3970_v39 = vshll.u32 %v7191_v57, 16  ;;  %v1961_v29 = vrot.slane %v7184_v13, 1 }
 0x18d   : > { %5395 = vmatprep.mubr.msk.bf16.mxu0 %vm6176_vm1, %v6175_v2 }
 0x18e   : > { %v1836_v18 = vsel %vm413_vm2, %v1831_v5, %v1835_v12  ;;  %v3972_v48 = vrot.slane %v3970_v39, 3  ;;  %v4145_v5 = vsel %vm474_vm0, %v4704_v32, 0  ;;  %v1962_v12 = vsel %vm643_vm5, %v1959_v45, %v1961_v29 }
 0x18f   : > { %v4119_v39 = vrot.slane %v7191_v57, 3 }
 0x192   : > { %5102 = vmatmul.mubr.msk.bf16.gmra.mrb[4].mxu1 %vm458_vm3, %v6108_v47  ;;  %v3697_v47 = vsel %vm1076_vm6, %v3694_v23, %v3696_v7  ;;  %v1960_v23 = vsel %vm643_vm5, %v1957_v28, %v1959_v45 }
 0x193   : > { %5105 = vmatprep.mubr.msk.bf16.mxu1 %vm6176_vm1, %v6175_v2 }
 0x194   : > { %5396 = vmatmul.mubr.msk.bf16.gmra.mrb[12].mxu0 %vm458_vm3, %v3570_v8  ;;  %v1841_v8 = vshll.u32 %v7184_v13, 16  ;;  %v2105_v13 = vrot.slane %v6308_v17, 1  ;;  %v6131_v17 = vld [vmem:[%s6295_s29 + $0x14] sm:$0xff]  }
 0x195   : > { %5399 = vmatprep.mubr.msk.bf16.mxu0 %vm6176_vm1, %v6175_v2 }
 0x196   : > { %v1843_v43 = vrot.slane %v1841_v8, 1  ;;  %v2106_v8 = vrot.slane %v6130_v59, 1 }
 0x198   : > { %v1844_v3 = vsel %vm413_vm2, %v1839_v61, %v1843_v43  ;;  %v2107_v61 = vsel %vm643_vm5, %v2105_v13, %v2106_v8 }
 0x19a   : > { %5106 = vmatmul.mubr.msk.bf16.gmra.mrb[8].mxu1 %vm458_vm3, %v6109_v19  ;;  %v4697_v19 = vld [vmem:[%s7453_s3 + $0x32] sm:$0x3] }
 0x19b   : > { %5109 = vmatprep.mubr.msk.bf16.mxu1 %vm6176_vm1, %v6175_v2 }
 0x19c   : > { %5400 = vmatmul.mubr.msk.bf16.gmra.mrb[16].mxu0 %vm458_vm3, %v3579_v9  ;;  %v3842_v9 = vsel %vm1076_vm6, %v3840_v34, %v3841_v60 }
 0x19d   : > { %5405 = vmatprep.mubr.msk.bf16.mxu0 %vm6176_vm1, %v6175_v2 }
 0x1a2   : > { %5110 = vmatmul.mubr.msk.bf16.gmra.mrb[12].mxu1 %vm458_vm3, %v6111_v26  ;;  %v4027_v26 = vsel %vm474_vm0, %v4697_v19, 0 }
 0x1a3   : > { %5113 = vmatprep.mubr.msk.bf16.mxu1 %vm6176_vm1, %v6175_v2 }
 0x1a4   : > { %5406 = vmatmul.mubr.msk.bf16.vlgmr.msra.gmra.mrb[0].mxu0 %vm458_vm3, %v3689_v21  ;;  %v3844_v21 = vsel %vm1076_vm6, %v3841_v60, %v3843_v11  ;;  %v3987_v60 = vrot.slane %v3985_v31, 2  ;;  %v3999_v11 = vrot.slane %v3997_v16, 3  ;;  %v7383_v16 = vld [vmem:[%s7454_s4] ss:$0 sm:$0xff] }
 0x1a5   : > { %5426 = vmatpush3.bf16.msra.mxu0 %v3867_v33  ;;  %5409 = vmatprep.mubr.msk.bf16.mxu0 %vm6176_vm1, %v6175_v2  ;;  %v4577_v33 = vld [vmem:[%s7453_s3 + $0x18] sm:$0x3] }
 0x1a6   : > { %5447 = vmatprep.subr.bf16.mxu0 %v6175_v2  ;;  %v2132_v42 = vsel %vm474_vm0, %v4577_v33, 0 }
 0x1aa   : > { %5114 = vmatmul.mubr.msk.bf16.gmra.mrb[16].mxu1 %vm458_vm3, %v6113_v22  ;;  %v1954_v22 = vsel %vm643_vm5, %v1952_v52, %v1953_v15  ;;  %v7310_v52 = vld [vmem:[%s6417_s19 + $0x30] ss:$0 sps:$4 sm:$0x77]  }
 0x1ab   : > { %5119 = vmatprep.mubr.msk.bf16.mxu1 %vm6176_vm1, %v6175_v2  ;;  %v4003_v33 = vshrl.u32 %v7310_v52, 16 }
 0x1ac   : > { %5410 = vmatmul.mubr.msk.bf16.gmra.mrb[4].mxu0 %vm458_vm3, %v3691_v44  ;;  %v6126_v44 = vld [vmem:[%s6417_s19 + $0x30] ss:$0 sps:$4 sm:$0x33]  }
 0x1ad   : > { %5413 = vmatprep.mubr.msk.bf16.mxu0 %vm6176_vm1, %v6175_v2  ;;  %v3849_v36 = vrot.slane %v6126_v44, 2  ;;  %v6133_v44 = vld [vmem:[%s6295_s29 + $0x24] sm:$0xff]  }
 0x1ae   : > { %v2259_v45 = vshrl.u32 %v6133_v44, 16 }
 0x1af   : > { %v3850_v51 = vsel %vm1076_vm6, %v3847_v14, %v3849_v36 }
 0x1b2   : > { %5120 = vmatmul.mubr.msk.bf16.vlgmr.msra.gmra.mrb[0].mxu1 %vm458_vm3, %v1812_v40  ;;  %v1958_v40 = vsel %vm643_vm5, %v1955_v63, %v1957_v28  ;;  %v4005_v63 = vrot.slane %v4003_v33, 2  ;;  %v4112_v28 = vld [vmem:[%s6417_s19 + $0x8] sm:$0x8]  ;;  %s6007_s19 = smul.u32 10, %s7474_s21 }
 0x1b3   : > { %5123 = vmatprep.mubr.msk.bf16.mxu1 %vm6176_vm1, %v6175_v2  ;;  %5140 = vmatpush3.bf16.msra.mxu1 %v1979_v38  ;;  %v3967_v38 = vshrl.u32 %v7191_v57, 16  ;;  %v4705_v36 = vcombine.low %v4112_v28, %v7178_v53  ;;  %v2262_v53 = vshll.u32 %v6133_v44, 16  ;;  %v4121_v57 = vrot.slane %v7209_v0, 3 }
 0x1b4   : > { %5161 = vmatprep.subr.bf16.mxu1 %v6175_v2  ;;  %5414 = vmatmul.mubr.msk.bf16.gmra.mrb[8].mxu0 %vm458_vm3, %v3693_v10  ;;  %v3961_v10 = vrot.slane %v3959_v41, 2 }
 0x1b5   : > { %5417 = vmatprep.mubr.msk.bf16.mxu0 %vm6176_vm1, %v6175_v2  ;;  %v3969_v20 = vrot.slane %v3967_v38, 2  ;;  %v4118_v38 = vrot.slane %v4705_v36, 3 }
 0x1b7   : > { %v3973_v24 = vor.u32 %v3972_v48, %v3969_v20  ;;  %v2261_v20 = vrot.slane %v2259_v45, 1  ;;  %v2264_v48 = vrot.slane %v2262_v53, 2 }
 0x1ba   : > { %5124 = vmatmul.mubr.msk.bf16.gmra.mrb[4].mxu1 %vm458_vm3, %v1820_v1  ;;  %v3964_v1 = vrot.slane %v3962_v37, 3  ;;  %v6129_v37 = vld [vmem:[%s6295_s29 + $0x2c] ss:$0 sps:$4 sm:$0x11]  }
 0x1bb   : > { %5127 = vmatprep.mubr.msk.bf16.mxu1 %vm6176_vm1, %v6175_v2 }
 0x1bc   : > { %5418 = vmatmul.mubr.msk.bf16.gmra.mrb[12].mxu0 %vm458_vm3, %v3695_v54  ;;  %v3965_v50 = vor.u32 %v3964_v1, %v3961_v10  ;;  %v3976_v54 = vshrl.u32 %v7209_v0, 16  ;;  %v4120_v10 = vsel %vm1509_vm7, %v4118_v38, %v4119_v39 }
 0x1bd   : > { %5421 = vmatprep.mubr.msk.bf16.mxu0 %vm6176_vm1, %v6175_v2 }
 0x1be   : > { %v3974_v62 = vsel %vm1348_vm8, %v3965_v50, %v3973_v24  ;;  %v3978_v7 = vrot.slane %v3976_v54, 2  ;;  %v6134_v50 = vld [vmem:[%s6295_s29 + $0x2c] ss:$0 sps:$4 sm:$0x33]  }
 0x1bf   : > { %v2271_v54 = vshll.u32 %v6134_v50, 16 }
 0x1c2   : > { %5128 = vmatmul.mubr.msk.bf16.gmra.mrb[8].mxu1 %vm458_vm3, %v1828_v55  ;;  %v3979_v55 = vshll.u32 %v7209_v0, 16  ;;  %v4123_v0 = vrot.slane %v7226_v58, 3 }
 0x1c3   : > { %5131 = vmatprep.mubr.msk.bf16.mxu1 %vm6176_vm1, %v6175_v2 }
 0x1c4   : > { %5422 = vmatmul.mubr.msk.bf16.gmra.mrb[16].mxu0 %vm458_vm3, %v3697_v47  ;;  %v3981_v56 = vrot.slane %v3979_v55, 3  ;;  %v4122_v55 = vsel %vm1509_vm7, %v4119_v39, %v4121_v57 }
 0x1c5   : > { %5427 = vmatprep.mubr.msk.bf16.mxu0 %vm6176_vm1, %v6175_v2 }
 0x1c6   : > { %v3982_v47 = vor.u32 %v3981_v56, %v3978_v7  ;;  %v4124_v56 = vsel %vm1509_vm7, %v4121_v57, %v4123_v0 }
 0x1c8   : > { %v3983_v34 = vsel %vm1348_vm8, %v3973_v24, %v3982_v47  ;;  %v2268_v24 = vshrl.u32 %v6134_v50, 16 }
 0x1ca   : > { %5132 = vmatmul.mubr.msk.bf16.gmra.mrb[12].mxu1 %vm458_vm3, %v1836_v18  ;;  %v3988_v18 = vshll.u32 %v7226_v58, 16  ;;  %v2270_v29 = vrot.slane %v2268_v24, 1 }
 0x1cb   : > { %5135 = vmatprep.mubr.msk.bf16.mxu1 %vm6176_vm1, %v6175_v2 }
 0x1cc   : > { %5428 = vmatmul.mubr.msk.bf16.vlgmr.msra.gmra.mrb[0].mxu0 %vm458_vm3, %v3842_v9  ;;  %v3990_v19 = vrot.slane %v3988_v18, 3  ;;  %v3994_v9 = vshrl.u32 %v7243_v25, 16 }
 0x1cd   : > { %5448 = vmatpush3.bf16.msra.mxu0 %v4027_v26  ;;  %5431 = vmatprep.mubr.msk.bf16.mxu0 %vm6176_vm1, %v6175_v2  ;;  %v2108_v26 = vrot.slane %v6131_v17, 1 }
 0x1ce   : > { %5469 = vmatprep.subr.bf16.mxu0 %v6175_v2  ;;  %v3991_v43 = vor.u32 %v3990_v19, %v3987_v60  ;;  %v3996_v46 = vrot.slane %v3994_v9, 2 }
 0x1cf   : > { %v2109_v15 = vsel %vm643_vm5, %v2106_v8, %v2108_v26 }
 0x1d2   : > { %5136 = vmatmul.mubr.msk.bf16.gmra.mrb[16].mxu1 %vm458_vm3, %v1844_v3  ;;  %v3992_v3 = vsel %vm1348_vm8, %v3982_v47, %v3991_v43 }
 0x1d3   : > { %5141 = vmatprep.mubr.msk.bf16.mxu1 %vm6176_vm1, %v6175_v2 }
 0x1d4   : > { %5432 = vmatmul.mubr.msk.bf16.gmra.mrb[4].mxu0 %vm458_vm3, %v3844_v21  ;;  %v4000_v21 = vor.u32 %v3999_v11, %v3996_v46 }
 0x1d5   : > { %5435 = vmatprep.mubr.msk.bf16.mxu0 %vm6176_vm1, %v6175_v2 }
 0x1da   : > { %5142 = vmatmul.mubr.msk.bf16.vlgmr.msra.gmra.mrb[0].mxu1 %vm458_vm3, %v1954_v22  ;;  %v6132_v22 = vld [vmem:[%s6295_s29 + $0x1c] sm:$0xff]   ;;  %s6008_s29 = smul.u32 80, %s7468_s22 }
 0x1db   : > { %5145 = vmatprep.mubr.msk.bf16.mxu1 %vm6176_vm1, %v6175_v2  ;;  %5162 = vmatpush3.bf16.msra.mxu1 %v2132_v42  ;;  %v2110_v30 = vrot.slane %v6132_v22, 1  ;;  %v4001_v42 = vsel %vm1348_vm8, %v3991_v43, %v4000_v21 }
 0x1dc   : > { %5491 = vmatprep.subr.bf16.mxu1 %v6175_v2  ;;  %5436 = vmatmul.mubr.msk.bf16.gmra.mrb[8].mxu0 %vm458_vm3, %v3846_v49  ;;  %s367_s30 = sadd.s32 %s6008_s29, %s6007_s19 }
 0x1dd   : > { %5439 = vmatprep.mubr.msk.bf16.mxu0 %vm6176_vm1, %v6175_v2  ;;  %s4470_s21 = sshll.u32 %s367_s30, 2 }
 0x1de   : > { %s7397_s11 = scalar_lea.vmem %s7456_s6, %s4470_s21 }
 0x1e2   : > { %5146 = vmatmul.mubr.msk.bf16.gmra.mrb[4].mxu1 %vm458_vm3, %v1956_v27  ;;  %v2111_v27 = vsel %vm643_vm5, %v2108_v26, %v2110_v30 }
 0x1e3   : > { %5149 = vmatprep.mubr.msk.bf16.mxu1 %vm6176_vm1, %v6175_v2 }
 0x1e4   : > { %5440 = vmatmul.mubr.msk.bf16.gmra.mrb[12].mxu0 %vm458_vm3, %v3848_v35  ;;  %v2112_v35 = vrot.slane %v6133_v44, 1 }
 0x1e5   : > { %5443 = vmatprep.mubr.msk.bf16.mxu0 %vm6176_vm1, %v6175_v2 }
 0x1e6   : > { %v2113_v41 = vsel %vm643_vm5, %v2110_v30, %v2112_v35 }
 0x1ea   : > { %5150 = vmatmul.mubr.msk.bf16.gmra.mrb[8].mxu1 %vm458_vm3, %v1958_v40 }
 0x1eb   : > { %5153 = vmatprep.mubr.msk.bf16.mxu1 %vm6176_vm1, %v6175_v2 }
 0x1ec   : > { %5444 = vmatmul.mubr.msk.bf16.gmra.mrb[16].mxu0 %vm458_vm3, %v3850_v51  ;;  %v2114_v51 = vrot.slane %v6129_v37, 1 }
 0x1ed   : > { %5449 = vmatprep.mubr.msk.bf16.mxu0 %vm6176_vm1, %v6175_v2 }
 0x1ee   : > { %v2115_v1 = vsel %vm643_vm5, %v2112_v35, %v2114_v51 }
 0x1f2   : > { %5154 = vmatmul.mubr.msk.bf16.gmra.mrb[12].mxu1 %vm458_vm3, %v1960_v23  ;;  %v2265_v23 = vor.u32 %v2264_v48, %v2261_v20 }
 0x1f3   : > { %5157 = vmatprep.mubr.msk.bf16.mxu1 %vm6176_vm1, %v6175_v2 }
 0x1f4   : > { %5450 = vmatmul.mubr.msk.bf16.vlgmr.msra.gmra.mrb[0].mxu0 %vm458_vm3, %v3974_v62  ;;  %v2266_v32 = vsel %vm915_vm4, %v6372_v6, %v2265_v23  ;;  %v2273_v62 = vrot.slane %v2271_v54, 2  ;;  %v4125_v6 = vrot.slane %v7243_v25, 3 }
 0x1f5   : > { %5470 = vmatpush3.bf16.msra.mxu0 %v4145_v5  ;;  %5453 = vmatprep.mubr.msk.bf16.mxu0 %vm6176_vm1, %v6175_v2 }
 0x1f6   : > { %v2274_v7 = vor.u32 %v2273_v62, %v2270_v29  ;;  %v4126_v58 = vsel %vm1509_vm7, %v4123_v0, %v4125_v6 }
 0x1f8   : > { %v2275_v5 = vsel %vm915_vm4, %v2265_v23, %v2274_v7 }
 0x1fa   : > { %5158 = vmatmul.mubr.msk.bf16.gmra.mrb[16].mxu1 %vm458_vm3, %v1962_v12  ;;  %v4127_v12 = vrot.slane %v7310_v52, 3 }
 0x1fb   : > { %5163 = vmatprep.mubr.msk.bf16.mxu1 %vm6176_vm1, %v6175_v2 }
 0x1fc   : > { %5454 = vmatmul.mubr.msk.bf16.gmra.mrb[4].mxu0 %vm458_vm3, %v3983_v34  ;;  %v4128_v47 = vsel %vm1509_vm7, %v4125_v6, %v4127_v12 }
 0x1fd   : > { %5457 = vmatprep.mubr.msk.bf16.mxu0 %vm6176_vm1, %v6175_v2 }
 0x202   : > { %5164 = vmatmul.mubr.msk.bf16.vlgmr.msra.gmra.mrb[0].mxu1 %vm458_vm3, %v2107_v61 }
 0x203   : > { %5167 = vmatprep.mubr.msk.bf16.mxu1 %vm6176_vm1, %v6175_v2  ;;  %5492 = vmatpush3.bf16.msra.mxu1 %v6256_v4  ;;  %v4006_v4 = vshll.u32 %v7310_v52, 16 }
 0x204   : > { %5458 = vmatmul.mubr.msk.bf16.gmra.mrb[8].mxu0 %vm458_vm3, %v3992_v3  ;;  %v7388_v3 = vld [vmem:[%s7455_s5] ss:$0 sm:$0xff] }
 0x205   : > { %5461 = vmatprep.mubr.msk.bf16.mxu0 %vm6176_vm1, %v6175_v2  ;;  %v4008_v49 = vrot.slane %v4006_v4, 3 }
 0x207   : > { %v4009_v14 = vor.u32 %v4008_v49, %v4005_v63 }
 0x209   : > { %v4010_v40 = vsel %vm1348_vm8, %v4000_v21, %v4009_v14 }
 0x20a   : > { %5168 = vmatmul.mubr.msk.bf16.gmra.mrb[4].mxu1 %vm458_vm3, %v2109_v15 }
 0x20b   : > { %5171 = vmatprep.mubr.msk.bf16.mxu1 %vm6176_vm1, %v6175_v2 }
 0x20c   : > { %5462 = vmatmul.mubr.msk.bf16.gmra.mrb[12].mxu0 %vm458_vm3, %v4001_v42 }
 0x20d   : > { %5465 = vmatprep.mubr.msk.bf16.mxu0 %vm6176_vm1, %v6175_v2 }
 0x212   : > { %5172 = vmatmul.mubr.msk.bf16.gmra.mrb[8].mxu1 %vm458_vm3, %v2111_v27 }
 0x213   : > { %5175 = vmatprep.mubr.msk.bf16.mxu1 %vm6176_vm1, %v6175_v2 }
 0x214   : > { %5466 = vmatmul.mubr.msk.bf16.gmra.mrb[16].mxu0 %vm458_vm3, %v4010_v40 }
 0x215   : > { %5471 = vmatprep.mubr.msk.bf16.mxu0 %vm6176_vm1, %v6175_v2 }
 0x21a   : > { %5176 = vmatmul.mubr.msk.bf16.gmra.mrb[12].mxu1 %vm458_vm3, %v2113_v41 }
 0x21b   : > { %5179 = vmatprep.mubr.msk.bf16.mxu1 %vm6176_vm1, %v6175_v2 }
 0x21c   : > { %5472 = vmatmul.mubr.msk.bf16.vlgmr.msra.gmra.mrb[0].mxu0 %vm458_vm3, %v4120_v10 }
 0x21d   : > { %5475 = vmatprep.mubr.msk.bf16.mxu0 %vm6176_vm1, %v6175_v2 }
 0x222   : > { %5180 = vmatmul.mubr.msk.bf16.gmra.mrb[16].mxu1 %vm458_vm3, %v2115_v1 }
 0x223   : > { %5197 = vmatprep.mubr.msk.bf16.mxu1 %vm6176_vm1, %v6175_v2 }
 0x224   : > { %5476 = vmatmul.mubr.msk.bf16.gmra.mrb[4].mxu0 %vm458_vm3, %v4122_v55 }
 0x225   : > { %5479 = vmatprep.mubr.msk.bf16.mxu0 %vm6176_vm1, %v6175_v2 }
 0x22a   : > { %5198 = vmatmul.mubr.msk.bf16.vlgmr.msra.gmra.mrb[12].mxu1 %vm458_vm3, %v2266_v32 }
 0x22b   : > { %5201 = vmatprep.mubr.msk.bf16.mxu1 %vm6176_vm1, %v6175_v2 }
 0x22c   : > { %5480 = vmatmul.mubr.msk.bf16.gmra.mrb[8].mxu0 %vm458_vm3, %v4124_v56 }
 0x22d   : > { %5483 = vmatprep.mubr.msk.bf16.mxu0 %vm6176_vm1, %v6175_v2 }
 0x232   : > { %5202 = vmatmul.mubr.msk.bf16.gmra.mrb[16].mxu1 %vm458_vm3, %v2275_v5 }
 0x234   : > { %5484 = vmatmul.mubr.msk.bf16.gmra.mrb[12].mxu0 %vm458_vm3, %v4126_v58 }
 0x235   : > { %5487 = vmatprep.mubr.msk.bf16.mxu0 %vm6176_vm1, %v6175_v2 }
 0x23c   : > { %5488 = vmatmul.mubr.msk.bf16.gmra.mrb[16].mxu0 %vm458_vm3, %v4128_v47 }
 0x2d5   : > { %v2168_v31 = vpop.f32.mrb[0].mxu1 }
 0x2d6   : > { %v5165_v25 = vpop.f32.mrb[1].mxu1 }
 0x2d7   : > { %v2171_v18 = vpop.f32.mrb[2].mxu1 }
 0x2d8   : > { %v5166_v13 = vpop.f32.mrb[3].mxu1 }
 0x2dd   : > { %v2176_v59 = vpop.f32.mrb[4].mxu1 }
 0x2de   : > { %v5169_v8 = vpop.f32.mrb[5].mxu1 }
 0x2df   : > { %v2179_v34 = vpop.f32.mrb[6].mxu1 }
 0x2e0   : > { %v5170_v60 = vpop.f32.mrb[7].mxu1 }
 0x2e5   : > { %v2184_v19 = vpop.f32.mrb[8].mxu1 }
 0x2e6   : > { %v5173_v61 = vpop.f32.mrb[9].mxu1 }
 0x2e7   : > { %v2187_v2 = vpop.f32.mrb[10].mxu1 }
 0x2e8   : > { %v5174_v43 = vpop.f32.mrb[11].mxu1 }
 0x2ef   : > { %v4181_v9 = vpop.f32.mrb[0].mxu0 }
 0x2f0   : > { %v5493_v17 = vadd.f32 %v4181_v9, %v2168_v31  ;;  %v5473_v26 = vpop.f32.mrb[1].mxu0 }
 0x2f1   : > { %v4184_v46 = vpop.f32.mrb[2].mxu0 }
 0x2f2   : > { %v4237_v11 = vmul.f32 %v5493_v17, %v7383_v16  ;;  %v5494_v52 = vadd.f32 %v4184_v46, %v2171_v18  ;;  %v5474_v15 = vpop.f32.mrb[3].mxu0 }
 0x2f4   : > { %v4254_v21 = vadd.f32 %v7388_v3, %v4237_v11  ;;  %v4238_v33 = vmul.f32 %v5494_v52, %v7383_v16 }
 0x2f6   : > { %v4264_v4 = vmax.f32 %v4254_v21, 0.0  ;;  %v4255_v22 = vadd.f32 %v7388_v3, %v4238_v33 }
 0x2f7   : > { %v4189_v30 = vpop.f32.mrb[4].mxu0 }
 0x2f8   : > { %v4725_v42 = vpack.c.bf16 %v4264_v4, %v4264_v4  ;;  %v4265_v63 = vmax.f32 %v4255_v22, 0.0  ;;  %v5495_v49 = vadd.f32 %v4189_v30, %v2176_v59  ;;  %v5477_v27 = vpop.f32.mrb[5].mxu0 }
 0x2f9   : > { %v4192_v14 = vpop.f32.mrb[6].mxu0 }
 0x2fa   : > { %4315 = vst.msk [vmem:[%s7397_s11] sm:$0xf] %vm4314_vm9, %v4725_v42  ;;  %v4726_v28 = vpack.c.bf16 %v4265_v63, %v4265_v63  ;;  %v4239_v44 = vmul.f32 %v5495_v49, %v7383_v16  ;;  %v5496_v35 = vadd.f32 %v4192_v14, %v2179_v34  ;;  %v5478_v40 = vpop.f32.mrb[7].mxu0 }
 0x2fc   : > { %4316 = vst.msk [vmem:[%s7397_s11 + $0x4] sm:$0xf] %vm4314_vm9, %v4726_v28  ;;  %v4256_v37 = vadd.f32 %v7388_v3, %v4239_v44  ;;  %v4240_v38 = vmul.f32 %v5496_v35, %v7383_v16 }
 0x2fd   : > { %v2352_v36 = vpop.f32.mrb[12].mxu1 }
 0x2fe   : > { %v5199_v41 = vpop.f32.mrb[13].mxu1  ;;  %v4266_v45 = vmax.f32 %v4256_v37, 0.0  ;;  %v4257_v53 = vadd.f32 %v7388_v3, %v4240_v38 }
 0x2ff   : > { %v2355_v39 = vpop.f32.mrb[14].mxu1  ;;  %v4197_v10 = vpop.f32.mrb[8].mxu0 }
 0x300   : > { %v5200_v51 = vpop.f32.mrb[15].mxu1  ;;  %v4727_v1 = vpack.c.bf16 %v4266_v45, %v4266_v45  ;;  %v4267_v20 = vmax.f32 %v4257_v53, 0.0  ;;  %v5497_v48 = vadd.f32 %v4197_v10, %v2184_v19  ;;  %v5481_v57 = vpop.f32.mrb[9].mxu0 }
 0x301   : > { %v4200_v23 = vpop.f32.mrb[10].mxu0 }
 0x302   : > { %4317 = vst.msk [vmem:[%s7397_s11 + $0x8] sm:$0xf] %vm4314_vm9, %v4727_v1  ;;  %v4728_v50 = vpack.c.bf16 %v4267_v20, %v4267_v20  ;;  %v4241_v24 = vmul.f32 %v5497_v48, %v7383_v16  ;;  %v5498_v54 = vadd.f32 %v4200_v23, %v2187_v2  ;;  %v5482_v55 = vpop.f32.mrb[11].mxu0 }
 0x304   : > { %4318 = vst.msk [vmem:[%s7397_s11 + $0xc] sm:$0xf] %vm4314_vm9, %v4728_v50  ;;  %v4258_v62 = vadd.f32 %v7388_v3, %v4241_v24  ;;  %v4242_v0 = vmul.f32 %v5498_v54, %v7383_v16 }
 0x305   : > { %v2360_v32 = vpop.f32.mrb[16].mxu1 }
 0x306   : > { %v5203_v29 = vpop.f32.mrb[17].mxu1  ;;  %v4268_v5 = vmax.f32 %v4258_v62, 0.0  ;;  %v4259_v6 = vadd.f32 %v7388_v3, %v4242_v0 }
 0x307   : > { %v2363_v7 = vpop.f32.mrb[18].mxu1  ;;  %v4205_v58 = vpop.f32.mrb[12].mxu0 }
 0x308   : > { %v5204_v56 = vpop.f32.mrb[19].mxu1  ;;  %v4729_v12 = vpack.c.bf16 %v4268_v5, %v4268_v5  ;;  %v4269_v47 = vmax.f32 %v4259_v6, 0.0  ;;  %v5499_v31 = vadd.f32 %v4205_v58, %v2352_v36  ;;  %v5485_v25 = vpop.f32.mrb[13].mxu0 }
 0x309   : > { %v4208_v18 = vpop.f32.mrb[14].mxu0 }
 0x30a   : > { %4319 = vst.msk [vmem:[%s7397_s11 + $0x10] sm:$0xf] %vm4314_vm9, %v4729_v12  ;;  %v4730_v13 = vpack.c.bf16 %v4269_v47, %v4269_v47  ;;  %v4243_v59 = vmul.f32 %v5499_v31, %v7383_v16  ;;  %v5500_v8 = vadd.f32 %v4208_v18, %v2355_v39  ;;  %v5486_v34 = vpop.f32.mrb[15].mxu0 }
 0x30c   : > { %4320 = vst.msk [vmem:[%s7397_s11 + $0x14] sm:$0xf] %vm4314_vm9, %v4730_v13  ;;  %v4260_v60 = vadd.f32 %v7388_v3, %v4243_v59  ;;  %v4244_v19 = vmul.f32 %v5500_v8, %v7383_v16 }
 0x30e   : > { %v4270_v61 = vmax.f32 %v4260_v60, 0.0  ;;  %v4261_v2 = vadd.f32 %v7388_v3, %v4244_v19 }
 0x30f   : > { %v4213_v43 = vpop.f32.mrb[16].mxu0 }
 0x310   : > { %v4731_v9 = vpack.c.bf16 %v4270_v61, %v4270_v61  ;;  %v4271_v17 = vmax.f32 %v4261_v2, 0.0  ;;  %v5501_v26 = vadd.f32 %v4213_v43, %v2360_v32  ;;  %v5489_v46 = vpop.f32.mrb[17].mxu0 }
 0x311   : > { %v4216_v11 = vpop.f32.mrb[18].mxu0 }
 0x312   : > { %4321 = vst.msk [vmem:[%s7397_s11 + $0x18] sm:$0xf] %vm4314_vm9, %v4731_v9  ;;  %v4732_v52 = vpack.c.bf16 %v4271_v17, %v4271_v17  ;;  %v4245_v15 = vmul.f32 %v5501_v26, %v7383_v16  ;;  %v5502_v21 = vadd.f32 %v4216_v11, %v2363_v7  ;;  %v5490_v33 = vpop.f32.mrb[19].mxu0 }
 0x314   : > { %4322 = vst.msk [vmem:[%s7397_s11 + $0x1c] sm:$0xf] %vm4314_vm9, %v4732_v52  ;;  %v4262_v4 = vadd.f32 %v7388_v3, %v4245_v15  ;;  %v4246_v22 = vmul.f32 %v5502_v21, %v7383_v16 }
 0x316   : > { %v4272_v30 = vmax.f32 %v4262_v4, 0.0  ;;  %v4263_v42 = vadd.f32 %v7388_v3, %v4246_v22 }
 0x318   : > { %v4733_v63 = vpack.c.bf16 %v4272_v30, %v4272_v30  ;;  %v4273_v49 = vmax.f32 %v4263_v42, 0.0 }
 0x31a   : > { %4323 = vst.msk [vmem:[%s7397_s11 + $0x20] sm:$0xf] %vm4314_vm9, %v4733_v63  ;;  %v4734_v27 = vpack.c.bf16 %v4273_v49, %v4273_v49 }
 0x31c   : > { %4324 = vst.msk [vmem:[%s7397_s11 + $0x24] sm:$0xf] %vm4314_vm9, %v4734_v27 }
 0x31d PF: > { %s16_s25 = sadd.s32 1, %s6173_s25   ;;  %s7457_s21 = smov %s6165_s23 }
 0x31e   : > { %p13_p10 = scmp.ge.s32.totalorder %s16_s25, 18   ;;  %s7458_s22 = smov %s6169_s24 }
 0x31f   : > { %s7459_s23 = smov %s7462_s26  ;;  %s7460_s24 = smov %s7466_s27 }
 0x320   :  { %15 = sbr.rel (!%p13_p10) target bundleno = 3 (0x3), region = 106 }

// kernel: center_block_forward.3
= control target key start
LH: loop header
LB: loop body
LE: loop exit
PB: predicated region body
PF: predicated region fallthrough
CT: control target
= control target key end

     0   :  { %s6151_s21 = smov 0   ;;  %s6153_s22 = smov 0   ;;  %s7389_s0 = inlined_call_operand.vmem [shape: bf16[2,10,102,8], index: 0, kind: input, shape index: {}, may-alias: {0,1,2}]   ;;  %s7390_s1 = inlined_call_operand.vmem [shape: bf16[2,10,102,8], index: 1, kind: input, shape index: {}, may-alias: {0,1,2}]   ;;  %s7391_s2 = inlined_call_operand.vmem [shape: bf16[2,10,102,8], index: 2, kind: input, shape index: {}, may-alias: {0,1,2}]   ;;  %s7392_s3 = inlined_call_operand.vmem [shape: bf16[27,8,8], index: 3, kind: input, shape index: {}]   ;;  %s7393_s4 = inlined_call_operand.vmem [shape: f32[1,8], index: 4, kind: input, shape index: {}]   ;;  %s7394_s5 = inlined_call_operand.vmem [shape: f32[1,8], index: 5, kind: input, shape index: {}]   ;;  %s7395_s6 = inlined_call_operand.vmem [shape: f32[2,8,80,8], index: 6, kind: output, shape index: {}]  }
   0x1   :  { %s6155_s23 = smov 0   ;;  %s6157_s24 = smov 0  }
   0x2   :  { %s6159_s25 = smov 0  }
   0x3 LB: > { %s25_s26 = sadd.s32 1, %s6104_s23  ;;  %s28_s27 = sadd.s32 1, %s6108_s24  ;;  %s6112_s25 = sphi %s6159_s25, %s16_s25   ;;  %s6108_s24 = sphi %s6157_s24, %s7399_s24   ;;  %s6104_s23 = sphi %s6155_s23, %s7398_s23   ;;  %s6100_s22 = sphi %s6153_s22, %s7397_s22   ;;  %s6096_s21 = sphi %s6151_s21, %s7396_s21  }
   0x4   : > { %p26_p0 = scmp.ge.s32.totalorder %s25_s26, 8  ;;  %p4425_p1 = scmp.ge.s32.totalorder %s6112_s25, 1 }
   0x5   : > { %p272_p2 = scmp.lt.s32.totalorder %s6112_s25, 17 }
   0x6   : > { %s7401_s26 = smov (%p26_p0, %s25_s26), 0  ;;  %s7403_s27 = smov (!%p26_p0, %s28_s27), %s6108_s24 }
   0x7   : > { %p273_p3 = pnand %p4425_p1, %p272_p2  ;;  %p30_p4 = scmp.ge.s32.totalorder %s7403_s27, 2 }
   0x8   : > { %v4430_v0 = vld [vmem:[%s7392_s3 + $0x4] sm:$0xf] (!%p273_p3)  ;;  %vm474_vm0 = vcmask (!%p273_p3), 1043456   ;;  %v4548_v1 = vld [vmem:[%s7392_s3 + $0x34] sm:$0xf] (!%p273_p3)  ;;  %v6114_v2 = vmov (!%p273_p3), 0.0  }
   0x9   : > { %s7405_s27 = smov (%p30_p4, %s7403_s27), 0  ;;  %276 = sbr.rel (%p273_p3) target bundleno = 795 (0x31b), region = 44 }
   0xa   : > { %4836 = vmatprep.subr.bf16.mxu1 (!%p273_p3), %v6114_v2  ;;  %5122 = vmatprep.subr.bf16.mxu0 (!%p273_p3), %v6114_v2  ;;  %v476_v3 = vsel (!%p273_p3), %vm474_vm0, %v4430_v0, 0  ;;  %v6195_v4 = vsel (!%p273_p3), %vm474_vm0, %v4548_v1, 0  ;;  %p330_p5 = scmp.lt.s32.totalorder (!%p273_p3), %s6100_s22, 1  ;;  %p332_p6 = scmp.lt.s32.totalorder (!%p273_p3), %s6096_s21, 9  ;;  %vm6115_vm1 = vmmov (!%p273_p3), 0   ;;  %vm458_vm3 = vcmask (!%p273_p3), 64512  }
   0xb   : > { %4837 = vmatpush3.bf16.msra.mxu1 (!%p273_p3), %v476_v3  ;;  %5123 = vmatpush3.bf16.msra.mxu0 (!%p273_p3), %v6195_v4  ;;  %s339_s8 = sadd.s32 (!%p273_p3), 1, %s6096_s21  ;;  %vm413_vm2 = vsmask.f32 (!%p273_p3), 7424  ;;  %v381_v19 = vld [vmem:[%s7392_s3] sm:$0xf] (!%p273_p3)  ;;  %vm643_vm5 = vcmask (!%p273_p3), 1046528  }
   0xc   : > { %4838 = vmatprep.mubr.msk.bf16.mxu1 (!%p273_p3), %vm6115_vm1, %v6114_v2  ;;  %5124 = vmatprep.mubr.msk.bf16.mxu0 (!%p273_p3), %vm6115_vm1, %v6114_v2  ;;  %p342_p7 = scmp.lt.s32.totalorder (!%p273_p3), %s339_s8, 9  ;;  %v562_v28 = vsel (!%p273_p3), %vm474_vm0, %v381_v19, 0  ;;  %v4555_v35 = vld [vmem:[%s7392_s3 + $0x38] sm:$0xf] (!%p273_p3)  ;;  %vm915_vm4 = vsmask.f32 (!%p273_p3), 6400 }
   0xd   : > { %5144 = vmatprep.subr.bf16.mxu0 (!%p273_p3), %v6114_v2  ;;  %4858 = vmatprep.subr.bf16.mxu1 (!%p273_p3), %v6114_v2  ;;  %v2410_v45 = vsel (!%p273_p3), %vm474_vm0, %v4555_v35, 0  ;;  %vm1076_vm6 = vcmask (!%p273_p3), 1045504   ;;  %vm1509_vm7 = vcmask (!%p273_p3), 1044480   ;;  %vm1348_vm8 = vsmask.f32 (!%p273_p3), 5376  ;;  %p363_p9 = scmp.lt.s32.totalorder (!%p273_p3), %s6096_s21, 7 }
  0x10   : > { %s7407_s22 = smov (!%p330_p5, %s6100_s22), 1  ;;  %s7409_s8 = smov (!%p342_p7, %s339_s8), 9 }
  0x11   : > { %s333_s9 = scalar_select %p332_p6, %s6096_s21, 9 }
  0x12   : > { %s6212_s10 = smul.u32 130, %s7407_s22 }
  0x13   : > { %s5942_s11 = smul.u32 13, %s333_s9 }
  0x14   : > { %s5944_s14 = smul.u32 13, %s7409_s8 }
  0x15   : > { %s336_s12 = sadd.s32 %s6212_s10, %s5942_s11  ;;  %s350_s11 = sadd.s32 2, %s6096_s21 }
  0x16   : > { %s4426_s13 = sshll.u32 %s336_s12, 2  ;;  %s346_s18 = sadd.s32 %s5944_s14, %s6212_s10 }
  0x17   : > { %s6218_s17 = scalar_lea.vmem %s7389_s0, %s4426_s13  ;;  %s4427_s19 = sshll.u32 %s346_s18, 2 }
  0x18   : > { %v371_v5 = vld [vmem:[%s6218_s17] sm:$0xf]  ;;  %v6223_v6 = vld [vmem:[%s6218_s17 + $0x4] sm:$0xf]  ;;  %v6229_v8 = vld [vmem:[%s6218_s17 + $0x8] sm:$0xff]   ;;  %s6234_s29 = scalar_lea.vmem %s7390_s1, %s4427_s19  ;;  %p353_p8 = scmp.lt.s32.totalorder %s350_s11, 9 }
  0x19   : > { %v6226_v7 = vcombine.low %v371_v5, %v6223_v6  ;;  %v6237_v9 = vld [vmem:[%s6218_s17 + $0x10] sm:$0xff]   ;;  %v422_v12 = vshll.u32 %v6229_v8, 16  ;;  %v2064_v13 = vld [vmem:[%s6234_s29 + $0x4] sm:$0xe]  ;;  %v6244_v14 = vld [vmem:[%s6234_s29 + $0x8] sm:$0xf] }
  0x1a   : > { %v6247_v17 = vcombine.low %v2064_v13, %v6244_v14  ;;  %v6250_v18 = vld [vmem:[%s6234_s29 + $0xc] sm:$0xff]   ;;  %v6256_v20 = vld [vmem:[%s6234_s29 + $0x14] sm:$0xff]   ;;  %v426_v21 = vshrl.u32 %v6229_v8, 16  ;;  %v430_v22 = vshll.u32 %v6237_v9, 16  ;;  %v6278_v44 = vld [vmem:[%s6234_s29 + $0x1c] sm:$0xff]   ;;  %v434_v48 = vshrl.u32 %v6237_v9, 16 }
  0x1b   : > { %v415_v10 = vshrl.u32 %v6226_v7, 16  ;;  %v417_v11 = vshll.u32 %v6226_v7, 16  ;;  %v424_v16 = vrot.slane %v422_v12, 1  ;;  %v2232_v26 = vshrl.u32 %v6250_v18, 16  ;;  %v6275_v40 = vld [vmem:[%s6218_s17 + $0x18] sm:$0xff]   ;;  %v6297_v55 = vld [vmem:[%s6218_s17 + $0x20] sm:$0xff]  }
  0x1c   : > { %v2224_v24 = vshrl.u32 %v6247_v17, 16  ;;  %v2227_v25 = vshll.u32 %v6247_v17, 16  ;;  %v2235_v27 = vshll.u32 %v6250_v18, 16  ;;  %v2241_v29 = vshrl.u32 %v6256_v20, 16  ;;  %v637_v59 = vld [vmem:[%s6218_s17] sm:$0xe] }
  0x1d   : > { %v419_v15 = vrot.slane %v417_v11, 1  ;;  %v2234_v33 = vrot.slane %v2232_v26, 1  ;;  %v2244_v36 = vshll.u32 %v6256_v20, 16  ;;  %v428_v38 = vor.u32 %v426_v21, %v424_v16  ;;  %s7411_s11 = smov (!%p353_p8, %s350_s11), 9  ;;  %v2377_v11 = vld [vmem:[%s6234_s29 + $0x4] sm:$0xc] }
  0x1e   : > { %v2226_v31 = vrot.slane %v2224_v24, 1  ;;  %v2229_v32 = vrot.slane %v2227_v25, 2  ;;  %v2237_v34 = vrot.slane %v2235_v27, 2  ;;  %v432_v39 = vrot.slane %v430_v22, 1  ;;  %s5945_s12 = smul.u32 13, %s7411_s11  ;;  %s7413_s21 = smov (!%p363_p9, %s6096_s21), 7 }
  0x1f   : > { %v420_v23 = vor.u32 %v419_v15, %v415_v10  ;;  %v2243_v42 = vrot.slane %v2241_v29, 1  ;;  %v2246_v43 = vrot.slane %v2244_v36, 2  ;;  %v438_v49 = vshll.u32 %v6275_v40, 16  ;;  %v6329_v19 = vld [vmem:[%s6218_s17 + $0x28] ss:$0 sps:$4 sm:$0x11]  }
  0x20   : > { %v2230_v37 = vor.u32 %v2229_v32, %v2226_v31  ;;  %v2238_v41 = vor.u32 %v2237_v34, %v2234_v33  ;;  %v433_v47 = vsel %vm413_vm2, %v428_v38, %v432_v39  ;;  %v2250_v51 = vshrl.u32 %v6278_v44, 16  ;;  %s357_s13 = sadd.s32 %s5945_s12, %s6212_s10  ;;  %v2496_v31 = vld [vmem:[%s6234_s29 + $0xc] sm:$0xf]  ;;  %v6351_v32 = vld [vmem:[%s6234_s29 + $0x10] sm:$0xff]   ;;  %v6361_v34 = vld [vmem:[%s6234_s29 + $0x18] sm:$0xff]  }
  0x21   : > { %v425_v30 = vsel %vm413_vm2, %v420_v23, %v424_v16  ;;  %v2247_v50 = vor.u32 %v2246_v43, %v2243_v42  ;;  %v2253_v52 = vshll.u32 %v6278_v44, 16  ;;  %v436_v53 = vor.u32 %v434_v48, %v432_v39  ;;  %s4428_s10 = sshll.u32 %s357_s13, 2  ;;  %v6371_v42 = vld [vmem:[%s6234_s29 + $0x20] sm:$0xff]  }
  0x22   : > { %4839 = vmatmul.mubr.msk.bf16.vlgmr.msra.gmra.mrb[0].mxu1 %vm458_vm3, %v425_v30  ;;  %v2239_v46 = vsel %vm915_vm4, %v2230_v37, %v2238_v41  ;;  %v440_v54 = vrot.slane %v438_v49, 1  ;;  %v2252_v57 = vrot.slane %v2250_v51, 1  ;;  %v4448_v60 = vcombine.low %v637_v59, %v6223_v6  ;;  %s6356_s19 = scalar_lea.vmem %s7391_s2, %s4428_s10  ;;  %v6395_v51 = vld [vmem:[%s6234_s29 + $0x28] sm:$0xff]  }
  0x23   : > { %4842 = vmatprep.mubr.msk.bf16.mxu1 %vm6115_vm1, %v6114_v2  ;;  %4859 = vmatpush3.bf16.msra.mxu1 %v562_v28  ;;  %v2248_v56 = vsel %vm915_vm4, %v2238_v41, %v2247_v50  ;;  %v2255_v58 = vrot.slane %v2253_v52, 2  ;;  %v645_v61 = vrot.slane %v6229_v8, 1  ;;  %v442_v62 = vshrl.u32 %v6275_v40, 16  ;;  %v2808_v28 = vld [vmem:[%s6234_s29 + $0x8] sm:$0x8] }
  0x24   : > { %4880 = vmatprep.subr.bf16.mxu1 %v6114_v2  ;;  %5125 = vmatmul.mubr.msk.bf16.vlgmr.msra.gmra.mrb[0].mxu0 %vm458_vm3, %v2239_v46  ;;  %v647_v63 = vrot.slane %v6237_v9, 1  ;;  %v441_v0 = vsel %vm413_vm2, %v436_v53, %v440_v54  ;;  %v446_v1 = vshll.u32 %v6297_v55, 16  ;;  %v644_v3 = vrot.slane %v4448_v60, 1  ;;  %v6001_v53 = vld [vmem:[%s6234_s29 + $0x24] sm:$0xff]  }
  0x25   : > { %5145 = vmatpush3.bf16.msra.mxu0 %v2410_v45  ;;  %5128 = vmatprep.mubr.msk.bf16.mxu0 %vm6115_vm1, %v6114_v2  ;;  %v649_v5 = vrot.slane %v6275_v40, 1  ;;  %v6311_v6 = vor.u32 %v2255_v58, %v2252_v57  ;;  %v444_v15 = vor.u32 %v442_v62, %v440_v54  ;;  %v4556_v22 = vcombine.low %v2377_v11, %v6244_v14  ;;  %v4562_v14 = vld [vmem:[%s7392_s3 + $0x3c] sm:$0xf]  ;;  %v4447_v45 = vld [vmem:[%s7392_s3 + $0x8] sm:$0xf] }
  0x26   : > { %5166 = vmatprep.subr.bf16.mxu0 %v6114_v2  ;;  %v6314_v10 = vsel %vm643_vm5, %v645_v61, %v647_v63  ;;  %v6318_v12 = vsel %vm643_vm5, %v644_v3, %v645_v61  ;;  %v448_v16 = vrot.slane %v446_v1, 1  ;;  %v450_v24 = vshrl.u32 %v6297_v55, 16  ;;  %v2495_v59 = vld [vmem:[%s6234_s29 + $0x8] sm:$0xc]  ;;  %v6444_v1 = vld [vmem:[%s6218_s17 + $0xc] sm:$0xff]  }
  0x27   : > { %v6323_v13 = vsel %vm643_vm5, %v647_v63, %v649_v5  ;;  %v2257_v21 = vsel %vm915_vm4, %v2247_v50, %v6311_v6  ;;  %v454_v25 = vshll.u32 %v6329_v19, 16  ;;  %v2383_v26 = vrot.slane %v4556_v22, 2  ;;  %v6448_v3 = vld [vmem:[%s6218_s17 + $0x8] sm:$0xf]  ;;  %v1070_v11 = vld [vmem:[%s6218_s17 + $0x4] sm:$0xc] }
  0x28   : > { %v449_v23 = vsel %vm413_vm2, %v444_v15, %v448_v16  ;;  %v2384_v27 = vrot.slane %v6250_v18, 2  ;;  %v452_v29 = vor.u32 %v450_v24, %v448_v16  ;;  %v2563_v33 = vsel %vm474_vm0, %v4562_v14, 0 }
  0x29   : > { %v456_v30 = vrot.slane %v454_v25, 1  ;;  %v4582_v35 = vcombine.low %v2808_v28, %v2496_v31  ;;  %v2815_v36 = vrot.slane %v6351_v32, 3  ;;  %v2817_v39 = vrot.slane %v6361_v34, 3  ;;  %v4454_v25 = vld [vmem:[%s7392_s3 + $0xc] sm:$0xf] }
  0x2a   : > { %4843 = vmatmul.mubr.msk.bf16.gmra.mrb[4].mxu1 %vm458_vm3, %v433_v47  ;;  %v2385_v18 = vsel %vm1076_vm6, %v2383_v26, %v2384_v27  ;;  %v2386_v41 = vrot.slane %v6256_v20, 2  ;;  %v2819_v47 = vrot.slane %v6371_v42, 3  ;;  %v671_v48 = vsel %vm474_vm0, %v4447_v45, 0  ;;  %v6469_v26 = vld [vmem:[%s6218_s17 + $0x14] sm:$0xff]  }
  0x2b   : > { %4846 = vmatprep.mubr.msk.bf16.mxu1 %vm6115_vm1, %v6114_v2  ;;  %v2814_v37 = vrot.slane %v4582_v35, 3  ;;  %v457_v38 = vsel %vm413_vm2, %v452_v29, %v456_v30  ;;  %v6381_v46 = vsel %vm1509_vm7, %v2815_v36, %v2817_v39  ;;  %v2388_v50 = vrot.slane %v6278_v44, 2 }
  0x2c   : > { %5129 = vmatmul.mubr.msk.bf16.gmra.mrb[4].mxu0 %vm458_vm3, %v2248_v56  ;;  %v2387_v20 = vsel %vm1076_vm6, %v2384_v27, %v2386_v41  ;;  %v6390_v49 = vsel %vm1509_vm7, %v2817_v39, %v2819_v47  ;;  %v2821_v52 = vrot.slane %v6395_v51, 3  ;;  %v6002_v56 = vld [vmem:[%s6234_s29 + $0x2c] ss:$0 sps:$4 sm:$0x33]   ;;  %v4563_v60 = vcombine.low %v2495_v59, %v2496_v31  ;;  %v6487_v31 = vld [vmem:[%s6218_s17 + $0x1c] sm:$0xff]  }
  0x2d   : > { %5132 = vmatprep.mubr.msk.bf16.mxu0 %vm6115_vm1, %v6114_v2  ;;  %v6374_v43 = vsel %vm1509_vm7, %v2814_v37, %v2815_v36  ;;  %v2389_v54 = vsel %vm1076_vm6, %v2386_v41, %v2388_v50  ;;  %v2392_v58 = vrot.slane %v6002_v56, 2  ;;  %v2537_v62 = vrot.slane %v6351_v32, 2  ;;  %v6009_v36 = vld [vmem:[%s6234_s29 + $0x30] ss:$0 sps:$4 sm:$0x33]  }
  0x2e   : > { %v6410_v44 = vsel %vm1509_vm7, %v2819_v47, %v2821_v52  ;;  %v2536_v61 = vrot.slane %v4563_v60, 2  ;;  %v2539_v15 = vrot.slane %v6361_v34, 2  ;;  %v4474_v16 = vcombine.low %v1070_v11, %v6448_v3  ;;  %v4581_v56 = vld [vmem:[%s7392_s3 + $0x44] sm:$0xf] }
  0x2f   : > { %v1080_v27 = vrot.slane %v6469_v26, 2  ;;  %v2541_v14 = vrot.slane %v6371_v42, 2  ;;  %v824_v28 = vsel %vm474_vm0, %v4454_v25, 0  ;;  %v2655_v37 = vshrl.u32 %v4563_v60, 16  ;;  %v756_v59 = vld [vmem:[%s6218_s17 + $0x4] sm:$0xe] }
  0x30   : > { %v2538_v63 = vsel %vm1076_vm6, %v2536_v61, %v2537_v62  ;;  %v1077_v22 = vrot.slane %v4474_v16, 2  ;;  %v2658_v39 = vshll.u32 %v4563_v60, 16  ;;  %v2663_v41 = vshrl.u32 %v6351_v32, 16 }
  0x31   : > { %v2542_v30 = vsel %vm1076_vm6, %v2539_v15, %v2541_v14  ;;  %v2666_v45 = vshll.u32 %v6351_v32, 16  ;;  %v2657_v47 = vrot.slane %v2655_v37, 2  ;;  %v6537_v60 = vcombine.low %v756_v59, %v6448_v3 }
  0x32   : > { %4847 = vmatmul.mubr.msk.bf16.gmra.mrb[8].mxu1 %vm458_vm3, %v441_v0  ;;  %v800_v25 = vrot.slane %v6469_v26, 1 }
  0x33   : > { %4850 = vmatprep.mubr.msk.bf16.mxu1 %vm6115_vm1, %v6114_v2 }
  0x34   : > { %5133 = vmatmul.mubr.msk.bf16.gmra.mrb[8].mxu0 %vm458_vm3, %v2257_v21  ;;  %v1078_v21 = vrot.slane %v6444_v1, 2 }
  0x35   : > { %5146 = vmatprep.mubr.msk.bf16.mxu0 %vm6115_vm1, %v6114_v2 }
  0x36   : > { %v6463_v24 = vsel %vm1076_vm6, %v1077_v22, %v1078_v21  ;;  %v6478_v29 = vsel %vm1076_vm6, %v1078_v21, %v1080_v27  ;;  %v2690_v22 = vshrl.u32 %v6395_v51, 16 }
  0x3a   : > { %4851 = vmatmul.mubr.msk.bf16.gmra.mrb[12].mxu1 %vm458_vm3, %v449_v23  ;;  %v2540_v23 = vsel %vm1076_vm6, %v2537_v62, %v2539_v15  ;;  %v2684_v62 = vshll.u32 %v6371_v42, 16 }
  0x3b   : > { %4854 = vmatprep.mubr.msk.bf16.mxu1 %vm6115_vm1, %v6114_v2 }
  0x3c   : > { %5147 = vmatmul.mubr.msk.bf16.vlgmr.msra.gmra.mrb[0].mxu0 %vm458_vm3, %v2385_v18  ;;  %v1082_v18 = vrot.slane %v6487_v31, 2  ;;  %v2686_v11 = vrot.slane %v2684_v62, 3 }
  0x3d   : > { %5167 = vmatpush3.bf16.msra.mxu0 %v2563_v33  ;;  %5150 = vmatprep.mubr.msk.bf16.mxu0 %vm6115_vm1, %v6114_v2  ;;  %v2543_v33 = vrot.slane %v6395_v51, 2 }
  0x3e   : > { %5188 = vmatprep.subr.bf16.mxu0 %v6114_v2 }
  0x3f   : > { %v2544_v35 = vsel %vm1076_vm6, %v2541_v14, %v2543_v33  ;;  %v2692_v14 = vrot.slane %v2690_v22, 2 }
  0x42   : > { %4855 = vmatmul.mubr.msk.bf16.gmra.mrb[16].mxu1 %vm458_vm3, %v457_v38  ;;  %v2545_v38 = vrot.slane %v6009_v36, 2 }
  0x43   : > { %4860 = vmatprep.mubr.msk.bf16.mxu1 %vm6115_vm1, %v6114_v2 }
  0x44   : > { %5151 = vmatmul.mubr.msk.bf16.gmra.mrb[4].mxu0 %vm458_vm3, %v2387_v20  ;;  %v2546_v20 = vsel %vm1076_vm6, %v2543_v33, %v2545_v38  ;;  %v802_v38 = vrot.slane %v6487_v31, 1 }
  0x45   : > { %5154 = vmatprep.mubr.msk.bf16.mxu0 %vm6115_vm1, %v6114_v2 }
  0x4a   : > { %4861 = vmatmul.mubr.msk.bf16.vlgmr.msra.gmra.mrb[0].mxu1 %vm458_vm3, %v6226_v7  ;;  %v2390_v7 = vrot.slane %v6001_v53, 2  ;;  %v2668_v53 = vrot.slane %v2666_v45, 3 }
  0x4b   : > { %4864 = vmatprep.mubr.msk.bf16.mxu1 %vm6115_vm1, %v6114_v2  ;;  %4881 = vmatpush3.bf16.msra.mxu1 %v671_v48  ;;  %v2660_v48 = vrot.slane %v2658_v39, 3 }
  0x4c   : > { %4902 = vmatprep.subr.bf16.mxu1 %v6114_v2  ;;  %5155 = vmatmul.mubr.msk.bf16.gmra.mrb[8].mxu0 %vm458_vm3, %v2389_v54  ;;  %v2391_v57 = vsel %vm1076_vm6, %v2388_v50, %v2390_v7  ;;  %v2665_v50 = vrot.slane %v2663_v41, 2 }
  0x4d   : > { %5158 = vmatprep.mubr.msk.bf16.mxu0 %vm6115_vm1, %v6114_v2 }
  0x4e   : > { %v2669_v54 = vor.u32 %v2668_v53, %v2665_v50  ;;  %v6017_v53 = vld [vmem:[%s6218_s17 + $0x2c] ss:$0 sps:$4 sm:$0x11]  }
  0x52   : > { %4865 = vmatmul.mubr.msk.bf16.gmra.mrb[4].mxu1 %vm458_vm3, %v6229_v8  ;;  %v2393_v8 = vsel %vm1076_vm6, %v2390_v7, %v2392_v58  ;;  %v2675_v7 = vshll.u32 %v6361_v34, 16 }
  0x53   : > { %4868 = vmatprep.mubr.msk.bf16.mxu1 %vm6115_vm1, %v6114_v2 }
  0x54   : > { %5159 = vmatmul.mubr.msk.bf16.gmra.mrb[12].mxu0 %vm458_vm3, %v2391_v57  ;;  %v2677_v58 = vrot.slane %v2675_v7, 3  ;;  %v920_v7 = vshll.u32 %v6537_v60, 16 }
  0x55   : > { %5162 = vmatprep.mubr.msk.bf16.mxu0 %vm6115_vm1, %v6114_v2 }
  0x56   : > { %v922_v59 = vrot.slane %v920_v7, 2 }
  0x5a   : > { %4869 = vmatmul.mubr.msk.bf16.gmra.mrb[8].mxu1 %vm458_vm3, %v6237_v9  ;;  %v4574_v9 = vld [vmem:[%s7392_s3 + $0x40] sm:$0xf] }
  0x5b   : > { %4872 = vmatprep.mubr.msk.bf16.mxu1 %vm6115_vm1, %v6114_v2  ;;  %v2723_v0 = vsel %vm474_vm0, %v4574_v9, 0  ;;  %v797_v9 = vrot.slane %v6537_v60, 1 }
  0x5c   : > { %5163 = vmatmul.mubr.msk.bf16.gmra.mrb[16].mxu0 %vm458_vm3, %v2393_v8  ;;  %v2841_v8 = vsel %vm474_vm0, %v4581_v56, 0  ;;  %v925_v56 = vshrl.u32 %v6444_v1, 16 }
  0x5d   : > { %5168 = vmatprep.mubr.msk.bf16.mxu0 %vm6115_vm1, %v6114_v2 }
  0x62   : > { %4873 = vmatmul.mubr.msk.bf16.gmra.mrb[12].mxu1 %vm458_vm3, %v6275_v40  ;;  %v653_v40 = vrot.slane %v6329_v19, 1  ;;  %v2681_v19 = vshrl.u32 %v6371_v42, 16  ;;  %v4466_v42 = vld [vmem:[%s7392_s3 + $0x10] sm:$0xf] }
  0x63   : > { %4876 = vmatprep.mubr.msk.bf16.mxu1 %vm6115_vm1, %v6114_v2  ;;  %v985_v21 = vsel %vm474_vm0, %v4466_v42, 0 }
  0x64   : > { %5169 = vmatmul.mubr.msk.bf16.vlgmr.msra.gmra.mrb[0].mxu0 %vm458_vm3, %v2538_v63  ;;  %v798_v63 = vrot.slane %v6444_v1, 1  ;;  %v2683_v3 = vrot.slane %v2681_v19, 2  ;;  %v4473_v19 = vld [vmem:[%s7392_s3 + $0x14] sm:$0xf] }
  0x65   : > { %5189 = vmatpush3.bf16.msra.mxu0 %v2723_v0  ;;  %5172 = vmatprep.mubr.msk.bf16.mxu0 %vm6115_vm1, %v6114_v2 }
  0x66   : > { %5210 = vmatprep.subr.bf16.mxu0 %v6114_v2  ;;  %v799_v15 = vsel %vm643_vm5, %v797_v9, %v798_v63  ;;  %v2687_v16 = vor.u32 %v2686_v11, %v2683_v3  ;;  %v801_v33 = vsel %vm643_vm5, %v798_v63, %v800_v25  ;;  %v943_v3 = vshrl.u32 %v6487_v31, 16 }
  0x68   : > { %v945_v42 = vrot.slane %v943_v3, 1 }
  0x6a   : > { %4877 = vmatmul.mubr.msk.bf16.gmra.mrb[16].mxu1 %vm458_vm3, %v6297_v55 }
  0x6b   : > { %4882 = vmatprep.mubr.msk.bf16.mxu1 %vm6115_vm1, %v6114_v2 }
  0x6c   : > { %5173 = vmatmul.mubr.msk.bf16.gmra.mrb[4].mxu0 %vm458_vm3, %v2540_v23  ;;  %v2693_v23 = vshll.u32 %v6395_v51, 16 }
  0x6d   : > { %5176 = vmatprep.mubr.msk.bf16.mxu0 %vm6115_vm1, %v6114_v2 }
  0x72   : > { %4883 = vmatmul.mubr.msk.bf16.vlgmr.msra.gmra.mrb[0].mxu1 %vm458_vm3, %v6318_v12  ;;  %v6497_v12 = vsel %vm1076_vm6, %v1080_v27, %v1082_v18 }
  0x73   : > { %4886 = vmatprep.mubr.msk.bf16.mxu1 %vm6115_vm1, %v6114_v2  ;;  %4903 = vmatpush3.bf16.msra.mxu1 %v824_v28  ;;  %v2695_v28 = vrot.slane %v2693_v23, 3 }
  0x74   : > { %4924 = vmatprep.subr.bf16.mxu1 %v6114_v2  ;;  %5177 = vmatmul.mubr.msk.bf16.gmra.mrb[8].mxu0 %vm458_vm3, %v2542_v30  ;;  %v6566_v30 = vld [vmem:[%s6234_s29 + $0x30] ss:$0 sps:$4 sm:$0x77]  }
  0x75   : > { %5180 = vmatprep.mubr.msk.bf16.mxu0 %vm6115_vm1, %v6114_v2  ;;  %v2699_v36 = vshrl.u32 %v6566_v30, 16  ;;  %v2702_v37 = vshll.u32 %v6566_v30, 16 }
  0x77   : > { %v2701_v41 = vrot.slane %v2699_v36, 2  ;;  %v2704_v45 = vrot.slane %v2702_v37, 3 }
  0x7a   : > { %4887 = vmatmul.mubr.msk.bf16.gmra.mrb[4].mxu1 %vm458_vm3, %v6314_v10  ;;  %v651_v10 = vrot.slane %v6297_v55, 1  ;;  %v2672_v55 = vshrl.u32 %v6361_v34, 16 }
  0x7b   : > { %4890 = vmatprep.mubr.msk.bf16.mxu1 %vm6115_vm1, %v6114_v2 }
  0x7c   : > { %5181 = vmatmul.mubr.msk.bf16.gmra.mrb[12].mxu0 %vm458_vm3, %v2544_v35  ;;  %v652_v32 = vsel %vm643_vm5, %v649_v5, %v651_v10  ;;  %v2674_v57 = vrot.slane %v2672_v55, 2  ;;  %v654_v34 = vsel %vm643_vm5, %v651_v10, %v653_v40  ;;  %v2696_v35 = vor.u32 %v2695_v28, %v2692_v14 }
  0x7d   : > { %5184 = vmatprep.mubr.msk.bf16.mxu0 %vm6115_vm1, %v6114_v2  ;;  %v803_v10 = vsel %vm643_vm5, %v800_v25, %v802_v38  ;;  %v917_v55 = vshrl.u32 %v6537_v60, 16  ;;  %v928_v40 = vshll.u32 %v6444_v1, 16  ;;  %v2823_v14 = vrot.slane %v6566_v30, 3 }
  0x7e   : > { %v2678_v61 = vor.u32 %v2677_v58, %v2674_v57  ;;  %v2697_v39 = vsel %vm1348_vm8, %v2687_v16, %v2696_v35 }
  0x7f   : > { %v919_v58 = vrot.slane %v917_v55, 1  ;;  %v6024_v55 = vld [vmem:[%s6356_s19 + $0x20] sm:$0xff]  }
  0x80   : > { %v2679_v0 = vsel %vm1348_vm8, %v2669_v54, %v2678_v61  ;;  %v2688_v27 = vsel %vm1348_vm8, %v2678_v61, %v2687_v16  ;;  %v934_v61 = vshrl.u32 %v6469_v26, 16 }
  0x81   : > { %v923_v1 = vor.u32 %v922_v59, %v919_v58  ;;  %v6728_v58 = vld [vmem:[%s6356_s19 + $0x10] sm:$0xff]  }
  0x82   : > { %4891 = vmatmul.mubr.msk.bf16.gmra.mrb[8].mxu1 %vm458_vm3, %v6323_v13  ;;  %v2661_v13 = vor.u32 %v2660_v48, %v2657_v47  ;;  %v6583_v47 = vld [vmem:[%s6218_s17 + $0x24] sm:$0xff]   ;;  %v936_v9 = vrot.slane %v934_v61, 1 }
  0x83   : > { %4894 = vmatprep.mubr.msk.bf16.mxu1 %vm6115_vm1, %v6114_v2  ;;  %v804_v48 = vrot.slane %v6583_v47, 1  ;;  %v955_v22 = vshll.u32 %v6583_v47, 16 }
  0x84   : > { %5185 = vmatmul.mubr.msk.bf16.gmra.mrb[16].mxu0 %vm458_vm3, %v2546_v20  ;;  %v2670_v5 = vsel %vm1348_vm8, %v2661_v13, %v2669_v54  ;;  %v2705_v20 = vor.u32 %v2704_v45, %v2701_v41  ;;  %v4588_v13 = vld [vmem:[%s7392_s3 + $0x48] sm:$0xf]  ;;  %v806_v54 = vrot.slane %v6017_v53, 1  ;;  %v6700_v53 = vld [vmem:[%s6356_s19 + $0x4] sm:$0xf] }
  0x85   : > { %5190 = vmatprep.mubr.msk.bf16.mxu0 %vm6115_vm1, %v6114_v2  ;;  %v957_v25 = vrot.slane %v955_v22, 2  ;;  %v6020_v45 = vld [vmem:[%s6356_s19 + $0x8] sm:$0xff]  }
  0x86   : > { %v2706_v50 = vsel %vm1348_vm8, %v2696_v35, %v2705_v20  ;;  %v807_v57 = vsel %vm643_vm5, %v804_v48, %v806_v54  ;;  %v2824_v35 = vsel %vm1509_vm7, %v2821_v52, %v2823_v14 }
  0x8a   : > { %4895 = vmatmul.mubr.msk.bf16.gmra.mrb[12].mxu1 %vm458_vm3, %v652_v32  ;;  %v805_v32 = vsel %vm643_vm5, %v802_v38, %v804_v48  ;;  %v4599_v38 = vld [vmem:[%s7392_s3 + $0x4c] sm:$0xf]  ;;  %v6022_v48 = vld [vmem:[%s6356_s19 + $0x10] sm:$0xff]  }
  0x8b   : > { %4898 = vmatprep.mubr.msk.bf16.mxu1 %vm6115_vm1, %v6114_v2  ;;  %v3165_v52 = vsel %vm474_vm0, %v4599_v38, 0 }
  0x8c   : > { %5191 = vmatmul.mubr.msk.bf16.vlgmr.msra.gmra.mrb[0].mxu0 %vm458_vm3, %v2670_v5  ;;  %v2979_v5 = vsel %vm474_vm0, %v4588_v13, 0  ;;  %v6712_v13 = vld [vmem:[%s6356_s19 + $0x8] sm:$0xff]  }
  0x8d   : > { %5211 = vmatpush3.bf16.msra.mxu0 %v2841_v8  ;;  %5194 = vmatprep.mubr.msk.bf16.mxu0 %vm6115_vm1, %v6114_v2  ;;  %v927_v8 = vrot.slane %v925_v56, 1  ;;  %v3117_v59 = vshrl.u32 %v6712_v13, 16 }
  0x8e   : > { %5232 = vmatprep.subr.bf16.mxu0 %v6114_v2 }
  0x92   : > { %4899 = vmatmul.mubr.msk.bf16.gmra.mrb[16].mxu1 %vm458_vm3, %v654_v34  ;;  %v930_v34 = vrot.slane %v928_v40, 2  ;;  %v3113_v40 = vshll.u32 %v6712_v13, 16 }
  0x93   : > { %4904 = vmatprep.mubr.msk.bf16.mxu1 %vm6115_vm1, %v6114_v2 }
  0x94   : > { %5195 = vmatmul.mubr.msk.bf16.gmra.mrb[4].mxu0 %vm458_vm3, %v2679_v0  ;;  %v931_v60 = vor.u32 %v930_v34, %v927_v8  ;;  %v1104_v0 = vsel %vm474_vm0, %v4473_v19, 0  ;;  %v3121_v8 = vshll.u32 %v6728_v58, 16  ;;  %v1189_v34 = vld [vmem:[%s6218_s17 + $0x8] sm:$0xc]  ;;  %v6751_v19 = vld [vmem:[%s6218_s17 + $0x10] sm:$0xff]  }
  0x95   : > { %5198 = vmatprep.mubr.msk.bf16.mxu0 %vm6115_vm1, %v6114_v2 }
  0x96   : > { %v932_v62 = vsel %vm915_vm4, %v923_v1, %v931_v60  ;;  %v6742_v1 = vld [vmem:[%s6218_s17 + $0xc] sm:$0xf] }
  0x9a   : > { %4905 = vmatmul.mubr.msk.bf16.vlgmr.msra.gmra.mrb[0].mxu1 %vm458_vm3, %v799_v15 }
  0x9b   : > { %4908 = vmatprep.mubr.msk.bf16.mxu1 %vm6115_vm1, %v6114_v2  ;;  %4925 = vmatpush3.bf16.msra.mxu1 %v985_v21  ;;  %v952_v21 = vshrl.u32 %v6583_v47, 16 }
  0x9c   : > { %4946 = vmatprep.subr.bf16.mxu1 %v6114_v2  ;;  %5199 = vmatmul.mubr.msk.bf16.gmra.mrb[8].mxu0 %vm458_vm3, %v2688_v27  ;;  %v6648_v27 = vld [vmem:[%s6218_s17 + $0x2c] ss:$0 sps:$4 sm:$0x33]  }
  0x9d   : > { %5202 = vmatprep.mubr.msk.bf16.mxu0 %vm6115_vm1, %v6114_v2  ;;  %v954_v23 = vrot.slane %v952_v21, 1 }
  0x9f   : > { %v958_v28 = vor.u32 %v957_v25, %v954_v23  ;;  %v6779_v23 = vld [vmem:[%s6356_s19 + $0x20] sm:$0xff]  }
  0xa2   : > { %4909 = vmatmul.mubr.msk.bf16.gmra.mrb[4].mxu1 %vm458_vm3, %v801_v33  ;;  %v964_v33 = vshll.u32 %v6648_v27, 16 }
  0xa3   : > { %4912 = vmatprep.mubr.msk.bf16.mxu1 %vm6115_vm1, %v6114_v2 }
  0xa4   : > { %5203 = vmatmul.mubr.msk.bf16.gmra.mrb[12].mxu0 %vm458_vm3, %v2697_v39  ;;  %v966_v37 = vrot.slane %v964_v33, 2  ;;  %v6018_v39 = vld [vmem:[%s6356_s19] sm:$0xff]  }
  0xa5   : > { %5206 = vmatprep.mubr.msk.bf16.mxu0 %vm6115_vm1, %v6114_v2  ;;  %v6792_v33 = vld [vmem:[%s6218_s17 + $0x20] sm:$0xff]  }
  0xaa   : > { %4913 = vmatmul.mubr.msk.bf16.gmra.mrb[8].mxu1 %vm458_vm3, %v803_v10  ;;  %v4480_v10 = vld [vmem:[%s7392_s3 + $0x18] sm:$0xf] }
  0xab   : > { %4916 = vmatprep.mubr.msk.bf16.mxu1 %vm6115_vm1, %v6114_v2  ;;  %v1257_v20 = vsel %vm474_vm0, %v4480_v10, 0 }
  0xac   : > { %5207 = vmatmul.mubr.msk.bf16.gmra.mrb[16].mxu0 %vm458_vm3, %v2706_v50  ;;  %v3064_v50 = vld [vmem:[%s6356_s19] sm:$0xf] }
  0xad   : > { %5212 = vmatprep.mubr.msk.bf16.mxu0 %vm6115_vm1, %v6114_v2 }
  0xb2   : > { %4917 = vmatmul.mubr.msk.bf16.gmra.mrb[12].mxu1 %vm458_vm3, %v805_v32  ;;  %v4600_v32 = vcombine.low %v3064_v50, %v6700_v53 }
  0xb3   : > { %4920 = vmatprep.mubr.msk.bf16.mxu1 %vm6115_vm1, %v6114_v2 }
  0xb4   : > { %5213 = vmatmul.mubr.msk.bf16.vlgmr.msra.gmra.mrb[0].mxu0 %vm458_vm3, %v6374_v43  ;;  %v937_v43 = vshll.u32 %v6469_v26, 16  ;;  %v3108_v54 = vshll.u32 %v4600_v32, 16  ;;  %v3106_v7 = vshrl.u32 %v4600_v32, 16  ;;  %v6037_v32 = vld [vmem:[%s6218_s17 + $0x30] ss:$0 sps:$4 sm:$0x33]  }
  0xb5   : > { %5233 = vmatpush3.bf16.msra.mxu0 %v2979_v5  ;;  %5216 = vmatprep.mubr.msk.bf16.mxu0 %vm6115_vm1, %v6114_v2 }
  0xb6   : > { %5254 = vmatprep.subr.bf16.mxu0 %v6114_v2  ;;  %v939_v63 = vrot.slane %v937_v43, 2  ;;  %v3110_v56 = vrot.slane %v3108_v54, 1  ;;  %v6748_v43 = vcombine.low %v1189_v34, %v6742_v1  ;;  %v3259_v34 = vrot.slane %v6728_v58, 1 }
  0xb8   : > { %v940_v26 = vor.u32 %v939_v63, %v936_v9  ;;  %v3123_v9 = vrot.slane %v3121_v8, 1  ;;  %v6756_v63 = vld [vmem:[%s6356_s19 + $0x18] sm:$0xff]  }
  0xb9   : > { %v3133_v14 = vshrl.u32 %v6756_v63, 16 }
  0xba   : > { %4921 = vmatmul.mubr.msk.bf16.gmra.mrb[16].mxu1 %vm458_vm3, %v807_v57  ;;  %v941_v11 = vsel %vm915_vm4, %v931_v60, %v940_v26  ;;  %v3115_v57 = vrot.slane %v3113_v40, 1  ;;  %v1353_v40 = vshll.u32 %v6748_v43, 16 }
  0xbb   : > { %4926 = vmatprep.mubr.msk.bf16.mxu1 %vm6115_vm1, %v6114_v2 }
  0xbc   : > { %5217 = vmatmul.mubr.msk.bf16.gmra.mrb[4].mxu0 %vm458_vm3, %v6381_v46  ;;  %v946_v46 = vshll.u32 %v6487_v31, 16  ;;  %v1086_v31 = vrot.slane %v6648_v27, 2 }
  0xbd   : > { %5220 = vmatprep.mubr.msk.bf16.mxu0 %vm6115_vm1, %v6114_v2 }
  0xbe   : > { %v948_v15 = vrot.slane %v946_v46, 2  ;;  %v3125_v46 = vshrl.u32 %v6728_v58, 16 }
  0xc0   : > { %v949_v16 = vor.u32 %v948_v15, %v945_v42  ;;  %v4492_v42 = vld [vmem:[%s7392_s3 + $0x1c] sm:$0xf]  ;;  %v3127_v21 = vor.u32 %v3125_v46, %v3123_v9  ;;  %v3261_v46 = vrot.slane %v6756_v63, 1 }
  0xc2   : > { %4927 = vmatmul.mubr.msk.bf16.vlgmr.msra.gmra.mrb[0].mxu1 %vm458_vm3, %v932_v62  ;;  %v959_v36 = vsel %vm915_vm4, %v949_v16, %v958_v28  ;;  %v3119_v62 = vor.u32 %v3117_v59, %v3115_v57 }
  0xc3   : > { %4930 = vmatprep.mubr.msk.bf16.mxu1 %vm6115_vm1, %v6114_v2  ;;  %4947 = vmatpush3.bf16.msra.mxu1 %v1104_v0  ;;  %v1230_v0 = vrot.slane %v6748_v43, 2 }
  0xc4   : > { %4968 = vmatprep.subr.bf16.mxu1 %v6114_v2  ;;  %5221 = vmatmul.mubr.msk.bf16.gmra.mrb[8].mxu0 %vm458_vm3, %v6390_v49  ;;  %v950_v49 = vsel %vm915_vm4, %v940_v26, %v949_v16  ;;  %v1231_v26 = vrot.slane %v6751_v19, 2  ;;  %v3124_v3 = vsel %vm413_vm2, %v3119_v62, %v3123_v9  ;;  %v6773_v16 = vld [vmem:[%s6218_s17 + $0x18] sm:$0xff]  }
  0xc5   : > { %5224 = vmatprep.mubr.msk.bf16.mxu0 %vm6115_vm1, %v6114_v2  ;;  %v1233_v25 = vrot.slane %v6773_v16, 2  ;;  %v1370_v62 = vshll.u32 %v6773_v16, 16 }
  0xc6   : > { %v1232_v15 = vsel %vm1076_vm6, %v1230_v0, %v1231_v26  ;;  %v4499_v0 = vld [vmem:[%s7392_s3 + $0x20] sm:$0xf] }
  0xca   : > { %4931 = vmatmul.mubr.msk.bf16.gmra.mrb[4].mxu1 %vm458_vm3, %v941_v11  ;;  %v3129_v11 = vshll.u32 %v6756_v63, 16 }
  0xcb   : > { %4934 = vmatprep.mubr.msk.bf16.mxu1 %vm6115_vm1, %v6114_v2 }
  0xcc   : > { %5225 = vmatmul.mubr.msk.bf16.gmra.mrb[12].mxu0 %vm458_vm3, %v6410_v44  ;;  %v961_v44 = vshrl.u32 %v6648_v27, 16  ;;  %v3131_v22 = vrot.slane %v3129_v11, 1  ;;  %v1537_v11 = vsel %vm474_vm0, %v4499_v0, 0 }
  0xcd   : > { %5228 = vmatprep.mubr.msk.bf16.mxu0 %vm6115_vm1, %v6114_v2 }
  0xce   : > { %v963_v30 = vrot.slane %v961_v44, 1  ;;  %v3132_v27 = vsel %vm413_vm2, %v3127_v21, %v3131_v22  ;;  %v1234_v44 = vsel %vm1076_vm6, %v1231_v26, %v1233_v25  ;;  %v1379_v21 = vshll.u32 %v6792_v33, 16 }
  0xd0   : > { %v967_v51 = vor.u32 %v966_v37, %v963_v30  ;;  %v6797_v30 = vld [vmem:[%s6356_s19 + $0x28] ss:$0 sps:$4 sm:$0x11]   ;;  %v1235_v37 = vrot.slane %v6792_v33, 2 }
  0xd2   : > { %4935 = vmatmul.mubr.msk.bf16.gmra.mrb[8].mxu1 %vm458_vm3, %v950_v49  ;;  %v968_v41 = vsel %vm915_vm4, %v958_v28, %v967_v51  ;;  %v1418_v49 = vsel %vm474_vm0, %v4492_v42, 0  ;;  %v3137_v28 = vshll.u32 %v6779_v23, 16  ;;  %v3145_v51 = vshll.u32 %v6797_v30, 16 }
  0xd3   : > { %4938 = vmatprep.mubr.msk.bf16.mxu1 %vm6115_vm1, %v6114_v2 }
  0xd4   : > { %5229 = vmatmul.mubr.msk.bf16.gmra.mrb[16].mxu0 %vm458_vm3, %v2824_v35  ;;  %v3135_v35 = vor.u32 %v3133_v14, %v3131_v22  ;;  %v3147_v10 = vrot.slane %v3145_v51, 1  ;;  %v3262_v22 = vsel %vm643_vm5, %v3259_v34, %v3261_v46  ;;  %v3368_v51 = vld [vmem:[%s6356_s19 + $0x4] sm:$0xe] }
  0xd5   : > { %5234 = vmatprep.mubr.msk.bf16.mxu0 %vm6115_vm1, %v6114_v2 }
  0xda   : > { %4939 = vmatmul.mubr.msk.bf16.gmra.mrb[12].mxu1 %vm458_vm3, %v959_v36  ;;  %v3139_v36 = vrot.slane %v3137_v28, 1 }
  0xdb   : > { %4942 = vmatprep.mubr.msk.bf16.mxu1 %vm6115_vm1, %v6114_v2 }
  0xdc   : > { %5235 = vmatmul.mubr.msk.bf16.vlgmr.msra.gmra.mrb[0].mxu0 %vm458_vm3, %v6018_v39  ;;  %v3140_v38 = vsel %vm413_vm2, %v3135_v35, %v3139_v36  ;;  %v3141_v39 = vshrl.u32 %v6779_v23, 16 }
  0xdd   : > { %5255 = vmatpush3.bf16.msra.mxu0 %v3165_v52  ;;  %5238 = vmatprep.mubr.msk.bf16.mxu0 %vm6115_vm1, %v6114_v2  ;;  %v1236_v52 = vsel %vm1076_vm6, %v1233_v25, %v1235_v37  ;;  %v1381_v25 = vrot.slane %v1379_v21, 3 }
  0xde   : > { %5276 = vmatprep.subr.bf16.mxu0 %v6114_v2 }
  0xe2   : > { %4943 = vmatmul.mubr.msk.bf16.gmra.mrb[16].mxu1 %vm458_vm3, %v968_v41  ;;  %v6809_v41 = vld [vmem:[%s6218_s17 + $0x28] sm:$0xff]  }
  0xe3   : > { %4948 = vmatprep.mubr.msk.bf16.mxu1 %vm6115_vm1, %v6114_v2  ;;  %v1385_v28 = vshrl.u32 %v6809_v41, 16 }
  0xe4   : > { %5239 = vmatmul.mubr.msk.bf16.gmra.mrb[4].mxu0 %vm458_vm3, %v6020_v45  ;;  %v3143_v45 = vor.u32 %v3141_v39, %v3139_v36  ;;  %v3265_v39 = vrot.slane %v6797_v30, 1  ;;  %v6899_v30 = vld [vmem:[%s6356_s19 + $0xc] sm:$0xff]  }
  0xe5   : > { %5242 = vmatprep.mubr.msk.bf16.mxu0 %vm6115_vm1, %v6114_v2  ;;  %v3539_v21 = vshll.u32 %v6899_v30, 16 }
  0xe6   : > { %v3148_v50 = vsel %vm413_vm2, %v3143_v45, %v3147_v10 }
  0xea   : > { %4949 = vmatmul.mubr.msk.bf16.vlgmr.msra.gmra.mrb[0].mxu1 %vm458_vm3, %v6463_v24  ;;  %v6023_v24 = vld [vmem:[%s6356_s19 + $0x18] sm:$0xff]  }
  0xeb   : > { %4952 = vmatprep.mubr.msk.bf16.mxu1 %vm6115_vm1, %v6114_v2  ;;  %4969 = vmatpush3.bf16.msra.mxu1 %v1257_v20  ;;  %v3250_v20 = vld [vmem:[%s6356_s19] sm:$0xe] }
  0xec   : > { %4990 = vmatprep.subr.bf16.mxu1 %v6114_v2  ;;  %5243 = vmatmul.mubr.msk.bf16.gmra.mrb[8].mxu0 %vm458_vm3, %v6022_v48  ;;  %v1237_v48 = vrot.slane %v6809_v41, 2 }
  0xed   : > { %5246 = vmatprep.mubr.msk.bf16.mxu0 %vm6115_vm1, %v6114_v2 }
  0xee   : > { %v1238_v54 = vsel %vm1076_vm6, %v1235_v37, %v1237_v48  ;;  %v1387_v37 = vrot.slane %v1385_v28, 2 }
  0xf2   : > { %4953 = vmatmul.mubr.msk.bf16.gmra.mrb[4].mxu1 %vm458_vm3, %v6478_v29  ;;  %v1084_v29 = vrot.slane %v6583_v47, 2  ;;  %v4611_v47 = vld [vmem:[%s7392_s3 + $0x50] sm:$0xf] }
  0xf3   : > { %4956 = vmatprep.mubr.msk.bf16.mxu1 %vm6115_vm1, %v6114_v2  ;;  %v3283_v60 = vsel %vm474_vm0, %v4611_v47, 0 }
  0xf4   : > { %5247 = vmatmul.mubr.msk.bf16.gmra.mrb[12].mxu0 %vm458_vm3, %v6023_v24  ;;  %v1085_v5 = vsel %vm1076_vm6, %v1082_v18, %v1084_v29  ;;  %v1087_v61 = vsel %vm1076_vm6, %v1084_v29, %v1086_v31  ;;  %v4612_v24 = vcombine.low %v3250_v20, %v6700_v53  ;;  %v3257_v29 = vrot.slane %v6712_v13, 1 }
  0xf5   : > { %5250 = vmatprep.mubr.msk.bf16.mxu0 %vm6115_vm1, %v6114_v2  ;;  %v1350_v53 = vshrl.u32 %v6748_v43, 16  ;;  %v1367_v43 = vshrl.u32 %v6773_v16, 16 }
  0xf6   : > { %v3260_v9 = vsel %vm643_vm5, %v3257_v29, %v3259_v34 }
  0xf7   : > { %v1352_v31 = vrot.slane %v1350_v53, 2  ;;  %v1369_v26 = vrot.slane %v1367_v43, 2 }
  0xfa   : > { %4957 = vmatmul.mubr.msk.bf16.gmra.mrb[8].mxu1 %vm458_vm3, %v6497_v12  ;;  %v3111_v12 = vor.u32 %v3110_v56, %v3106_v7  ;;  %v4618_v7 = vld [vmem:[%s7392_s3 + $0x54] sm:$0xf]  ;;  %v1239_v56 = vrot.slane %v6037_v32, 2 }
  0xfb   : > { %4960 = vmatprep.mubr.msk.bf16.mxu1 %vm6115_vm1, %v6114_v2 }
  0xfc   : > { %5251 = vmatmul.mubr.msk.bf16.gmra.mrb[16].mxu0 %vm458_vm3, %v6024_v55  ;;  %v3116_v18 = vsel %vm413_vm2, %v3111_v12, %v3115_v57  ;;  %v3256_v55 = vrot.slane %v4612_v24, 1  ;;  %v1361_v12 = vshll.u32 %v6751_v19, 16  ;;  %v3436_v57 = vsel %vm474_vm0, %v4618_v7, 0  ;;  %v4630_v7 = vld [vmem:[%s7392_s3 + $0x58] sm:$0xf] }
  0xfd   : > { %5256 = vmatprep.mubr.msk.bf16.mxu0 %vm6115_vm1, %v6114_v2  ;;  %v1240_v47 = vsel %vm1076_vm6, %v1237_v48, %v1239_v56 }
  0xfe   : > { %v3258_v13 = vsel %vm643_vm5, %v3256_v55, %v3257_v29  ;;  %v1363_v8 = vrot.slane %v1361_v12, 3  ;;  %v3410_v29 = vrot.slane %v6899_v30, 1  ;;  %v3596_v12 = vsel %vm474_vm0, %v4630_v7, 0 }
 0x102   : > { %4961 = vmatmul.mubr.msk.bf16.gmra.mrb[12].mxu1 %vm458_vm3, %v1085_v5  ;;  %v1358_v5 = vshrl.u32 %v6751_v19, 16 }
 0x103   : > { %4964 = vmatprep.mubr.msk.bf16.mxu1 %vm6115_vm1, %v6114_v2 }
 0x104   : > { %5257 = vmatmul.mubr.msk.bf16.vlgmr.msra.gmra.mrb[0].mxu0 %vm458_vm3, %v3116_v18  ;;  %v1355_v18 = vrot.slane %v1353_v40, 3  ;;  %v1360_v59 = vrot.slane %v1358_v5, 2  ;;  %v6915_v40 = vld [vmem:[%s6356_s19 + $0x14] sm:$0xff]   ;;  %v1503_v5 = vld [vmem:[%s6218_s17 + $0x8] sm:$0x8] }
 0x105   : > { %5277 = vmatpush3.bf16.msra.mxu0 %v3283_v60  ;;  %5260 = vmatprep.mubr.msk.bf16.mxu0 %vm6115_vm1, %v6114_v2 }
 0x106   : > { %5298 = vmatprep.subr.bf16.mxu0 %v6114_v2  ;;  %v1356_v60 = vor.u32 %v1355_v18, %v1352_v31  ;;  %v1511_v18 = vrot.slane %v6751_v19, 3 }
 0x10a   : > { %4965 = vmatmul.mubr.msk.bf16.gmra.mrb[16].mxu1 %vm458_vm3, %v1087_v61  ;;  %v1364_v61 = vor.u32 %v1363_v8, %v1360_v59  ;;  %v4506_v8 = vld [vmem:[%s7392_s3 + $0x24] sm:$0xf] }
 0x10b   : > { %4970 = vmatprep.mubr.msk.bf16.mxu1 %vm6115_vm1, %v6114_v2  ;;  %v1675_v19 = vsel %vm474_vm0, %v4506_v8, 0 }
 0x10c   : > { %5261 = vmatmul.mubr.msk.bf16.gmra.mrb[4].mxu0 %vm458_vm3, %v3124_v3  ;;  %v1365_v58 = vsel %vm1348_vm8, %v1356_v60, %v1364_v61  ;;  %v1372_v3 = vrot.slane %v1370_v62, 3  ;;  %v6949_v62 = vld [vmem:[%s6356_s19 + $0x24] sm:$0xff]  }
 0x10d   : > { %5264 = vmatprep.mubr.msk.bf16.mxu0 %vm6115_vm1, %v6114_v2  ;;  %v3416_v0 = vrot.slane %v6949_v62, 1 }
 0x10e   : > { %v1373_v42 = vor.u32 %v1372_v3, %v1369_v26 }
 0x110   : > { %v1374_v63 = vsel %vm1348_vm8, %v1364_v61, %v1373_v42  ;;  %v1513_v61 = vrot.slane %v6773_v16, 3  ;;  %v1515_v16 = vrot.slane %v6792_v33, 3 }
 0x112   : > { %4971 = vmatmul.mubr.msk.bf16.vlgmr.msra.gmra.mrb[0].mxu1 %vm458_vm3, %v1232_v15  ;;  %v1376_v15 = vshrl.u32 %v6792_v33, 16  ;;  %v1516_v3 = vsel %vm1509_vm7, %v1513_v61, %v1515_v16 }
 0x113   : > { %4974 = vmatprep.mubr.msk.bf16.mxu1 %vm6115_vm1, %v6114_v2  ;;  %4991 = vmatpush3.bf16.msra.mxu1 %v1418_v49 }
 0x114   : > { %5012 = vmatprep.subr.bf16.mxu1 %v6114_v2  ;;  %5265 = vmatmul.mubr.msk.bf16.gmra.mrb[8].mxu0 %vm458_vm3, %v3132_v27  ;;  %v1378_v49 = vrot.slane %v1376_v15, 2  ;;  %v3263_v27 = vrot.slane %v6779_v23, 1  ;;  %v6880_v23 = vld [vmem:[%s6218_s17 + $0x30] ss:$0 sps:$4 sm:$0x77]   ;;  %v3536_v15 = vshrl.u32 %v6899_v30, 16 }
 0x115   : > { %5268 = vmatprep.mubr.msk.bf16.mxu0 %vm6115_vm1, %v6114_v2  ;;  %v1394_v10 = vshrl.u32 %v6880_v23, 16  ;;  %v1397_v20 = vshll.u32 %v6880_v23, 16 }
 0x116   : > { %v1382_v14 = vor.u32 %v1381_v25, %v1378_v49  ;;  %v3264_v35 = vsel %vm643_vm5, %v3261_v46, %v3263_v27  ;;  %v3266_v48 = vsel %vm643_vm5, %v3263_v27, %v3265_v39  ;;  %v3538_v25 = vrot.slane %v3536_v15, 1 }
 0x117   : > { %v1396_v32 = vrot.slane %v1394_v10, 2  ;;  %v3541_v27 = vrot.slane %v3539_v21, 2 }
 0x118   : > { %v1383_v36 = vsel %vm1348_vm8, %v1373_v42, %v1382_v14 }
 0x11a   : > { %4975 = vmatmul.mubr.msk.bf16.gmra.mrb[4].mxu1 %vm458_vm3, %v1234_v44  ;;  %v1388_v44 = vshll.u32 %v6809_v41, 16 }
 0x11b   : > { %4978 = vmatprep.mubr.msk.bf16.mxu1 %vm6115_vm1, %v6114_v2 }
 0x11c   : > { %5269 = vmatmul.mubr.msk.bf16.gmra.mrb[12].mxu0 %vm458_vm3, %v3140_v38  ;;  %v1390_v38 = vrot.slane %v1388_v44, 3  ;;  %v3542_v44 = vor.u32 %v3541_v27, %v3538_v25  ;;  %v3690_v25 = vrot.slane %v6915_v40, 2 }
 0x11d   : > { %5272 = vmatprep.mubr.msk.bf16.mxu0 %vm6115_vm1, %v6114_v2 }
 0x11e   : > { %v1391_v45 = vor.u32 %v1390_v38, %v1387_v37  ;;  %v1519_v37 = vrot.slane %v6880_v23, 3 }
 0x120   : > { %v1392_v24 = vsel %vm1348_vm8, %v1382_v14, %v1391_v45 }
 0x122   : > { %4979 = vmatmul.mubr.msk.bf16.gmra.mrb[8].mxu1 %vm458_vm3, %v1236_v52  ;;  %v6887_v52 = vld [vmem:[%s6356_s19 + $0x8] sm:$0xf] }
 0x123   : > { %4982 = vmatprep.mubr.msk.bf16.mxu1 %vm6115_vm1, %v6114_v2 }
 0x124   : > { %5273 = vmatmul.mubr.msk.bf16.gmra.mrb[16].mxu0 %vm458_vm3, %v3148_v50  ;;  %v6896_v50 = vcombine.low %v3368_v51, %v6887_v52 }
 0x125   : > { %5278 = vmatprep.mubr.msk.bf16.mxu0 %vm6115_vm1, %v6114_v2 }
 0x126   : > { %v3409_v55 = vrot.slane %v6896_v50, 1  ;;  %v3531_v42 = vshll.u32 %v6896_v50, 16 }
 0x128   : > { %v3411_v53 = vsel %vm643_vm5, %v3409_v55, %v3410_v29  ;;  %v3533_v49 = vrot.slane %v3531_v42, 2  ;;  %v6046_v55 = vld [vmem:[%s6234_s29] sm:$0xff]   ;;  %v7057_v42 = vld [vmem:[%s6234_s29 + $0x8] sm:$0xff]  }
 0x12a   : > { %4983 = vmatmul.mubr.msk.bf16.gmra.mrb[12].mxu1 %vm458_vm3, %v1238_v54  ;;  %v1399_v54 = vrot.slane %v1397_v20, 3 }
 0x12b   : > { %4986 = vmatprep.mubr.msk.bf16.mxu1 %vm6115_vm1, %v6114_v2 }
 0x12c   : > { %5279 = vmatmul.mubr.msk.bf16.vlgmr.msra.gmra.mrb[0].mxu0 %vm458_vm3, %v3258_v13  ;;  %v1400_v56 = vor.u32 %v1399_v54, %v1396_v32  ;;  %v4517_v54 = vld [vmem:[%s7392_s3 + $0x28] sm:$0xf] }
 0x12d   : > { %5299 = vmatpush3.bf16.msra.mxu0 %v3436_v57  ;;  %5282 = vmatprep.mubr.msk.bf16.mxu0 %vm6115_vm1, %v6114_v2  ;;  %v4500_v57 = vcombine.low %v1503_v5, %v6742_v1  ;;  %v6932_v1 = vld [vmem:[%s6356_s19 + $0x1c] sm:$0xff]   ;;  %v1861_v7 = vsel %vm474_vm0, %v4517_v54, 0 }
 0x12e   : > { %5320 = vmatprep.subr.bf16.mxu0 %v6114_v2  ;;  %v1401_v13 = vsel %vm1348_vm8, %v1391_v45, %v1400_v56  ;;  %v3414_v60 = vrot.slane %v6932_v1, 1  ;;  %v3557_v23 = vshll.u32 %v6932_v1, 16  ;;  %v3563_v56 = vshrl.u32 %v6949_v62, 16 }
 0x12f   : > { %v1510_v31 = vrot.slane %v4500_v57, 3  ;;  %v7017_v57 = vld [vmem:[%s6356_s19 + $0x2c] ss:$0 sps:$4 sm:$0x33]  }
 0x130   : > { %v3417_v26 = vsel %vm643_vm5, %v3414_v60, %v3416_v0  ;;  %v3559_v32 = vrot.slane %v3557_v23, 2  ;;  %v3694_v23 = vrot.slane %v6949_v62, 2 }
 0x131   : > { %v1512_v34 = vsel %vm1509_vm7, %v1510_v31, %v1511_v18 }
 0x132   : > { %4987 = vmatmul.mubr.msk.bf16.gmra.mrb[16].mxu1 %vm458_vm3, %v1240_v47  ;;  %v3412_v47 = vrot.slane %v6915_v40, 1 }
 0x133   : > { %4992 = vmatprep.mubr.msk.bf16.mxu1 %vm6115_vm1, %v6114_v2 }
 0x134   : > { %5283 = vmatmul.mubr.msk.bf16.gmra.mrb[4].mxu0 %vm458_vm3, %v3260_v9  ;;  %v3413_v59 = vsel %vm643_vm5, %v3410_v29, %v3412_v47  ;;  %v3415_v43 = vsel %vm643_vm5, %v3412_v47, %v3414_v60  ;;  %v1514_v9 = vsel %vm1509_vm7, %v1511_v18, %v1513_v61  ;;  %v6047_v47 = vld [vmem:[%s6234_s29 + $0x8] sm:$0xff]   ;;  %v3572_v18 = vshrl.u32 %v7017_v57, 16 }
 0x135   : > { %5286 = vmatprep.mubr.msk.bf16.mxu0 %vm6115_vm1, %v6114_v2 }
 0x13a   : > { %4993 = vmatmul.mubr.msk.bf16.vlgmr.msra.gmra.mrb[0].mxu1 %vm458_vm3, %v1365_v58  ;;  %v6045_v58 = vld [vmem:[%s6356_s19 + $0x2c] ss:$0 sps:$4 sm:$0x11]  }
 0x13b   : > { %4996 = vmatprep.mubr.msk.bf16.mxu1 %vm6115_vm1, %v6114_v2  ;;  %5013 = vmatpush3.bf16.msra.mxu1 %v1537_v11  ;;  %v3418_v46 = vrot.slane %v6045_v58, 1  ;;  %v3528_v11 = vshrl.u32 %v6896_v50, 16  ;;  %v7042_v58 = vld [vmem:[%s6234_s29 + $0x4] sm:$0xf] }
 0x13c   : > { %5034 = vmatprep.subr.bf16.mxu1 %v6114_v2  ;;  %5287 = vmatmul.mubr.msk.bf16.gmra.mrb[8].mxu0 %vm458_vm3, %v3262_v22  ;;  %v1517_v22 = vrot.slane %v6809_v41, 3  ;;  %v4637_v41 = vld [vmem:[%s7392_s3 + $0x5c] sm:$0xf] }
 0x13d   : > { %5290 = vmatprep.mubr.msk.bf16.mxu0 %vm6115_vm1, %v6114_v2  ;;  %v3419_v33 = vsel %vm643_vm5, %v3416_v0, %v3418_v46  ;;  %v3714_v45 = vsel %vm474_vm0, %v4637_v41, 0 }
 0x13e   : > { %v1518_v14 = vsel %vm1509_vm7, %v1515_v16, %v1517_v22  ;;  %v1520_v10 = vsel %vm1509_vm7, %v1517_v22, %v1519_v37  ;;  %v1760_v16 = vld [vmem:[%s6234_s29] sm:$0xf]  ;;  %v3692_v37 = vrot.slane %v6932_v1, 2 }
 0x13f   : > { %v6052_v22 = vld [vmem:[%s6234_s29 + $0x20] sm:$0xff]  }
 0x140   : > { %v3695_v54 = vsel %vm1076_vm6, %v3692_v37, %v3694_v23 }
 0x142   : > { %4997 = vmatmul.mubr.msk.bf16.gmra.mrb[4].mxu1 %vm458_vm3, %v1374_v63  ;;  %v3530_v63 = vrot.slane %v3528_v11, 1  ;;  %v3688_v11 = vrot.slane %v6899_v30, 2 }
 0x143   : > { %5000 = vmatprep.mubr.msk.bf16.mxu1 %vm6115_vm1, %v6114_v2 }
 0x144   : > { %5291 = vmatmul.mubr.msk.bf16.gmra.mrb[12].mxu0 %vm458_vm3, %v3264_v35  ;;  %v3534_v28 = vor.u32 %v3533_v49, %v3530_v63  ;;  %v3545_v35 = vshrl.u32 %v6915_v40, 16  ;;  %v1809_v49 = vshll.u32 %v7057_v42, 16 }
 0x145   : > { %5294 = vmatprep.mubr.msk.bf16.mxu0 %vm6115_vm1, %v6114_v2 }
 0x146   : > { %v3543_v38 = vsel %vm915_vm4, %v3534_v28, %v3542_v44  ;;  %v3547_v39 = vrot.slane %v3545_v35, 1  ;;  %v7072_v28 = vld [vmem:[%s6234_s29 + $0x10] sm:$0xff]   ;;  %v4529_v35 = vld [vmem:[%s7392_s3 + $0x2c] sm:$0xf] }
 0x147   : > { %v1817_v41 = vshll.u32 %v7072_v28, 16 }
 0x14a   : > { %5001 = vmatmul.mubr.msk.bf16.gmra.mrb[8].mxu1 %vm458_vm3, %v1383_v36  ;;  %v3548_v36 = vshll.u32 %v6915_v40, 16 }
 0x14b   : > { %5004 = vmatprep.mubr.msk.bf16.mxu1 %vm6115_vm1, %v6114_v2 }
 0x14c   : > { %5295 = vmatmul.mubr.msk.bf16.gmra.mrb[16].mxu0 %vm458_vm3, %v3266_v48  ;;  %v3550_v51 = vrot.slane %v3548_v36, 2  ;;  %v3554_v48 = vshrl.u32 %v6932_v1, 16  ;;  %v1813_v36 = vshrl.u32 %v7057_v42, 16 }
 0x14d   : > { %5300 = vmatprep.mubr.msk.bf16.mxu0 %vm6115_vm1, %v6114_v2 }
 0x14e   : > { %v3551_v20 = vor.u32 %v3550_v51, %v3547_v39  ;;  %v1819_v51 = vrot.slane %v1817_v41, 1 }
 0x150   : > { %v3552_v50 = vsel %vm915_vm4, %v3542_v44, %v3551_v20  ;;  %v3691_v44 = vsel %vm1076_vm6, %v3688_v11, %v3690_v25 }
 0x152   : > { %5005 = vmatmul.mubr.msk.bf16.gmra.mrb[12].mxu1 %vm458_vm3, %v1392_v24  ;;  %v3556_v24 = vrot.slane %v3554_v48, 1 }
 0x153   : > { %5008 = vmatprep.mubr.msk.bf16.mxu1 %vm6115_vm1, %v6114_v2 }
 0x154   : > { %5301 = vmatmul.mubr.msk.bf16.vlgmr.msra.gmra.mrb[0].mxu0 %vm458_vm3, %v3411_v53  ;;  %v3560_v29 = vor.u32 %v3559_v32, %v3556_v24  ;;  %v3566_v53 = vshll.u32 %v6949_v62, 16  ;;  %v7105_v32 = vld [vmem:[%s6234_s29 + $0x20] sm:$0xff]  }
 0x155   : > { %5321 = vmatpush3.bf16.msra.mxu0 %v3596_v12  ;;  %5304 = vmatprep.mubr.msk.bf16.mxu0 %vm6115_vm1, %v6114_v2  ;;  %v3565_v12 = vrot.slane %v3563_v56, 1  ;;  %v1833_v62 = vshll.u32 %v7105_v32, 16  ;;  %v3799_v56 = vld [vmem:[%s6356_s19 + $0x8] sm:$0xc] }
 0x156   : > { %5342 = vmatprep.subr.bf16.mxu0 %v6114_v2  ;;  %v3561_v5 = vsel %vm915_vm4, %v3551_v20, %v3560_v29  ;;  %v1821_v20 = vshrl.u32 %v7072_v28, 16 }
 0x15a   : > { %5009 = vmatmul.mubr.msk.bf16.gmra.mrb[16].mxu1 %vm458_vm3, %v1401_v13  ;;  %v3568_v13 = vrot.slane %v3566_v53, 2  ;;  %v7117_v53 = vld [vmem:[%s6356_s19 + $0xc] sm:$0xf] }
 0x15b   : > { %5014 = vmatprep.mubr.msk.bf16.mxu1 %vm6115_vm1, %v6114_v2 }
 0x15c   : > { %5305 = vmatmul.mubr.msk.bf16.gmra.mrb[4].mxu0 %vm458_vm3, %v3413_v59  ;;  %v3569_v31 = vor.u32 %v3568_v13, %v3565_v12  ;;  %v3575_v59 = vshll.u32 %v7017_v57, 16  ;;  %v1835_v12 = vrot.slane %v1833_v62, 1  ;;  %v7123_v13 = vld [vmem:[%s6234_s29 + $0x28] ss:$0 sps:$4 sm:$0x11]  }
 0x15d   : > { %5308 = vmatprep.mubr.msk.bf16.mxu0 %vm6115_vm1, %v6114_v2 }
 0x15e   : > { %v3570_v8 = vsel %vm915_vm4, %v3560_v29, %v3569_v31  ;;  %v3577_v60 = vrot.slane %v3575_v59, 2  ;;  %v1837_v59 = vshrl.u32 %v7105_v32, 16 }
 0x162   : > { %5015 = vmatmul.mubr.msk.bf16.vlgmr.msra.gmra.mrb[0].mxu1 %vm458_vm3, %v1512_v34  ;;  %v3574_v34 = vrot.slane %v3572_v18, 1 }
 0x163   : > { %5018 = vmatprep.mubr.msk.bf16.mxu1 %vm6115_vm1, %v6114_v2  ;;  %5035 = vmatpush3.bf16.msra.mxu1 %v1675_v19  ;;  %v6048_v19 = vld [vmem:[%s6234_s29 + $0x10] sm:$0xff]  }
 0x164   : > { %5056 = vmatprep.subr.bf16.mxu1 %v6114_v2  ;;  %5309 = vmatmul.mubr.msk.bf16.gmra.mrb[8].mxu0 %vm458_vm3, %v3415_v43  ;;  %v3578_v61 = vor.u32 %v3577_v60, %v3574_v34  ;;  %v3681_v43 = vld [vmem:[%s6356_s19 + $0x4] sm:$0xc] }
 0x165   : > { %5312 = vmatprep.mubr.msk.bf16.mxu0 %vm6115_vm1, %v6114_v2  ;;  %v4638_v0 = vcombine.low %v3681_v43, %v6887_v52  ;;  %v4644_v52 = vld [vmem:[%s7392_s3 + $0x60] sm:$0xf] }
 0x167   : > { %v3687_v46 = vrot.slane %v4638_v0, 2  ;;  %v7148_v0 = vld [vmem:[%s6356_s19 + $0x18] sm:$0xff]  }
 0x169   : > { %v3689_v21 = vsel %vm1076_vm6, %v3687_v46, %v3688_v11  ;;  %v3843_v11 = vrot.slane %v7148_v0, 2 }
 0x16a   : > { %5019 = vmatmul.mubr.msk.bf16.gmra.mrb[4].mxu1 %vm458_vm3, %v1514_v9  ;;  %v3579_v9 = vsel %vm915_vm4, %v3569_v31, %v3578_v61  ;;  %v7127_v31 = vcombine.low %v3799_v56, %v7117_v53  ;;  %v1839_v61 = vor.u32 %v1837_v59, %v1835_v12  ;;  %v6069_v59 = vld [vmem:[%s6234_s29 + $0xc] sm:$0xff]  }
 0x16b   : > { %5022 = vmatprep.mubr.msk.bf16.mxu1 %vm6115_vm1, %v6114_v2 }
 0x16c   : > { %5313 = vmatmul.mubr.msk.bf16.gmra.mrb[12].mxu0 %vm458_vm3, %v3417_v26  ;;  %v6050_v26 = vld [vmem:[%s6234_s29 + $0x18] sm:$0xff]   ;;  %v3840_v34 = vrot.slane %v7127_v31, 2  ;;  %v3959_v41 = vshrl.u32 %v7127_v31, 16 }
 0x16d   : > { %5316 = vmatprep.mubr.msk.bf16.mxu0 %vm6115_vm1, %v6114_v2 }
 0x172   : > { %5023 = vmatmul.mubr.msk.bf16.gmra.mrb[8].mxu1 %vm458_vm3, %v1516_v3  ;;  %v4518_v3 = vcombine.low %v1760_v16, %v7042_v58  ;;  %v1946_v16 = vld [vmem:[%s6234_s29] sm:$0xe] }
 0x173   : > { %5026 = vmatprep.mubr.msk.bf16.mxu1 %vm6115_vm1, %v6114_v2  ;;  %v4530_v46 = vcombine.low %v1946_v16, %v7042_v58  ;;  %v7165_v58 = vld [vmem:[%s6356_s19 + $0x20] sm:$0xff]  }
 0x174   : > { %5317 = vmatmul.mubr.msk.bf16.gmra.mrb[16].mxu0 %vm458_vm3, %v3419_v33  ;;  %v1804_v15 = vshll.u32 %v4518_v3, 16  ;;  %v3867_v33 = vsel %vm474_vm0, %v4644_v52, 0  ;;  %v1802_v30 = vshrl.u32 %v4518_v3, 16 }
 0x175   : > { %5322 = vmatprep.mubr.msk.bf16.mxu0 %vm6115_vm1, %v6114_v2  ;;  %v1952_v52 = vrot.slane %v4530_v46, 1 }
 0x176   : > { %v1806_v63 = vrot.slane %v1804_v15, 1  ;;  %v1953_v15 = vrot.slane %v7057_v42, 1 }
 0x178   : > { %v1807_v27 = vor.u32 %v1806_v63, %v1802_v30  ;;  %v3845_v30 = vrot.slane %v7165_v58, 2  ;;  %v1955_v63 = vrot.slane %v7072_v28, 1 }
 0x17a   : > { %5027 = vmatmul.mubr.msk.bf16.gmra.mrb[12].mxu1 %vm458_vm3, %v1518_v14  ;;  %v1811_v14 = vrot.slane %v1809_v49, 1  ;;  %v3846_v49 = vsel %vm1076_vm6, %v3843_v11, %v3845_v30 }
 0x17b   : > { %5030 = vmatprep.mubr.msk.bf16.mxu1 %vm6115_vm1, %v6114_v2 }
 0x17c   : > { %5323 = vmatmul.mubr.msk.bf16.vlgmr.msra.gmra.mrb[0].mxu0 %vm458_vm3, %v3543_v38  ;;  %v1812_v40 = vsel %vm413_vm2, %v1807_v27, %v1811_v14  ;;  %v1979_v38 = vsel %vm474_vm0, %v4529_v35, 0  ;;  %v1815_v39 = vor.u32 %v1813_v36, %v1811_v14  ;;  %v1956_v27 = vsel %vm643_vm5, %v1953_v15, %v1955_v63 }
 0x17d   : > { %5343 = vmatpush3.bf16.msra.mxu0 %v3714_v45  ;;  %5326 = vmatprep.mubr.msk.bf16.mxu0 %vm6115_vm1, %v6114_v2  ;;  %v7090_v45 = vld [vmem:[%s6234_s29 + $0x18] sm:$0xff]  }
 0x17e   : > { %5364 = vmatprep.subr.bf16.mxu0 %v6114_v2  ;;  %v1820_v1 = vsel %vm413_vm2, %v1815_v39, %v1819_v51  ;;  %v1825_v48 = vshll.u32 %v7090_v45, 16  ;;  %v1829_v29 = vshrl.u32 %v7090_v45, 16  ;;  %v1957_v28 = vrot.slane %v7090_v45, 1 }
 0x17f   : > { %v1959_v45 = vrot.slane %v7105_v32, 1  ;;  %v4663_v32 = vld [vmem:[%s7392_s3 + $0x68] sm:$0xf] }
 0x180   : > { %v1827_v24 = vrot.slane %v1825_v48, 1 }
 0x182   : > { %5031 = vmatmul.mubr.msk.bf16.gmra.mrb[16].mxu1 %vm458_vm3, %v1520_v10  ;;  %v3693_v10 = vsel %vm1076_vm6, %v3690_v25, %v3692_v37  ;;  %v7182_v25 = vld [vmem:[%s6356_s19 + $0x28] sm:$0xff]   ;;  %v3962_v37 = vshll.u32 %v7127_v31, 16  ;;  %v3985_v31 = vshrl.u32 %v7165_v58, 16 }
 0x183   : > { %5036 = vmatprep.mubr.msk.bf16.mxu1 %vm6115_vm1, %v6114_v2  ;;  %v3847_v14 = vrot.slane %v7182_v25, 2  ;;  %v3997_v16 = vshll.u32 %v7182_v25, 16 }
 0x184   : > { %5327 = vmatmul.mubr.msk.bf16.gmra.mrb[4].mxu0 %vm458_vm3, %v3552_v50  ;;  %v1823_v50 = vor.u32 %v1821_v20, %v1819_v51 }
 0x185   : > { %5330 = vmatprep.mubr.msk.bf16.mxu0 %vm6115_vm1, %v6114_v2  ;;  %v3848_v35 = vsel %vm1076_vm6, %v3845_v30, %v3847_v14 }
 0x18a   : > { %5037 = vmatmul.mubr.msk.bf16.vlgmr.msra.gmra.mrb[0].mxu1 %vm458_vm3, %v6046_v55  ;;  %v1828_v55 = vsel %vm413_vm2, %v1823_v50, %v1827_v24 }
 0x18b   : > { %5040 = vmatprep.mubr.msk.bf16.mxu1 %vm6115_vm1, %v6114_v2  ;;  %5057 = vmatpush3.bf16.msra.mxu1 %v1861_v7  ;;  %v3696_v7 = vrot.slane %v7017_v57, 2  ;;  %v7130_v57 = vld [vmem:[%s6356_s19 + $0x10] sm:$0xff]  }
 0x18c   : > { %5078 = vmatprep.subr.bf16.mxu1 %v6114_v2  ;;  %5331 = vmatmul.mubr.msk.bf16.gmra.mrb[8].mxu0 %vm458_vm3, %v3561_v5  ;;  %v1831_v5 = vor.u32 %v1829_v29, %v1827_v24  ;;  %v3841_v60 = vrot.slane %v7130_v57, 2  ;;  %v3970_v39 = vshll.u32 %v7130_v57, 16  ;;  %v1961_v29 = vrot.slane %v7123_v13, 1 }
 0x18d   : > { %5334 = vmatprep.mubr.msk.bf16.mxu0 %vm6115_vm1, %v6114_v2 }
 0x18e   : > { %v1836_v18 = vsel %vm413_vm2, %v1831_v5, %v1835_v12  ;;  %v3972_v48 = vrot.slane %v3970_v39, 3  ;;  %v4145_v5 = vsel %vm474_vm0, %v4663_v32, 0  ;;  %v1962_v12 = vsel %vm643_vm5, %v1959_v45, %v1961_v29 }
 0x18f   : > { %v4119_v39 = vrot.slane %v7130_v57, 3 }
 0x192   : > { %5041 = vmatmul.mubr.msk.bf16.gmra.mrb[4].mxu1 %vm458_vm3, %v6047_v47  ;;  %v3697_v47 = vsel %vm1076_vm6, %v3694_v23, %v3696_v7  ;;  %v1960_v23 = vsel %vm643_vm5, %v1957_v28, %v1959_v45 }
 0x193   : > { %5044 = vmatprep.mubr.msk.bf16.mxu1 %vm6115_vm1, %v6114_v2 }
 0x194   : > { %5335 = vmatmul.mubr.msk.bf16.gmra.mrb[12].mxu0 %vm458_vm3, %v3570_v8  ;;  %v1841_v8 = vshll.u32 %v7123_v13, 16  ;;  %v2105_v13 = vrot.slane %v6247_v17, 1  ;;  %v6070_v17 = vld [vmem:[%s6234_s29 + $0x14] sm:$0xff]  }
 0x195   : > { %5338 = vmatprep.mubr.msk.bf16.mxu0 %vm6115_vm1, %v6114_v2 }
 0x196   : > { %v1843_v43 = vrot.slane %v1841_v8, 1  ;;  %v2106_v8 = vrot.slane %v6069_v59, 1 }
 0x198   : > { %v1844_v3 = vsel %vm413_vm2, %v1839_v61, %v1843_v43  ;;  %v2107_v61 = vsel %vm643_vm5, %v2105_v13, %v2106_v8 }
 0x19a   : > { %5045 = vmatmul.mubr.msk.bf16.gmra.mrb[8].mxu1 %vm458_vm3, %v6048_v19  ;;  %v4656_v19 = vld [vmem:[%s7392_s3 + $0x64] sm:$0xf] }
 0x19b   : > { %5048 = vmatprep.mubr.msk.bf16.mxu1 %vm6115_vm1, %v6114_v2 }
 0x19c   : > { %5339 = vmatmul.mubr.msk.bf16.gmra.mrb[16].mxu0 %vm458_vm3, %v3579_v9  ;;  %v3842_v9 = vsel %vm1076_vm6, %v3840_v34, %v3841_v60 }
 0x19d   : > { %5344 = vmatprep.mubr.msk.bf16.mxu0 %vm6115_vm1, %v6114_v2 }
 0x1a2   : > { %5049 = vmatmul.mubr.msk.bf16.gmra.mrb[12].mxu1 %vm458_vm3, %v6050_v26  ;;  %v4027_v26 = vsel %vm474_vm0, %v4656_v19, 0 }
 0x1a3   : > { %5052 = vmatprep.mubr.msk.bf16.mxu1 %vm6115_vm1, %v6114_v2 }
 0x1a4   : > { %5345 = vmatmul.mubr.msk.bf16.vlgmr.msra.gmra.mrb[0].mxu0 %vm458_vm3, %v3689_v21  ;;  %v3844_v21 = vsel %vm1076_vm6, %v3841_v60, %v3843_v11  ;;  %v3987_v60 = vrot.slane %v3985_v31, 2  ;;  %v3999_v11 = vrot.slane %v3997_v16, 3  ;;  %v7322_v16 = vld [vmem:[%s7393_s4] ss:$0 sm:$0xff] }
 0x1a5   : > { %5365 = vmatpush3.bf16.msra.mxu0 %v3867_v33  ;;  %5348 = vmatprep.mubr.msk.bf16.mxu0 %vm6115_vm1, %v6114_v2  ;;  %v4536_v33 = vld [vmem:[%s7392_s3 + $0x30] sm:$0xf] }
 0x1a6   : > { %5386 = vmatprep.subr.bf16.mxu0 %v6114_v2  ;;  %v2132_v42 = vsel %vm474_vm0, %v4536_v33, 0 }
 0x1aa   : > { %5053 = vmatmul.mubr.msk.bf16.gmra.mrb[16].mxu1 %vm458_vm3, %v6052_v22  ;;  %v1954_v22 = vsel %vm643_vm5, %v1952_v52, %v1953_v15  ;;  %v7249_v52 = vld [vmem:[%s6356_s19 + $0x30] ss:$0 sps:$4 sm:$0x77]  }
 0x1ab   : > { %5058 = vmatprep.mubr.msk.bf16.mxu1 %vm6115_vm1, %v6114_v2  ;;  %v4003_v33 = vshrl.u32 %v7249_v52, 16 }
 0x1ac   : > { %5349 = vmatmul.mubr.msk.bf16.gmra.mrb[4].mxu0 %vm458_vm3, %v3691_v44  ;;  %v6065_v44 = vld [vmem:[%s6356_s19 + $0x30] ss:$0 sps:$4 sm:$0x33]  }
 0x1ad   : > { %5352 = vmatprep.mubr.msk.bf16.mxu0 %vm6115_vm1, %v6114_v2  ;;  %v3849_v36 = vrot.slane %v6065_v44, 2  ;;  %v6072_v44 = vld [vmem:[%s6234_s29 + $0x24] sm:$0xff]  }
 0x1ae   : > { %v2259_v45 = vshrl.u32 %v6072_v44, 16 }
 0x1af   : > { %v3850_v51 = vsel %vm1076_vm6, %v3847_v14, %v3849_v36 }
 0x1b2   : > { %5059 = vmatmul.mubr.msk.bf16.vlgmr.msra.gmra.mrb[0].mxu1 %vm458_vm3, %v1812_v40  ;;  %v1958_v40 = vsel %vm643_vm5, %v1955_v63, %v1957_v28  ;;  %v4005_v63 = vrot.slane %v4003_v33, 2  ;;  %v4112_v28 = vld [vmem:[%s6356_s19 + $0x8] sm:$0x8]  ;;  %s5946_s19 = smul.u32 10, %s7413_s21 }
 0x1b3   : > { %5062 = vmatprep.mubr.msk.bf16.mxu1 %vm6115_vm1, %v6114_v2  ;;  %5079 = vmatpush3.bf16.msra.mxu1 %v1979_v38  ;;  %v3967_v38 = vshrl.u32 %v7130_v57, 16  ;;  %v4664_v36 = vcombine.low %v4112_v28, %v7117_v53  ;;  %v2262_v53 = vshll.u32 %v6072_v44, 16  ;;  %v4121_v57 = vrot.slane %v7148_v0, 3 }
 0x1b4   : > { %5100 = vmatprep.subr.bf16.mxu1 %v6114_v2  ;;  %5353 = vmatmul.mubr.msk.bf16.gmra.mrb[8].mxu0 %vm458_vm3, %v3693_v10  ;;  %v3961_v10 = vrot.slane %v3959_v41, 2 }
 0x1b5   : > { %5356 = vmatprep.mubr.msk.bf16.mxu0 %vm6115_vm1, %v6114_v2  ;;  %v3969_v20 = vrot.slane %v3967_v38, 2  ;;  %v4118_v38 = vrot.slane %v4664_v36, 3 }
 0x1b7   : > { %v3973_v24 = vor.u32 %v3972_v48, %v3969_v20  ;;  %v2261_v20 = vrot.slane %v2259_v45, 1  ;;  %v2264_v48 = vrot.slane %v2262_v53, 2 }
 0x1ba   : > { %5063 = vmatmul.mubr.msk.bf16.gmra.mrb[4].mxu1 %vm458_vm3, %v1820_v1  ;;  %v3964_v1 = vrot.slane %v3962_v37, 3  ;;  %v6068_v37 = vld [vmem:[%s6234_s29 + $0x2c] ss:$0 sps:$4 sm:$0x11]  }
 0x1bb   : > { %5066 = vmatprep.mubr.msk.bf16.mxu1 %vm6115_vm1, %v6114_v2 }
 0x1bc   : > { %5357 = vmatmul.mubr.msk.bf16.gmra.mrb[12].mxu0 %vm458_vm3, %v3695_v54  ;;  %v3965_v50 = vor.u32 %v3964_v1, %v3961_v10  ;;  %v3976_v54 = vshrl.u32 %v7148_v0, 16  ;;  %v4120_v10 = vsel %vm1509_vm7, %v4118_v38, %v4119_v39 }
 0x1bd   : > { %5360 = vmatprep.mubr.msk.bf16.mxu0 %vm6115_vm1, %v6114_v2 }
 0x1be   : > { %v3974_v62 = vsel %vm1348_vm8, %v3965_v50, %v3973_v24  ;;  %v3978_v7 = vrot.slane %v3976_v54, 2  ;;  %v6073_v50 = vld [vmem:[%s6234_s29 + $0x2c] ss:$0 sps:$4 sm:$0x33]  }
 0x1bf   : > { %v2271_v54 = vshll.u32 %v6073_v50, 16 }
 0x1c2   : > { %5067 = vmatmul.mubr.msk.bf16.gmra.mrb[8].mxu1 %vm458_vm3, %v1828_v55  ;;  %v3979_v55 = vshll.u32 %v7148_v0, 16  ;;  %v4123_v0 = vrot.slane %v7165_v58, 3 }
 0x1c3   : > { %5070 = vmatprep.mubr.msk.bf16.mxu1 %vm6115_vm1, %v6114_v2 }
 0x1c4   : > { %5361 = vmatmul.mubr.msk.bf16.gmra.mrb[16].mxu0 %vm458_vm3, %v3697_v47  ;;  %v3981_v56 = vrot.slane %v3979_v55, 3  ;;  %v4122_v55 = vsel %vm1509_vm7, %v4119_v39, %v4121_v57 }
 0x1c5   : > { %5366 = vmatprep.mubr.msk.bf16.mxu0 %vm6115_vm1, %v6114_v2 }
 0x1c6   : > { %v3982_v47 = vor.u32 %v3981_v56, %v3978_v7  ;;  %v4124_v56 = vsel %vm1509_vm7, %v4121_v57, %v4123_v0 }
 0x1c8   : > { %v3983_v34 = vsel %vm1348_vm8, %v3973_v24, %v3982_v47  ;;  %v2268_v24 = vshrl.u32 %v6073_v50, 16 }
 0x1ca   : > { %5071 = vmatmul.mubr.msk.bf16.gmra.mrb[12].mxu1 %vm458_vm3, %v1836_v18  ;;  %v3988_v18 = vshll.u32 %v7165_v58, 16  ;;  %v2270_v29 = vrot.slane %v2268_v24, 1 }
 0x1cb   : > { %5074 = vmatprep.mubr.msk.bf16.mxu1 %vm6115_vm1, %v6114_v2 }
 0x1cc   : > { %5367 = vmatmul.mubr.msk.bf16.vlgmr.msra.gmra.mrb[0].mxu0 %vm458_vm3, %v3842_v9  ;;  %v3990_v19 = vrot.slane %v3988_v18, 3  ;;  %v3994_v9 = vshrl.u32 %v7182_v25, 16 }
 0x1cd   : > { %5387 = vmatpush3.bf16.msra.mxu0 %v4027_v26  ;;  %5370 = vmatprep.mubr.msk.bf16.mxu0 %vm6115_vm1, %v6114_v2  ;;  %v2108_v26 = vrot.slane %v6070_v17, 1 }
 0x1ce   : > { %5408 = vmatprep.subr.bf16.mxu0 %v6114_v2  ;;  %v3991_v43 = vor.u32 %v3990_v19, %v3987_v60  ;;  %v3996_v46 = vrot.slane %v3994_v9, 2 }
 0x1cf   : > { %v2109_v15 = vsel %vm643_vm5, %v2106_v8, %v2108_v26 }
 0x1d2   : > { %5075 = vmatmul.mubr.msk.bf16.gmra.mrb[16].mxu1 %vm458_vm3, %v1844_v3  ;;  %v3992_v3 = vsel %vm1348_vm8, %v3982_v47, %v3991_v43 }
 0x1d3   : > { %5080 = vmatprep.mubr.msk.bf16.mxu1 %vm6115_vm1, %v6114_v2 }
 0x1d4   : > { %5371 = vmatmul.mubr.msk.bf16.gmra.mrb[4].mxu0 %vm458_vm3, %v3844_v21  ;;  %v4000_v21 = vor.u32 %v3999_v11, %v3996_v46 }
 0x1d5   : > { %5374 = vmatprep.mubr.msk.bf16.mxu0 %vm6115_vm1, %v6114_v2 }
 0x1da   : > { %5081 = vmatmul.mubr.msk.bf16.vlgmr.msra.gmra.mrb[0].mxu1 %vm458_vm3, %v1954_v22  ;;  %v6071_v22 = vld [vmem:[%s6234_s29 + $0x1c] sm:$0xff]   ;;  %s5947_s29 = smul.u32 80, %s7407_s22 }
 0x1db   : > { %5084 = vmatprep.mubr.msk.bf16.mxu1 %vm6115_vm1, %v6114_v2  ;;  %5101 = vmatpush3.bf16.msra.mxu1 %v2132_v42  ;;  %v2110_v30 = vrot.slane %v6071_v22, 1  ;;  %v4001_v42 = vsel %vm1348_vm8, %v3991_v43, %v4000_v21 }
 0x1dc   : > { %5430 = vmatprep.subr.bf16.mxu1 %v6114_v2  ;;  %5375 = vmatmul.mubr.msk.bf16.gmra.mrb[8].mxu0 %vm458_vm3, %v3846_v49  ;;  %s367_s20 = sadd.s32 %s5947_s29, %s5946_s19 }
 0x1dd   : > { %5378 = vmatprep.mubr.msk.bf16.mxu0 %vm6115_vm1, %v6114_v2  ;;  %s4429_s9 = sshll.u32 %s367_s20, 3 }
 0x1de   : > { %s7335_s11 = scalar_lea.vmem %s7395_s6, %s4429_s9 }
 0x1e2   : > { %5085 = vmatmul.mubr.msk.bf16.gmra.mrb[4].mxu1 %vm458_vm3, %v1956_v27  ;;  %v2111_v27 = vsel %vm643_vm5, %v2108_v26, %v2110_v30 }
 0x1e3   : > { %5088 = vmatprep.mubr.msk.bf16.mxu1 %vm6115_vm1, %v6114_v2 }
 0x1e4   : > { %5379 = vmatmul.mubr.msk.bf16.gmra.mrb[12].mxu0 %vm458_vm3, %v3848_v35  ;;  %v2112_v35 = vrot.slane %v6072_v44, 1 }
 0x1e5   : > { %5382 = vmatprep.mubr.msk.bf16.mxu0 %vm6115_vm1, %v6114_v2 }
 0x1e6   : > { %v2113_v41 = vsel %vm643_vm5, %v2110_v30, %v2112_v35 }
 0x1ea   : > { %5089 = vmatmul.mubr.msk.bf16.gmra.mrb[8].mxu1 %vm458_vm3, %v1958_v40 }
 0x1eb   : > { %5092 = vmatprep.mubr.msk.bf16.mxu1 %vm6115_vm1, %v6114_v2 }
 0x1ec   : > { %5383 = vmatmul.mubr.msk.bf16.gmra.mrb[16].mxu0 %vm458_vm3, %v3850_v51  ;;  %v2114_v51 = vrot.slane %v6068_v37, 1 }
 0x1ed   : > { %5388 = vmatprep.mubr.msk.bf16.mxu0 %vm6115_vm1, %v6114_v2 }
 0x1ee   : > { %v2115_v1 = vsel %vm643_vm5, %v2112_v35, %v2114_v51 }
 0x1f2   : > { %5093 = vmatmul.mubr.msk.bf16.gmra.mrb[12].mxu1 %vm458_vm3, %v1960_v23  ;;  %v2265_v23 = vor.u32 %v2264_v48, %v2261_v20 }
 0x1f3   : > { %5096 = vmatprep.mubr.msk.bf16.mxu1 %vm6115_vm1, %v6114_v2 }
 0x1f4   : > { %5389 = vmatmul.mubr.msk.bf16.vlgmr.msra.gmra.mrb[0].mxu0 %vm458_vm3, %v3974_v62  ;;  %v2266_v32 = vsel %vm915_vm4, %v6311_v6, %v2265_v23  ;;  %v2273_v62 = vrot.slane %v2271_v54, 2  ;;  %v4125_v6 = vrot.slane %v7182_v25, 3 }
 0x1f5   : > { %5409 = vmatpush3.bf16.msra.mxu0 %v4145_v5  ;;  %5392 = vmatprep.mubr.msk.bf16.mxu0 %vm6115_vm1, %v6114_v2 }
 0x1f6   : > { %v2274_v7 = vor.u32 %v2273_v62, %v2270_v29  ;;  %v4126_v58 = vsel %vm1509_vm7, %v4123_v0, %v4125_v6 }
 0x1f8   : > { %v2275_v5 = vsel %vm915_vm4, %v2265_v23, %v2274_v7 }
 0x1fa   : > { %5097 = vmatmul.mubr.msk.bf16.gmra.mrb[16].mxu1 %vm458_vm3, %v1962_v12  ;;  %v4127_v12 = vrot.slane %v7249_v52, 3 }
 0x1fb   : > { %5102 = vmatprep.mubr.msk.bf16.mxu1 %vm6115_vm1, %v6114_v2 }
 0x1fc   : > { %5393 = vmatmul.mubr.msk.bf16.gmra.mrb[4].mxu0 %vm458_vm3, %v3983_v34  ;;  %v4128_v47 = vsel %vm1509_vm7, %v4125_v6, %v4127_v12 }
 0x1fd   : > { %5396 = vmatprep.mubr.msk.bf16.mxu0 %vm6115_vm1, %v6114_v2 }
 0x202   : > { %5103 = vmatmul.mubr.msk.bf16.vlgmr.msra.gmra.mrb[0].mxu1 %vm458_vm3, %v2107_v61 }
 0x203   : > { %5106 = vmatprep.mubr.msk.bf16.mxu1 %vm6115_vm1, %v6114_v2  ;;  %5431 = vmatpush3.bf16.msra.mxu1 %v6195_v4  ;;  %v4006_v4 = vshll.u32 %v7249_v52, 16 }
 0x204   : > { %5397 = vmatmul.mubr.msk.bf16.gmra.mrb[8].mxu0 %vm458_vm3, %v3992_v3  ;;  %v7327_v3 = vld [vmem:[%s7394_s5] ss:$0 sm:$0xff] }
 0x205   : > { %5400 = vmatprep.mubr.msk.bf16.mxu0 %vm6115_vm1, %v6114_v2  ;;  %v4008_v49 = vrot.slane %v4006_v4, 3 }
 0x207   : > { %v4009_v14 = vor.u32 %v4008_v49, %v4005_v63 }
 0x209   : > { %v4010_v40 = vsel %vm1348_vm8, %v4000_v21, %v4009_v14 }
 0x20a   : > { %5107 = vmatmul.mubr.msk.bf16.gmra.mrb[4].mxu1 %vm458_vm3, %v2109_v15 }
 0x20b   : > { %5110 = vmatprep.mubr.msk.bf16.mxu1 %vm6115_vm1, %v6114_v2 }
 0x20c   : > { %5401 = vmatmul.mubr.msk.bf16.gmra.mrb[12].mxu0 %vm458_vm3, %v4001_v42 }
 0x20d   : > { %5404 = vmatprep.mubr.msk.bf16.mxu0 %vm6115_vm1, %v6114_v2 }
 0x212   : > { %5111 = vmatmul.mubr.msk.bf16.gmra.mrb[8].mxu1 %vm458_vm3, %v2111_v27 }
 0x213   : > { %5114 = vmatprep.mubr.msk.bf16.mxu1 %vm6115_vm1, %v6114_v2 }
 0x214   : > { %5405 = vmatmul.mubr.msk.bf16.gmra.mrb[16].mxu0 %vm458_vm3, %v4010_v40 }
 0x215   : > { %5410 = vmatprep.mubr.msk.bf16.mxu0 %vm6115_vm1, %v6114_v2 }
 0x21a   : > { %5115 = vmatmul.mubr.msk.bf16.gmra.mrb[12].mxu1 %vm458_vm3, %v2113_v41 }
 0x21b   : > { %5118 = vmatprep.mubr.msk.bf16.mxu1 %vm6115_vm1, %v6114_v2 }
 0x21c   : > { %5411 = vmatmul.mubr.msk.bf16.vlgmr.msra.gmra.mrb[0].mxu0 %vm458_vm3, %v4120_v10 }
 0x21d   : > { %5414 = vmatprep.mubr.msk.bf16.mxu0 %vm6115_vm1, %v6114_v2 }
 0x222   : > { %5119 = vmatmul.mubr.msk.bf16.gmra.mrb[16].mxu1 %vm458_vm3, %v2115_v1 }
 0x223   : > { %5136 = vmatprep.mubr.msk.bf16.mxu1 %vm6115_vm1, %v6114_v2 }
 0x224   : > { %5415 = vmatmul.mubr.msk.bf16.gmra.mrb[4].mxu0 %vm458_vm3, %v4122_v55 }
 0x225   : > { %5418 = vmatprep.mubr.msk.bf16.mxu0 %vm6115_vm1, %v6114_v2 }
 0x22a   : > { %5137 = vmatmul.mubr.msk.bf16.vlgmr.msra.gmra.mrb[12].mxu1 %vm458_vm3, %v2266_v32 }
 0x22b   : > { %5140 = vmatprep.mubr.msk.bf16.mxu1 %vm6115_vm1, %v6114_v2 }
 0x22c   : > { %5419 = vmatmul.mubr.msk.bf16.gmra.mrb[8].mxu0 %vm458_vm3, %v4124_v56 }
 0x22d   : > { %5422 = vmatprep.mubr.msk.bf16.mxu0 %vm6115_vm1, %v6114_v2 }
 0x232   : > { %5141 = vmatmul.mubr.msk.bf16.gmra.mrb[16].mxu1 %vm458_vm3, %v2275_v5 }
 0x234   : > { %5423 = vmatmul.mubr.msk.bf16.gmra.mrb[12].mxu0 %vm458_vm3, %v4126_v58 }
 0x235   : > { %5426 = vmatprep.mubr.msk.bf16.mxu0 %vm6115_vm1, %v6114_v2 }
 0x23c   : > { %5427 = vmatmul.mubr.msk.bf16.gmra.mrb[16].mxu0 %vm458_vm3, %v4128_v47 }
 0x2d5   : > { %v2168_v31 = vpop.f32.mrb[0].mxu1 }
 0x2d6   : > { %v5104_v25 = vpop.f32.mrb[1].mxu1 }
 0x2d7   : > { %v2171_v18 = vpop.f32.mrb[2].mxu1 }
 0x2d8   : > { %v5105_v13 = vpop.f32.mrb[3].mxu1 }
 0x2dd   : > { %v2176_v59 = vpop.f32.mrb[4].mxu1 }
 0x2de   : > { %v5108_v8 = vpop.f32.mrb[5].mxu1 }
 0x2df   : > { %v2179_v34 = vpop.f32.mrb[6].mxu1 }
 0x2e0   : > { %v5109_v60 = vpop.f32.mrb[7].mxu1 }
 0x2e5   : > { %v2184_v19 = vpop.f32.mrb[8].mxu1 }
 0x2e6   : > { %v5112_v61 = vpop.f32.mrb[9].mxu1 }
 0x2e7   : > { %v2187_v2 = vpop.f32.mrb[10].mxu1 }
 0x2e8   : > { %v5113_v43 = vpop.f32.mrb[11].mxu1 }
 0x2ef   : > { %v4181_v9 = vpop.f32.mrb[0].mxu0 }
 0x2f0   : > { %v5432_v17 = vadd.f32 %v4181_v9, %v2168_v31  ;;  %v5412_v26 = vpop.f32.mrb[1].mxu0 }
 0x2f1   : > { %v4184_v46 = vpop.f32.mrb[2].mxu0 }
 0x2f2   : > { %v4237_v11 = vmul.f32 %v5432_v17, %v7322_v16  ;;  %v5433_v52 = vadd.f32 %v4184_v46, %v2171_v18  ;;  %v5413_v15 = vpop.f32.mrb[3].mxu0 }
 0x2f4   : > { %v4254_v21 = vadd.f32 %v7327_v3, %v4237_v11  ;;  %v4238_v33 = vmul.f32 %v5433_v52, %v7322_v16 }
 0x2f6   : > { %v4264_v4 = vmax.f32 %v4254_v21, 0.0  ;;  %v4255_v22 = vadd.f32 %v7327_v3, %v4238_v33 }
 0x2f7   : > { %v4189_v30 = vpop.f32.mrb[4].mxu0 }
 0x2f8   : > { %4274 = vst.msk [vmem:[%s7335_s11] sm:$0xff] %vm458_vm3, %v4264_v4  ;;  %v4265_v42 = vmax.f32 %v4255_v22, 0.0  ;;  %v5434_v63 = vadd.f32 %v4189_v30, %v2176_v59  ;;  %v5416_v49 = vpop.f32.mrb[5].mxu0 }
 0x2f9   : > { %v4192_v27 = vpop.f32.mrb[6].mxu0 }
 0x2fa   : > { %4275 = vst.msk [vmem:[%s7335_s11 + $0x8] sm:$0xff] %vm458_vm3, %v4265_v42  ;;  %v4239_v14 = vmul.f32 %v5434_v63, %v7322_v16  ;;  %v5435_v28 = vadd.f32 %v4192_v27, %v2179_v34  ;;  %v5417_v44 = vpop.f32.mrb[7].mxu0 }
 0x2fc   : > { %v4256_v36 = vadd.f32 %v7327_v3, %v4239_v14  ;;  %v4240_v41 = vmul.f32 %v5435_v28, %v7322_v16 }
 0x2fd   : > { %v2352_v35 = vpop.f32.mrb[12].mxu1 }
 0x2fe   : > { %v5138_v40 = vpop.f32.mrb[13].mxu1  ;;  %v4266_v39 = vmax.f32 %v4256_v36, 0.0  ;;  %v4257_v51 = vadd.f32 %v7327_v3, %v4240_v41 }
 0x2ff   : > { %v2355_v37 = vpop.f32.mrb[14].mxu1  ;;  %v4197_v45 = vpop.f32.mrb[8].mxu0 }
 0x300   : > { %v5139_v38 = vpop.f32.mrb[15].mxu1  ;;  %4276 = vst.msk [vmem:[%s7335_s11 + $0x10] sm:$0xff] %vm458_vm3, %v4266_v39  ;;  %v4267_v53 = vmax.f32 %v4257_v51, 0.0  ;;  %v5436_v10 = vadd.f32 %v4197_v45, %v2184_v19  ;;  %v5420_v1 = vpop.f32.mrb[9].mxu0 }
 0x301   : > { %v4200_v20 = vpop.f32.mrb[10].mxu0 }
 0x302   : > { %4277 = vst.msk [vmem:[%s7335_s11 + $0x18] sm:$0xff] %vm458_vm3, %v4267_v53  ;;  %v4241_v48 = vmul.f32 %v5436_v10, %v7322_v16  ;;  %v5437_v57 = vadd.f32 %v4200_v20, %v2187_v2  ;;  %v5421_v23 = vpop.f32.mrb[11].mxu0 }
 0x304   : > { %v4258_v54 = vadd.f32 %v7327_v3, %v4241_v48  ;;  %v4242_v55 = vmul.f32 %v5437_v57, %v7322_v16 }
 0x305   : > { %v2360_v50 = vpop.f32.mrb[16].mxu1 }
 0x306   : > { %v5142_v24 = vpop.f32.mrb[17].mxu1  ;;  %v4268_v62 = vmax.f32 %v4258_v54, 0.0  ;;  %v4259_v0 = vadd.f32 %v7327_v3, %v4242_v55 }
 0x307   : > { %v2363_v32 = vpop.f32.mrb[18].mxu1  ;;  %v4205_v7 = vpop.f32.mrb[12].mxu0 }
 0x308   : > { %v5143_v29 = vpop.f32.mrb[19].mxu1  ;;  %4278 = vst.msk [vmem:[%s7335_s11 + $0x20] sm:$0xff] %vm458_vm3, %v4268_v62  ;;  %v4269_v56 = vmax.f32 %v4259_v0, 0.0  ;;  %v5438_v5 = vadd.f32 %v4205_v7, %v2352_v35  ;;  %v5424_v6 = vpop.f32.mrb[13].mxu0 }
 0x309   : > { %v4208_v58 = vpop.f32.mrb[14].mxu0 }
 0x30a   : > { %4279 = vst.msk [vmem:[%s7335_s11 + $0x28] sm:$0xff] %vm458_vm3, %v4269_v56  ;;  %v4243_v12 = vmul.f32 %v5438_v5, %v7322_v16  ;;  %v5439_v47 = vadd.f32 %v4208_v58, %v2355_v37  ;;  %v5425_v31 = vpop.f32.mrb[15].mxu0 }
 0x30c   : > { %v4260_v25 = vadd.f32 %v7327_v3, %v4243_v12  ;;  %v4244_v18 = vmul.f32 %v5439_v47, %v7322_v16 }
 0x30e   : > { %v4270_v13 = vmax.f32 %v4260_v25, 0.0  ;;  %v4261_v59 = vadd.f32 %v7327_v3, %v4244_v18 }
 0x30f   : > { %v4213_v8 = vpop.f32.mrb[16].mxu0 }
 0x310   : > { %4280 = vst.msk [vmem:[%s7335_s11 + $0x30] sm:$0xff] %vm458_vm3, %v4270_v13  ;;  %v4271_v34 = vmax.f32 %v4261_v59, 0.0  ;;  %v5440_v60 = vadd.f32 %v4213_v8, %v2360_v50  ;;  %v5428_v19 = vpop.f32.mrb[17].mxu0 }
 0x311   : > { %v4216_v61 = vpop.f32.mrb[18].mxu0 }
 0x312   : > { %4281 = vst.msk [vmem:[%s7335_s11 + $0x38] sm:$0xff] %vm458_vm3, %v4271_v34  ;;  %v4245_v2 = vmul.f32 %v5440_v60, %v7322_v16  ;;  %v5441_v43 = vadd.f32 %v4216_v61, %v2363_v32  ;;  %v5429_v9 = vpop.f32.mrb[19].mxu0 }
 0x314   : > { %v4262_v17 = vadd.f32 %v7327_v3, %v4245_v2  ;;  %v4246_v26 = vmul.f32 %v5441_v43, %v7322_v16 }
 0x316   : > { %v4272_v46 = vmax.f32 %v4262_v17, 0.0  ;;  %v4263_v11 = vadd.f32 %v7327_v3, %v4246_v26 }
 0x318   : > { %4282 = vst.msk [vmem:[%s7335_s11 + $0x40] sm:$0xff] %vm458_vm3, %v4272_v46  ;;  %v4273_v52 = vmax.f32 %v4263_v11, 0.0 }
 0x31a   : > { %4283 = vst.msk [vmem:[%s7335_s11 + $0x48] sm:$0xff] %vm458_vm3, %v4273_v52 }
 0x31b PF: > { %s16_s25 = sadd.s32 1, %s6112_s25   ;;  %s7396_s21 = smov %s6104_s23 }
 0x31c   : > { %p13_p10 = scmp.ge.s32.totalorder %s16_s25, 18   ;;  %s7397_s22 = smov %s6108_s24 }
 0x31d   : > { %s7398_s23 = smov %s7401_s26  ;;  %s7399_s24 = smov %s7405_s27 }
 0x31e   :  { %15 = sbr.rel (!%p13_p10) target bundleno = 3 (0x3), region = 106 }

</bundles_post_ra>
